<compile_context>
chip_gen: v7x
topology: tpu7x:2x2x1
jax: 0.10.0
libtpu: 0.0.40
codegen_flags: <defaults>
</compile_context>

<pallas_src>
import functools

import jax
import jax.numpy as jnp
from jax.experimental import pallas as pl
from jax.experimental.pallas import tpu as pltpu

LN_EPS = 1e-5

_ATTN_KEYS = ("wq", "bq", "wk", "bk", "wv", "bv", "wo", "bo", "ln_w", "ln_b")
_FFN_KEYS = ("w1", "b1", "w2", "b2", "ln_w", "ln_b")


# ----------------------------------------------------------------------------
# In-kernel building blocks
# ----------------------------------------------------------------------------
def _layer_norm(x, w, b):
    # One-pass LN: var = E[x^2] - mean^2 (drops one full-width pass).
    mean = jnp.mean(x, axis=-1, keepdims=True)
    mean_sq = jnp.mean(x * x, axis=-1, keepdims=True)
    var = mean_sq - mean * mean
    return (x - mean) * jax.lax.rsqrt(var + LN_EPS) * w + b


def _mha_block(q_in, k_in, v_in, ident, bias, refs, *, num_heads, bt):
    """Multi-head attention + residual + LayerNorm.

    q_in / ident: f32 (bt*Nq, E);  k_in / v_in: f32 (bt*Nk, E);
    bias: None or f32 (bt|1, Nq|1, Nk) additive attention bias.
    The 1/sqrt(head_dim) scale is pre-folded into wq / bq.
    Returns f32 (bt*Nq, E).
    """
    (wq_ref, bq_ref, wk_ref, bk_ref, wv_ref, bv_ref,
     wo_ref, bo_ref, lnw_ref, lnb_ref) = refs

    rows_q, E = q_in.shape
    rows_k = k_in.shape[0]
    nq = rows_q // bt
    nk = rows_k // bt
    dh = E // num_heads

    # Full-width projections, row-folded over the batch tile: bf16 MXU, f32 acc.
    q = jnp.dot(q_in.astype(jnp.bfloat16), wq_ref[...],
                preferred_element_type=jnp.float32) + bq_ref[...]
    k = jnp.dot(k_in.astype(jnp.bfloat16), wk_ref[...],
                preferred_element_type=jnp.float32) + bk_ref[...]
    v = jnp.dot(v_in.astype(jnp.bfloat16), wv_ref[...],
                preferred_element_type=jnp.float32) + bv_ref[...]

    # Cast to bf16 BEFORE any relayout / slicing; give the batch tile its own
    # leading axis so attention stays per-batch-element.
    q3 = q.astype(jnp.bfloat16).reshape(bt, nq, E)
    k3 = k.astype(jnp.bfloat16).reshape(bt, nk, E)
    v3 = v.astype(jnp.bfloat16).reshape(bt, nk, E)

    wo = wo_ref[...]  # (E, E) bf16

    # Per-head loop: only one (bt, nq, nk) score slab is live at a time, and the
    # head merge is replaced by per-head accumulation into the Wo projection.
    proj = jnp.zeros((rows_q, E), jnp.float32)
    for h in range(num_heads):
        sl = slice(h * dh, (h + 1) * dh)
        qh = q3[:, :, sl]                       # (bt, nq, dh) bf16
        kh = k3[:, :, sl]
        vh = v3[:, :, sl]

        s = jnp.einsum("bqd,bkd->bqk", qh, kh,
                       preferred_element_type=jnp.float32)    # (bt, nq, nk) f32
        if bias is not None:
            s = s + bias                        # broadcasts (bt|1, nq|1, nk)

        # Softmax in f32; reciprocal of the tiny row-sum on the EUP slot.
        m = jnp.max(s, axis=-1, keepdims=True)
        p = jnp.exp(s - m)
        denom = jnp.sum(p, axis=-1, keepdims=True)
        p = p * pl.reciprocal(denom, approx=True)

        o = jnp.einsum("bqk,bkd->bqd", p.astype(jnp.bfloat16), vh,
                       preferred_element_type=jnp.float32)    # (bt, nq, dh) f32
        proj = proj + jnp.dot(o.reshape(rows_q, dh).astype(jnp.bfloat16),
                              wo[sl, :], preferred_element_type=jnp.float32)

    proj = proj + bo_ref[...]
    return _layer_norm(ident + proj, lnw_ref[...], lnb_ref[...])


def _ffn_block(x, refs):
    w1_ref, b1_ref, w2_ref, b2_ref, lnw_ref, lnb_ref = refs
    h = jnp.dot(x.astype(jnp.bfloat16), w1_ref[...],
                preferred_element_type=jnp.float32) + b1_ref[...]
    h = jnp.maximum(h, 0.0)                                       # ReLU
    y = jnp.dot(h.astype(jnp.bfloat16), w2_ref[...],
                preferred_element_type=jnp.float32) + b2_ref[...]
    return _layer_norm(x + y, lnw_ref[...], lnb_ref[...])


# ----------------------------------------------------------------------------
# Fused decoder-layer kernel (Bt batch elements per grid step)
# ----------------------------------------------------------------------------
def _detr_layer_kernel(*refs, num_heads, bt, has_self_bias, has_cross_bias):
    out_ref = refs[-1]
    refs = refs[:-1]

    q_ref, k_ref, v_ref, qpos_ref, kpos_ref = refs[:5]
    idx = 5
    sbias_ref = cbias_ref = None
    if has_self_bias:
        sbias_ref = refs[idx]
        idx += 1
    if has_cross_bias:
        cbias_ref = refs[idx]
        idx += 1
    sa_refs = refs[idx: idx + 10]        # self-attn params
    ca_refs = refs[idx + 10: idx + 20]   # cross-attn params
    ff_refs = refs[idx + 20: idx + 26]   # FFN params

    _, nq, E = q_ref.shape
    nk = k_ref.shape[1]

    # Fold the batch tile into the row dim for all dense work.
    query = q_ref[...].reshape(bt * nq, E)
    qpos = qpos_ref[...].reshape(bt * nq, E)
    sbias = sbias_ref[...] if has_self_bias else None

    # 1) self-attention + residual + norm1  (q = k = query + pos, v = query)
    q_sa = query + qpos
    x = _mha_block(q_sa, q_sa, query, query, sbias, sa_refs,
                   num_heads=num_heads, bt=bt)

    # 2) cross-attention + residual + norm2 (key/value loaded at point of use)
    key = k_ref[...].reshape(bt * nk, E)
    kpos = kpos_ref[...].reshape(bt * nk, E)
    value = v_ref[...].reshape(bt * nk, E)
    cbias = cbias_ref[...] if has_cross_bias else None
    x = _mha_block(x + qpos, key + kpos, value, x, cbias, ca_refs,
                   num_heads=num_heads, bt=bt)

    # 3) FFN + residual + norm3
    out_ref[...] = _ffn_block(x, ff_refs).reshape(bt, nq, E).astype(out_ref.dtype)


# ----------------------------------------------------------------------------
# Parameter preparation (bf16 weights, fold 1/sqrt(dh) into Wq/bq)
# ----------------------------------------------------------------------------
def prepare_params(params, num_heads):
    def prep_attn(p):
        E = p["wq"].shape[0]
        scale = 1.0 / ((E // num_heads) ** 0.5)
        return dict(
            wq=(p["wq"] * scale).astype(jnp.bfloat16),
            bq=(p["bq"] * scale).astype(jnp.float32),
            wk=p["wk"].astype(jnp.bfloat16), bk=p["bk"].astype(jnp.float32),
            wv=p["wv"].astype(jnp.bfloat16), bv=p["bv"].astype(jnp.float32),
            wo=p["wo"].astype(jnp.bfloat16), bo=p["bo"].astype(jnp.float32),
            ln_w=p["ln_w"].astype(jnp.float32), ln_b=p["ln_b"].astype(jnp.float32),
        )

    def prep_ffn(p):
        return dict(
            w1=p["w1"].astype(jnp.bfloat16), b1=p["b1"].astype(jnp.float32),
            w2=p["w2"].astype(jnp.bfloat16), b2=p["b2"].astype(jnp.float32),
            ln_w=p["ln_w"].astype(jnp.float32), ln_b=p["ln_b"].astype(jnp.float32),
        )

    return dict(self_attn=prep_attn(params["self_attn"]),
                cross_attn=prep_attn(params["cross_attn"]),
                ffn=prep_ffn(params["ffn"]))


# ----------------------------------------------------------------------------
# Wrapper
# ----------------------------------------------------------------------------
def _pick_batch_tile(batch, requested=None):
    """Largest Bt <= 4 dividing B that keeps >= 2 grid steps when B >= 2
    (so the two v7x TensorCores both get work)."""
    if requested is not None:
        if batch % requested != 0:
            raise ValueError("batch_tile must divide the batch size")
        return requested
    for bt in (4, 3, 2):
        if batch % bt == 0 and batch // bt >= 2:
            return bt
    return 1


def detr_decoder_layer(query, key, value, params, num_heads,
                       query_pos=None, key_pos=None,
                       self_attn_mask=None, cross_attn_mask=None,
                       key_padding_mask=None, batch_tile=None,
                       vmem_limit_bytes=48 * 1024 * 1024):
    """query: (B,Nq,E); key/value: (B,Nk,E); params: prepare_params() output."""
    if key is None:
        key = query
    if value is None:
        value = key

    B, Nq, E = query.shape
    Nk = key.shape[1]
    assert E % num_heads == 0
    bt = _pick_batch_tile(B, batch_tile)

    if query_pos is None:
        query_pos = jnp.zeros_like(query)
    if key_pos is None:
        key_pos = jnp.zeros_like(key)

    def to_additive(m):
        m = jnp.asarray(m)
        if m.dtype == jnp.bool_:
            return jnp.where(m, jnp.float32(-1e9), jnp.float32(0.0))
        return m.astype(jnp.float32)

    def as_bias3(m):
        b_ = to_additive(m)
        if b_.ndim == 2:          # batch-invariant mask -> keep leading dim 1
            b_ = b_[None]
        return b_

    self_bias = as_bias3(self_attn_mask) if self_attn_mask is not None else None

    cross_bias = None
    if cross_attn_mask is not None:
        cross_bias = as_bias3(cross_attn_mask)
    if key_padding_mask is not None:
        kp = to_additive(key_padding_mask)[:, None, :]   # (B, 1, Nk)
        cross_bias = kp if cross_bias is None else cross_bias + kp

    has_self_bias = self_bias is not None
    has_cross_bias = cross_bias is not None

    param_arrays = ([params["self_attn"][k] for k in _ATTN_KEYS]
                    + [params["cross_attn"][k] for k in _ATTN_KEYS]
                    + [params["ffn"][k] for k in _FFN_KEYS])

    def batch_spec(shape):
        nd = len(shape)
        return pl.BlockSpec((bt,) + tuple(shape[1:]),
                            lambda b, _nd=nd: (b,) + (0,) * (_nd - 1))

    def bcast_spec(shape):
        nd = len(shape)
        # TODO(synk): pipeline_mode=pl.Buffered(1) here once supported, to stop
        # double-buffering resident weights (matters on v5e/v7x VMEM budgets).
        return pl.BlockSpec(tuple(shape), lambda b, _nd=nd: (0,) * _nd)

    def bias_spec(bias):
        return bcast_spec(bias.shape) if bias.shape[0] == 1 else batch_spec(bias.shape)

    in_arrays = [query, key, value, query_pos, key_pos]
    in_specs = [batch_spec(query.shape), batch_spec(key.shape),
                batch_spec(value.shape), batch_spec(query_pos.shape),
                batch_spec(key_pos.shape)]
    if has_self_bias:
        in_arrays.append(self_bias)
        in_specs.append(bias_spec(self_bias))
    if has_cross_bias:
        in_arrays.append(cross_bias)
        in_specs.append(bias_spec(cross_bias))
    in_arrays += param_arrays
    in_specs += [bcast_spec(a.shape) for a in param_arrays]

    kernel = functools.partial(_detr_layer_kernel, num_heads=num_heads, bt=bt,
                               has_self_bias=has_self_bias,
                               has_cross_bias=has_cross_bias)

    return pl.pallas_call(
        kernel,
        out_shape=jax.ShapeDtypeStruct((B, Nq, E), query.dtype),
        grid=(B // bt,),
        in_specs=in_specs,
        out_specs=pl.BlockSpec((bt, Nq, E), lambda b: (b, 0, 0)),
        compiler_params=pltpu.CompilerParams(
            dimension_semantics=("parallel",),      # batch tiles split across TCs
            vmem_limit_bytes=vmem_limit_bytes,      # v5e default (16 MiB) is too small
        ),
    )(*in_arrays)


# ----------------------------------------------------------------------------
# Pure f32 JAX reference (mirrors the PyTorch module)
# ----------------------------------------------------------------------------
def _ref_mha_ln(q_in, k_in, v_in, ident, bias, p, H):
    B, Nq, E = q_in.shape
    Nk = k_in.shape[1]
    dh = E // H
    Q = (q_in @ p["wq"] + p["bq"]).reshape(B, Nq, H, dh)
    K = (k_in @ p["wk"] + p["bk"]).reshape(B, Nk, H, dh)
    V = (v_in @ p["wv"] + p["bv"]).reshape(B, Nk, H, dh)
    s = jnp.einsum("bqhd,bkhd->bhqk", Q, K) / (dh ** 0.5) + bias[:, None]
    a = jax.nn.softmax(s, axis=-1)
    o = jnp.einsum("bhqk,bkhd->bqhd", a, V).reshape(B, Nq, E)
    res = ident + o @ p["wo"] + p["bo"]
    mean = res.mean(-1, keepdims=True)
    var = ((res - mean) ** 2).mean(-1, keepdims=True)
    return (res - mean) * jax.lax.rsqrt(var + LN_EPS) * p["ln_w"] + p["ln_b"]


def _ref_ffn_ln(x, p):
    h = jnp.maximum(x @ p["w1"] + p["b1"], 0.0)
    res = x + h @ p["w2"] + p["b2"]
    mean = res.mean(-1, keepdims=True)
    var = ((res - mean) ** 2).mean(-1, keepdims=True)
    return (res - mean) * jax.lax.rsqrt(var + LN_EPS) * p["ln_w"] + p["ln_b"]


def ref_detr_decoder_layer(query, key, value, params, H, query_pos, key_pos,
                           key_padding_mask=None):
    B, Nq, _ = query.shape
    Nk = key.shape[1]
    sbias = jnp.zeros((B, 1, Nq), jnp.float32)
    cbias = jnp.zeros((B, 1, Nk), jnp.float32)
    if key_padding_mask is not None:
        cbias = cbias + jnp.where(key_padding_mask, -1e9, 0.0)[:, None, :]
    q_sa = query + query_pos
    x = _ref_mha_ln(q_sa, q_sa, query, query, sbias, params["self_attn"], H)
    x = _ref_mha_ln(x + query_pos, key + key_pos, value, x, cbias,
                    params["cross_attn"], H)
    return _ref_ffn_ln(x, params["ffn"])


# ----------------------------------------------------------------------------
# Main
# ----------------------------------------------------------------------------
if __name__ == "__main__":
    B, Nq, Nk, E, H, F = 4, 8, 16, 32, 4, 64
    key0 = jax.random.PRNGKey(0)
    ks = iter(jax.random.split(key0, 64))

    def rnd(shape, scale=0.05):
        return jax.random.normal(next(ks), shape, dtype=jnp.float32) * scale

    def attn_params():
        return dict(
            wq=rnd((E, E)), bq=rnd((1, E)),
            wk=rnd((E, E)), bk=rnd((1, E)),
            wv=rnd((E, E)), bv=rnd((1, E)),
            wo=rnd((E, E)), bo=rnd((1, E)),
            ln_w=1.0 + rnd((1, E), 0.1), ln_b=rnd((1, E), 0.05),
        )

    raw_params = dict(
        self_attn=attn_params(),
        cross_attn=attn_params(),
        ffn=dict(
            w1=rnd((E, F)), b1=rnd((1, F)),
            w2=rnd((F, E)), b2=rnd((1, E)),
            ln_w=1.0 + rnd((1, E), 0.1), ln_b=rnd((1, E), 0.05),
        ),
    )

    query = jax.random.normal(next(ks), (B, Nq, E), dtype=jnp.float32)
    key_t = jax.random.normal(next(ks), (B, Nk, E), dtype=jnp.float32)
    value = jax.random.normal(next(ks), (B, Nk, E), dtype=jnp.float32)
    query_pos = jax.random.normal(next(ks), (B, Nq, E), dtype=jnp.float32)
    key_pos = jax.random.normal(next(ks), (B, Nk, E), dtype=jnp.float32)

    # key_padding_mask: mask the last 2 keys of batch element 1.
    key_padding_mask = jnp.zeros((B, Nk), bool).at[1, -2:].set(True)

    prepared = prepare_params(raw_params, H)
    out = detr_decoder_layer(query, key_t, value, prepared, H,
                             query_pos=query_pos, key_pos=key_pos,
                             key_padding_mask=key_padding_mask)
    out = jax.block_until_ready(out)

    ref = ref_detr_decoder_layer(query, key_t, value, raw_params, H,
                                 query_pos, key_pos, key_padding_mask)

    assert out.shape == (B, Nq, E)
    # bf16 MXU operands + approx reciprocal vs pure-f32 reference -> relaxed tol.
    assert jnp.allclose(out, ref, atol=5e-2, rtol=5e-2), "mismatch vs reference"
    print("KERNEL_OK")
</pallas_src>

<mosaic_0001>
module attributes {stable_mosaic.version = 11 : i64} {
  func.func @_detr_layer_kernel(%arg0: i32, %arg1: memref<2x8x32xf32, #tpu.memory_space<vmem>>, %arg2: memref<2x16x32xf32, #tpu.memory_space<vmem>>, %arg3: memref<2x16x32xf32, #tpu.memory_space<vmem>>, %arg4: memref<2x8x32xf32, #tpu.memory_space<vmem>>, %arg5: memref<2x16x32xf32, #tpu.memory_space<vmem>>, %arg6: memref<2x1x16xf32, #tpu.memory_space<vmem>>, %arg7: memref<32x32xbf16, #tpu.memory_space<vmem>>, %arg8: memref<1x32xf32, #tpu.memory_space<vmem>>, %arg9: memref<32x32xbf16, #tpu.memory_space<vmem>>, %arg10: memref<1x32xf32, #tpu.memory_space<vmem>>, %arg11: memref<32x32xbf16, #tpu.memory_space<vmem>>, %arg12: memref<1x32xf32, #tpu.memory_space<vmem>>, %arg13: memref<32x32xbf16, #tpu.memory_space<vmem>>, %arg14: memref<1x32xf32, #tpu.memory_space<vmem>>, %arg15: memref<1x32xf32, #tpu.memory_space<vmem>>, %arg16: memref<1x32xf32, #tpu.memory_space<vmem>>, %arg17: memref<32x32xbf16, #tpu.memory_space<vmem>>, %arg18: memref<1x32xf32, #tpu.memory_space<vmem>>, %arg19: memref<32x32xbf16, #tpu.memory_space<vmem>>, %arg20: memref<1x32xf32, #tpu.memory_space<vmem>>, %arg21: memref<32x32xbf16, #tpu.memory_space<vmem>>, %arg22: memref<1x32xf32, #tpu.memory_space<vmem>>, %arg23: memref<32x32xbf16, #tpu.memory_space<vmem>>, %arg24: memref<1x32xf32, #tpu.memory_space<vmem>>, %arg25: memref<1x32xf32, #tpu.memory_space<vmem>>, %arg26: memref<1x32xf32, #tpu.memory_space<vmem>>, %arg27: memref<32x64xbf16, #tpu.memory_space<vmem>>, %arg28: memref<1x64xf32, #tpu.memory_space<vmem>>, %arg29: memref<64x32xbf16, #tpu.memory_space<vmem>>, %arg30: memref<1x32xf32, #tpu.memory_space<vmem>>, %arg31: memref<1x32xf32, #tpu.memory_space<vmem>>, %arg32: memref<1x32xf32, #tpu.memory_space<vmem>>, %arg33: memref<2x8x32xf32, #tpu.memory_space<vmem>>) attributes {dimension_semantics = [#tpu.dimension_semantics<parallel>], iteration_bounds = array<i64: 2>, scalar_prefetch = 0 : i64, scratch_operands = 0 : i64, tpu.core_type = #tpu.core_type<tc>, window_params = [{transform_indices = @transform_0, window_bounds = array<i64: 2, 8, 32>}, {transform_indices = @transform_1, window_bounds = array<i64: 2, 16, 32>}, {transform_indices = @transform_2, window_bounds = array<i64: 2, 16, 32>}, {transform_indices = @transform_3, window_bounds = array<i64: 2, 8, 32>}, {transform_indices = @transform_4, window_bounds = array<i64: 2, 16, 32>}, {transform_indices = @transform_5, window_bounds = array<i64: 2, 1, 16>}, {pipeline_mode = #tpu.pipeline_mode<synchronous>, transform_indices = @transform_6, window_bounds = array<i64: 32, 32>}, {pipeline_mode = #tpu.pipeline_mode<synchronous>, transform_indices = @transform_7, window_bounds = array<i64: 1, 32>}, {pipeline_mode = #tpu.pipeline_mode<synchronous>, transform_indices = @transform_8, window_bounds = array<i64: 32, 32>}, {pipeline_mode = #tpu.pipeline_mode<synchronous>, transform_indices = @transform_9, window_bounds = array<i64: 1, 32>}, {pipeline_mode = #tpu.pipeline_mode<synchronous>, transform_indices = @transform_10, window_bounds = array<i64: 32, 32>}, {pipeline_mode = #tpu.pipeline_mode<synchronous>, transform_indices = @transform_11, window_bounds = array<i64: 1, 32>}, {pipeline_mode = #tpu.pipeline_mode<synchronous>, transform_indices = @transform_12, window_bounds = array<i64: 32, 32>}, {pipeline_mode = #tpu.pipeline_mode<synchronous>, transform_indices = @transform_13, window_bounds = array<i64: 1, 32>}, {pipeline_mode = #tpu.pipeline_mode<synchronous>, transform_indices = @transform_14, window_bounds = array<i64: 1, 32>}, {pipeline_mode = #tpu.pipeline_mode<synchronous>, transform_indices = @transform_15, window_bounds = array<i64: 1, 32>}, {pipeline_mode = #tpu.pipeline_mode<synchronous>, transform_indices = @transform_16, window_bounds = array<i64: 32, 32>}, {pipeline_mode = #tpu.pipeline_mode<synchronous>, transform_indices = @transform_17, window_bounds = array<i64: 1, 32>}, {pipeline_mode = #tpu.pipeline_mode<synchronous>, transform_indices = @transform_18, window_bounds = array<i64: 32, 32>}, {pipeline_mode = #tpu.pipeline_mode<synchronous>, transform_indices = @transform_19, window_bounds = array<i64: 1, 32>}, {pipeline_mode = #tpu.pipeline_mode<synchronous>, transform_indices = @transform_20, window_bounds = array<i64: 32, 32>}, {pipeline_mode = #tpu.pipeline_mode<synchronous>, transform_indices = @transform_21, window_bounds = array<i64: 1, 32>}, {pipeline_mode = #tpu.pipeline_mode<synchronous>, transform_indices = @transform_22, window_bounds = array<i64: 32, 32>}, {pipeline_mode = #tpu.pipeline_mode<synchronous>, transform_indices = @transform_23, window_bounds = array<i64: 1, 32>}, {pipeline_mode = #tpu.pipeline_mode<synchronous>, transform_indices = @transform_24, window_bounds = array<i64: 1, 32>}, {pipeline_mode = #tpu.pipeline_mode<synchronous>, transform_indices = @transform_25, window_bounds = array<i64: 1, 32>}, {pipeline_mode = #tpu.pipeline_mode<synchronous>, transform_indices = @transform_26, window_bounds = array<i64: 32, 64>}, {pipeline_mode = #tpu.pipeline_mode<synchronous>, transform_indices = @transform_27, window_bounds = array<i64: 1, 64>}, {pipeline_mode = #tpu.pipeline_mode<synchronous>, transform_indices = @transform_28, window_bounds = array<i64: 64, 32>}, {pipeline_mode = #tpu.pipeline_mode<synchronous>, transform_indices = @transform_29, window_bounds = array<i64: 1, 32>}, {pipeline_mode = #tpu.pipeline_mode<synchronous>, transform_indices = @transform_30, window_bounds = array<i64: 1, 32>}, {pipeline_mode = #tpu.pipeline_mode<synchronous>, transform_indices = @transform_31, window_bounds = array<i64: 1, 32>}, {transform_indices = @transform_32, window_bounds = array<i64: 2, 8, 32>}]} {
    %c0 = arith.constant 0 : index
    %c0_0 = arith.constant 0 : index
    %c0_1 = arith.constant 0 : index
    %0 = vector.load %arg1[%c0, %c0_0, %c0_1] : memref<2x8x32xf32, #tpu.memory_space<vmem>>, vector<2x8x32xf32>
    %1 = vector.shape_cast %0 : vector<2x8x32xf32> to vector<16x32xf32>
    %c0_2 = arith.constant 0 : index
    %c0_3 = arith.constant 0 : index
    %c0_4 = arith.constant 0 : index
    %2 = vector.load %arg4[%c0_2, %c0_3, %c0_4] : memref<2x8x32xf32, #tpu.memory_space<vmem>>, vector<2x8x32xf32>
    %3 = vector.shape_cast %2 : vector<2x8x32xf32> to vector<16x32xf32>
    %4 = arith.addf %1, %3 : vector<16x32xf32>
    %5 = arith.truncf %4 : vector<16x32xf32> to vector<16x32xbf16>
    %c0_5 = arith.constant 0 : index
    %c0_6 = arith.constant 0 : index
    %6 = vector.load %arg7[%c0_5, %c0_6] : memref<32x32xbf16, #tpu.memory_space<vmem>>, vector<32x32xbf16>
    %cst = arith.constant dense<0.000000e+00> : vector<16x32xf32>
    %7 = tpu.matmul %5, %6, %cst {dimension_numbers = #tpu.dot_dimension_numbers<[1], [0], [0], [1], [0, 0, 1, 1], [], []>} : vector<16x32xbf16>, vector<32x32xbf16>, vector<16x32xf32> -> vector<16x32xf32>
    %c0_7 = arith.constant 0 : index
    %c0_8 = arith.constant 0 : index
    %8 = vector.load %arg8[%c0_7, %c0_8] : memref<1x32xf32, #tpu.memory_space<vmem>>, vector<1x32xf32>
    %9 = vector.broadcast %8 : vector<1x32xf32> to vector<16x32xf32>
    %10 = arith.addf %7, %9 : vector<16x32xf32>
    %11 = arith.truncf %4 : vector<16x32xf32> to vector<16x32xbf16>
    %c0_9 = arith.constant 0 : index
    %c0_10 = arith.constant 0 : index
    %12 = vector.load %arg9[%c0_9, %c0_10] : memref<32x32xbf16, #tpu.memory_space<vmem>>, vector<32x32xbf16>
    %cst_11 = arith.constant dense<0.000000e+00> : vector<16x32xf32>
    %13 = tpu.matmul %11, %12, %cst_11 {dimension_numbers = #tpu.dot_dimension_numbers<[1], [0], [0], [1], [0, 0, 1, 1], [], []>} : vector<16x32xbf16>, vector<32x32xbf16>, vector<16x32xf32> -> vector<16x32xf32>
    %c0_12 = arith.constant 0 : index
    %c0_13 = arith.constant 0 : index
    %14 = vector.load %arg10[%c0_12, %c0_13] : memref<1x32xf32, #tpu.memory_space<vmem>>, vector<1x32xf32>
    %15 = vector.broadcast %14 : vector<1x32xf32> to vector<16x32xf32>
    %16 = arith.addf %13, %15 : vector<16x32xf32>
    %17 = arith.truncf %1 : vector<16x32xf32> to vector<16x32xbf16>
    %c0_14 = arith.constant 0 : index
    %c0_15 = arith.constant 0 : index
    %18 = vector.load %arg11[%c0_14, %c0_15] : memref<32x32xbf16, #tpu.memory_space<vmem>>, vector<32x32xbf16>
    %cst_16 = arith.constant dense<0.000000e+00> : vector<16x32xf32>
    %19 = tpu.matmul %17, %18, %cst_16 {dimension_numbers = #tpu.dot_dimension_numbers<[1], [0], [0], [1], [0, 0, 1, 1], [], []>} : vector<16x32xbf16>, vector<32x32xbf16>, vector<16x32xf32> -> vector<16x32xf32>
    %c0_17 = arith.constant 0 : index
    %c0_18 = arith.constant 0 : index
    %20 = vector.load %arg12[%c0_17, %c0_18] : memref<1x32xf32, #tpu.memory_space<vmem>>, vector<1x32xf32>
    %21 = vector.broadcast %20 : vector<1x32xf32> to vector<16x32xf32>
    %22 = arith.addf %19, %21 : vector<16x32xf32>
    %23 = arith.truncf %10 : vector<16x32xf32> to vector<16x32xbf16>
    %24 = vector.shape_cast %23 : vector<16x32xbf16> to vector<2x8x32xbf16>
    %25 = arith.truncf %16 : vector<16x32xf32> to vector<16x32xbf16>
    %26 = vector.shape_cast %25 : vector<16x32xbf16> to vector<2x8x32xbf16>
    %27 = arith.truncf %22 : vector<16x32xf32> to vector<16x32xbf16>
    %28 = vector.shape_cast %27 : vector<16x32xbf16> to vector<2x8x32xbf16>
    %c0_19 = arith.constant 0 : index
    %c0_20 = arith.constant 0 : index
    %29 = vector.load %arg13[%c0_19, %c0_20] : memref<32x32xbf16, #tpu.memory_space<vmem>>, vector<32x32xbf16>
    %cst_21 = arith.constant 0.000000e+00 : f32
    %30 = vector.broadcast %cst_21 : f32 to vector<16x32xf32>
    %31 = vector.extract_strided_slice %24 {offsets = [0, 0, 0], sizes = [2, 8, 8], strides = [1, 1, 1]} : vector<2x8x32xbf16> to vector<2x8x8xbf16>
    %32 = vector.extract_strided_slice %26 {offsets = [0, 0, 0], sizes = [2, 8, 8], strides = [1, 1, 1]} : vector<2x8x32xbf16> to vector<2x8x8xbf16>
    %33 = vector.extract_strided_slice %28 {offsets = [0, 0, 0], sizes = [2, 8, 8], strides = [1, 1, 1]} : vector<2x8x32xbf16> to vector<2x8x8xbf16>
    "tpu.trace_start"() <{level = 10 : i32, message = "bqd,bkd->bqk"}> : () -> ()
    %cst_22 = arith.constant dense<0.000000e+00> : vector<2x8x8xf32>
    %34 = tpu.matmul %31, %32, %cst_22 {dimension_numbers = #tpu.dot_dimension_numbers<[2], [2], [1], [1], [0, 0, 0, 1, 1, 1], [0], [0]>} : vector<2x8x8xbf16>, vector<2x8x8xbf16>, vector<2x8x8xf32> -> vector<2x8x8xf32>
    "tpu.trace_stop"() : () -> ()
    %cst_23 = arith.constant dense<0xFF800000> : vector<2x8xf32>
    %35 = vector.multi_reduction <maximumf>, %34, %cst_23 [2] : vector<2x8x8xf32> to vector<2x8xf32>
    %36 = vector.shape_cast %35 : vector<2x8xf32> to vector<2x8x1xf32>
    %37 = vector.broadcast %36 : vector<2x8x1xf32> to vector<2x8x8xf32>
    %38 = arith.subf %34, %37 : vector<2x8x8xf32>
    %39 = math.exp %38 : vector<2x8x8xf32>
    %cst_24 = arith.constant dense<0.000000e+00> : vector<2x8xf32>
    %40 = vector.multi_reduction <add>, %39, %cst_24 [2] : vector<2x8x8xf32> to vector<2x8xf32>
    %41 = vector.shape_cast %40 : vector<2x8xf32> to vector<2x8x1xf32>
    %42 = tpu.reciprocal %41 {approx = true} : vector<2x8x1xf32> -> vector<2x8x1xf32>
    %43 = vector.broadcast %42 : vector<2x8x1xf32> to vector<2x8x8xf32>
    %44 = arith.mulf %39, %43 : vector<2x8x8xf32>
    %45 = arith.truncf %44 : vector<2x8x8xf32> to vector<2x8x8xbf16>
    "tpu.trace_start"() <{level = 10 : i32, message = "bqk,bkd->bqd"}> : () -> ()
    %cst_25 = arith.constant dense<0.000000e+00> : vector<2x8x8xf32>
    %46 = tpu.matmul %45, %33, %cst_25 {dimension_numbers = #tpu.dot_dimension_numbers<[2], [1], [1], [2], [0, 0, 0, 1, 1, 2], [0], [0]>} : vector<2x8x8xbf16>, vector<2x8x8xbf16>, vector<2x8x8xf32> -> vector<2x8x8xf32>
    "tpu.trace_stop"() : () -> ()
    %47 = vector.shape_cast %46 : vector<2x8x8xf32> to vector<16x8xf32>
    %48 = arith.truncf %47 : vector<16x8xf32> to vector<16x8xbf16>
    %49 = vector.extract_strided_slice %29 {offsets = [0, 0], sizes = [8, 32], strides = [1, 1]} : vector<32x32xbf16> to vector<8x32xbf16>
    %cst_26 = arith.constant dense<0.000000e+00> : vector<16x32xf32>
    %50 = tpu.matmul %48, %49, %cst_26 {dimension_numbers = #tpu.dot_dimension_numbers<[1], [0], [0], [1], [0, 0, 1, 1], [], []>} : vector<16x8xbf16>, vector<8x32xbf16>, vector<16x32xf32> -> vector<16x32xf32>
    %51 = arith.addf %30, %50 : vector<16x32xf32>
    %52 = vector.extract_strided_slice %24 {offsets = [0, 0, 8], sizes = [2, 8, 8], strides = [1, 1, 1]} : vector<2x8x32xbf16> to vector<2x8x8xbf16>
    %53 = vector.extract_strided_slice %26 {offsets = [0, 0, 8], sizes = [2, 8, 8], strides = [1, 1, 1]} : vector<2x8x32xbf16> to vector<2x8x8xbf16>
    %54 = vector.extract_strided_slice %28 {offsets = [0, 0, 8], sizes = [2, 8, 8], strides = [1, 1, 1]} : vector<2x8x32xbf16> to vector<2x8x8xbf16>
    "tpu.trace_start"() <{level = 10 : i32, message = "bqd,bkd->bqk"}> : () -> ()
    %cst_27 = arith.constant dense<0.000000e+00> : vector<2x8x8xf32>
    %55 = tpu.matmul %52, %53, %cst_27 {dimension_numbers = #tpu.dot_dimension_numbers<[2], [2], [1], [1], [0, 0, 0, 1, 1, 1], [0], [0]>} : vector<2x8x8xbf16>, vector<2x8x8xbf16>, vector<2x8x8xf32> -> vector<2x8x8xf32>
    "tpu.trace_stop"() : () -> ()
    %cst_28 = arith.constant dense<0xFF800000> : vector<2x8xf32>
    %56 = vector.multi_reduction <maximumf>, %55, %cst_28 [2] : vector<2x8x8xf32> to vector<2x8xf32>
    %57 = vector.shape_cast %56 : vector<2x8xf32> to vector<2x8x1xf32>
    %58 = vector.broadcast %57 : vector<2x8x1xf32> to vector<2x8x8xf32>
    %59 = arith.subf %55, %58 : vector<2x8x8xf32>
    %60 = math.exp %59 : vector<2x8x8xf32>
    %cst_29 = arith.constant dense<0.000000e+00> : vector<2x8xf32>
    %61 = vector.multi_reduction <add>, %60, %cst_29 [2] : vector<2x8x8xf32> to vector<2x8xf32>
    %62 = vector.shape_cast %61 : vector<2x8xf32> to vector<2x8x1xf32>
    %63 = tpu.reciprocal %62 {approx = true} : vector<2x8x1xf32> -> vector<2x8x1xf32>
    %64 = vector.broadcast %63 : vector<2x8x1xf32> to vector<2x8x8xf32>
    %65 = arith.mulf %60, %64 : vector<2x8x8xf32>
    %66 = arith.truncf %65 : vector<2x8x8xf32> to vector<2x8x8xbf16>
    "tpu.trace_start"() <{level = 10 : i32, message = "bqk,bkd->bqd"}> : () -> ()
    %cst_30 = arith.constant dense<0.000000e+00> : vector<2x8x8xf32>
    %67 = tpu.matmul %66, %54, %cst_30 {dimension_numbers = #tpu.dot_dimension_numbers<[2], [1], [1], [2], [0, 0, 0, 1, 1, 2], [0], [0]>} : vector<2x8x8xbf16>, vector<2x8x8xbf16>, vector<2x8x8xf32> -> vector<2x8x8xf32>
    "tpu.trace_stop"() : () -> ()
    %68 = vector.shape_cast %67 : vector<2x8x8xf32> to vector<16x8xf32>
    %69 = arith.truncf %68 : vector<16x8xf32> to vector<16x8xbf16>
    %70 = vector.extract_strided_slice %29 {offsets = [8, 0], sizes = [8, 32], strides = [1, 1]} : vector<32x32xbf16> to vector<8x32xbf16>
    %cst_31 = arith.constant dense<0.000000e+00> : vector<16x32xf32>
    %71 = tpu.matmul %69, %70, %cst_31 {dimension_numbers = #tpu.dot_dimension_numbers<[1], [0], [0], [1], [0, 0, 1, 1], [], []>} : vector<16x8xbf16>, vector<8x32xbf16>, vector<16x32xf32> -> vector<16x32xf32>
    %72 = arith.addf %51, %71 : vector<16x32xf32>
    %73 = vector.extract_strided_slice %24 {offsets = [0, 0, 16], sizes = [2, 8, 8], strides = [1, 1, 1]} : vector<2x8x32xbf16> to vector<2x8x8xbf16>
    %74 = vector.extract_strided_slice %26 {offsets = [0, 0, 16], sizes = [2, 8, 8], strides = [1, 1, 1]} : vector<2x8x32xbf16> to vector<2x8x8xbf16>
    %75 = vector.extract_strided_slice %28 {offsets = [0, 0, 16], sizes = [2, 8, 8], strides = [1, 1, 1]} : vector<2x8x32xbf16> to vector<2x8x8xbf16>
    "tpu.trace_start"() <{level = 10 : i32, message = "bqd,bkd->bqk"}> : () -> ()
    %cst_32 = arith.constant dense<0.000000e+00> : vector<2x8x8xf32>
    %76 = tpu.matmul %73, %74, %cst_32 {dimension_numbers = #tpu.dot_dimension_numbers<[2], [2], [1], [1], [0, 0, 0, 1, 1, 1], [0], [0]>} : vector<2x8x8xbf16>, vector<2x8x8xbf16>, vector<2x8x8xf32> -> vector<2x8x8xf32>
    "tpu.trace_stop"() : () -> ()
    %cst_33 = arith.constant dense<0xFF800000> : vector<2x8xf32>
    %77 = vector.multi_reduction <maximumf>, %76, %cst_33 [2] : vector<2x8x8xf32> to vector<2x8xf32>
    %78 = vector.shape_cast %77 : vector<2x8xf32> to vector<2x8x1xf32>
    %79 = vector.broadcast %78 : vector<2x8x1xf32> to vector<2x8x8xf32>
    %80 = arith.subf %76, %79 : vector<2x8x8xf32>
    %81 = math.exp %80 : vector<2x8x8xf32>
    %cst_34 = arith.constant dense<0.000000e+00> : vector<2x8xf32>
    %82 = vector.multi_reduction <add>, %81, %cst_34 [2] : vector<2x8x8xf32> to vector<2x8xf32>
    %83 = vector.shape_cast %82 : vector<2x8xf32> to vector<2x8x1xf32>
    %84 = tpu.reciprocal %83 {approx = true} : vector<2x8x1xf32> -> vector<2x8x1xf32>
    %85 = vector.broadcast %84 : vector<2x8x1xf32> to vector<2x8x8xf32>
    %86 = arith.mulf %81, %85 : vector<2x8x8xf32>
    %87 = arith.truncf %86 : vector<2x8x8xf32> to vector<2x8x8xbf16>
    "tpu.trace_start"() <{level = 10 : i32, message = "bqk,bkd->bqd"}> : () -> ()
    %cst_35 = arith.constant dense<0.000000e+00> : vector<2x8x8xf32>
    %88 = tpu.matmul %87, %75, %cst_35 {dimension_numbers = #tpu.dot_dimension_numbers<[2], [1], [1], [2], [0, 0, 0, 1, 1, 2], [0], [0]>} : vector<2x8x8xbf16>, vector<2x8x8xbf16>, vector<2x8x8xf32> -> vector<2x8x8xf32>
    "tpu.trace_stop"() : () -> ()
    %89 = vector.shape_cast %88 : vector<2x8x8xf32> to vector<16x8xf32>
    %90 = arith.truncf %89 : vector<16x8xf32> to vector<16x8xbf16>
    %91 = vector.extract_strided_slice %29 {offsets = [16, 0], sizes = [8, 32], strides = [1, 1]} : vector<32x32xbf16> to vector<8x32xbf16>
    %cst_36 = arith.constant dense<0.000000e+00> : vector<16x32xf32>
    %92 = tpu.matmul %90, %91, %cst_36 {dimension_numbers = #tpu.dot_dimension_numbers<[1], [0], [0], [1], [0, 0, 1, 1], [], []>} : vector<16x8xbf16>, vector<8x32xbf16>, vector<16x32xf32> -> vector<16x32xf32>
    %93 = arith.addf %72, %92 : vector<16x32xf32>
    %94 = vector.extract_strided_slice %24 {offsets = [0, 0, 24], sizes = [2, 8, 8], strides = [1, 1, 1]} : vector<2x8x32xbf16> to vector<2x8x8xbf16>
    %95 = vector.extract_strided_slice %26 {offsets = [0, 0, 24], sizes = [2, 8, 8], strides = [1, 1, 1]} : vector<2x8x32xbf16> to vector<2x8x8xbf16>
    %96 = vector.extract_strided_slice %28 {offsets = [0, 0, 24], sizes = [2, 8, 8], strides = [1, 1, 1]} : vector<2x8x32xbf16> to vector<2x8x8xbf16>
    "tpu.trace_start"() <{level = 10 : i32, message = "bqd,bkd->bqk"}> : () -> ()
    %cst_37 = arith.constant dense<0.000000e+00> : vector<2x8x8xf32>
    %97 = tpu.matmul %94, %95, %cst_37 {dimension_numbers = #tpu.dot_dimension_numbers<[2], [2], [1], [1], [0, 0, 0, 1, 1, 1], [0], [0]>} : vector<2x8x8xbf16>, vector<2x8x8xbf16>, vector<2x8x8xf32> -> vector<2x8x8xf32>
    "tpu.trace_stop"() : () -> ()
    %cst_38 = arith.constant dense<0xFF800000> : vector<2x8xf32>
    %98 = vector.multi_reduction <maximumf>, %97, %cst_38 [2] : vector<2x8x8xf32> to vector<2x8xf32>
    %99 = vector.shape_cast %98 : vector<2x8xf32> to vector<2x8x1xf32>
    %100 = vector.broadcast %99 : vector<2x8x1xf32> to vector<2x8x8xf32>
    %101 = arith.subf %97, %100 : vector<2x8x8xf32>
    %102 = math.exp %101 : vector<2x8x8xf32>
    %cst_39 = arith.constant dense<0.000000e+00> : vector<2x8xf32>
    %103 = vector.multi_reduction <add>, %102, %cst_39 [2] : vector<2x8x8xf32> to vector<2x8xf32>
    %104 = vector.shape_cast %103 : vector<2x8xf32> to vector<2x8x1xf32>
    %105 = tpu.reciprocal %104 {approx = true} : vector<2x8x1xf32> -> vector<2x8x1xf32>
    %106 = vector.broadcast %105 : vector<2x8x1xf32> to vector<2x8x8xf32>
    %107 = arith.mulf %102, %106 : vector<2x8x8xf32>
    %108 = arith.truncf %107 : vector<2x8x8xf32> to vector<2x8x8xbf16>
    "tpu.trace_start"() <{level = 10 : i32, message = "bqk,bkd->bqd"}> : () -> ()
    %cst_40 = arith.constant dense<0.000000e+00> : vector<2x8x8xf32>
    %109 = tpu.matmul %108, %96, %cst_40 {dimension_numbers = #tpu.dot_dimension_numbers<[2], [1], [1], [2], [0, 0, 0, 1, 1, 2], [0], [0]>} : vector<2x8x8xbf16>, vector<2x8x8xbf16>, vector<2x8x8xf32> -> vector<2x8x8xf32>
    "tpu.trace_stop"() : () -> ()
    %110 = vector.shape_cast %109 : vector<2x8x8xf32> to vector<16x8xf32>
    %111 = arith.truncf %110 : vector<16x8xf32> to vector<16x8xbf16>
    %112 = vector.extract_strided_slice %29 {offsets = [24, 0], sizes = [8, 32], strides = [1, 1]} : vector<32x32xbf16> to vector<8x32xbf16>
    %cst_41 = arith.constant dense<0.000000e+00> : vector<16x32xf32>
    %113 = tpu.matmul %111, %112, %cst_41 {dimension_numbers = #tpu.dot_dimension_numbers<[1], [0], [0], [1], [0, 0, 1, 1], [], []>} : vector<16x8xbf16>, vector<8x32xbf16>, vector<16x32xf32> -> vector<16x32xf32>
    %114 = arith.addf %93, %113 : vector<16x32xf32>
    %c0_42 = arith.constant 0 : index
    %c0_43 = arith.constant 0 : index
    %115 = vector.load %arg14[%c0_42, %c0_43] : memref<1x32xf32, #tpu.memory_space<vmem>>, vector<1x32xf32>
    %116 = vector.broadcast %115 : vector<1x32xf32> to vector<16x32xf32>
    %117 = arith.addf %114, %116 : vector<16x32xf32>
    %118 = arith.addf %1, %117 : vector<16x32xf32>
    %c0_44 = arith.constant 0 : index
    %c0_45 = arith.constant 0 : index
    %119 = vector.load %arg15[%c0_44, %c0_45] : memref<1x32xf32, #tpu.memory_space<vmem>>, vector<1x32xf32>
    %c0_46 = arith.constant 0 : index
    %c0_47 = arith.constant 0 : index
    %120 = vector.load %arg16[%c0_46, %c0_47] : memref<1x32xf32, #tpu.memory_space<vmem>>, vector<1x32xf32>
    %cst_48 = arith.constant dense<0.000000e+00> : vector<16xf32>
    %121 = vector.multi_reduction <add>, %118, %cst_48 [1] : vector<16x32xf32> to vector<16xf32>
    %122 = vector.shape_cast %121 : vector<16xf32> to vector<16x1xf32>
    %cst_49 = arith.constant 3.200000e+01 : f32
    %123 = vector.broadcast %cst_49 : f32 to vector<16x1xf32>
    %124 = arith.divf %122, %123 : vector<16x1xf32>
    %125 = arith.mulf %118, %118 : vector<16x32xf32>
    %cst_50 = arith.constant dense<0.000000e+00> : vector<16xf32>
    %126 = vector.multi_reduction <add>, %125, %cst_50 [1] : vector<16x32xf32> to vector<16xf32>
    %127 = vector.shape_cast %126 : vector<16xf32> to vector<16x1xf32>
    %cst_51 = arith.constant 3.200000e+01 : f32
    %128 = vector.broadcast %cst_51 : f32 to vector<16x1xf32>
    %129 = arith.divf %127, %128 : vector<16x1xf32>
    %130 = arith.mulf %124, %124 : vector<16x1xf32>
    %131 = arith.subf %129, %130 : vector<16x1xf32>
    %132 = vector.broadcast %124 : vector<16x1xf32> to vector<16x32xf32>
    %133 = arith.subf %118, %132 : vector<16x32xf32>
    %cst_52 = arith.constant 9.99999974E-6 : f32
    %134 = vector.broadcast %cst_52 : f32 to vector<16x1xf32>
    %135 = arith.addf %131, %134 : vector<16x1xf32>
    %136 = math.rsqrt %135 : vector<16x1xf32>
    %137 = vector.broadcast %136 : vector<16x1xf32> to vector<16x32xf32>
    %138 = arith.mulf %133, %137 : vector<16x32xf32>
    %139 = vector.broadcast %119 : vector<1x32xf32> to vector<16x32xf32>
    %140 = arith.mulf %138, %139 : vector<16x32xf32>
    %141 = vector.broadcast %120 : vector<1x32xf32> to vector<16x32xf32>
    %142 = arith.addf %140, %141 : vector<16x32xf32>
    %c0_53 = arith.constant 0 : index
    %c0_54 = arith.constant 0 : index
    %c0_55 = arith.constant 0 : index
    %143 = vector.load %arg2[%c0_53, %c0_54, %c0_55] : memref<2x16x32xf32, #tpu.memory_space<vmem>>, vector<2x16x32xf32>
    %144 = vector.shape_cast %143 : vector<2x16x32xf32> to vector<32x32xf32>
    %c0_56 = arith.constant 0 : index
    %c0_57 = arith.constant 0 : index
    %c0_58 = arith.constant 0 : index
    %145 = vector.load %arg5[%c0_56, %c0_57, %c0_58] : memref<2x16x32xf32, #tpu.memory_space<vmem>>, vector<2x16x32xf32>
    %146 = vector.shape_cast %145 : vector<2x16x32xf32> to vector<32x32xf32>
    %c0_59 = arith.constant 0 : index
    %c0_60 = arith.constant 0 : index
    %c0_61 = arith.constant 0 : index
    %147 = vector.load %arg3[%c0_59, %c0_60, %c0_61] : memref<2x16x32xf32, #tpu.memory_space<vmem>>, vector<2x16x32xf32>
    %148 = vector.shape_cast %147 : vector<2x16x32xf32> to vector<32x32xf32>
    %c0_62 = arith.constant 0 : index
    %c0_63 = arith.constant 0 : index
    %c0_64 = arith.constant 0 : index
    %149 = vector.load %arg6[%c0_62, %c0_63, %c0_64] : memref<2x1x16xf32, #tpu.memory_space<vmem>>, vector<2x1x16xf32>
    %150 = arith.addf %142, %3 : vector<16x32xf32>
    %151 = arith.addf %144, %146 : vector<32x32xf32>
    %152 = arith.truncf %150 : vector<16x32xf32> to vector<16x32xbf16>
    %c0_65 = arith.constant 0 : index
    %c0_66 = arith.constant 0 : index
    %153 = vector.load %arg17[%c0_65, %c0_66] : memref<32x32xbf16, #tpu.memory_space<vmem>>, vector<32x32xbf16>
    %cst_67 = arith.constant dense<0.000000e+00> : vector<16x32xf32>
    %154 = tpu.matmul %152, %153, %cst_67 {dimension_numbers = #tpu.dot_dimension_numbers<[1], [0], [0], [1], [0, 0, 1, 1], [], []>} : vector<16x32xbf16>, vector<32x32xbf16>, vector<16x32xf32> -> vector<16x32xf32>
    %c0_68 = arith.constant 0 : index
    %c0_69 = arith.constant 0 : index
    %155 = vector.load %arg18[%c0_68, %c0_69] : memref<1x32xf32, #tpu.memory_space<vmem>>, vector<1x32xf32>
    %156 = vector.broadcast %155 : vector<1x32xf32> to vector<16x32xf32>
    %157 = arith.addf %154, %156 : vector<16x32xf32>
    %158 = arith.truncf %151 : vector<32x32xf32> to vector<32x32xbf16>
    %c0_70 = arith.constant 0 : index
    %c0_71 = arith.constant 0 : index
    %159 = vector.load %arg19[%c0_70, %c0_71] : memref<32x32xbf16, #tpu.memory_space<vmem>>, vector<32x32xbf16>
    %cst_72 = arith.constant dense<0.000000e+00> : vector<32x32xf32>
    %160 = tpu.matmul %158, %159, %cst_72 {dimension_numbers = #tpu.dot_dimension_numbers<[1], [0], [0], [1], [0, 0, 1, 1], [], []>} : vector<32x32xbf16>, vector<32x32xbf16>, vector<32x32xf32> -> vector<32x32xf32>
    %c0_73 = arith.constant 0 : index
    %c0_74 = arith.constant 0 : index
    %161 = vector.load %arg20[%c0_73, %c0_74] : memref<1x32xf32, #tpu.memory_space<vmem>>, vector<1x32xf32>
    %162 = vector.broadcast %161 : vector<1x32xf32> to vector<32x32xf32>
    %163 = arith.addf %160, %162 : vector<32x32xf32>
    %164 = arith.truncf %148 : vector<32x32xf32> to vector<32x32xbf16>
    %c0_75 = arith.constant 0 : index
    %c0_76 = arith.constant 0 : index
    %165 = vector.load %arg21[%c0_75, %c0_76] : memref<32x32xbf16, #tpu.memory_space<vmem>>, vector<32x32xbf16>
    %cst_77 = arith.constant dense<0.000000e+00> : vector<32x32xf32>
    %166 = tpu.matmul %164, %165, %cst_77 {dimension_numbers = #tpu.dot_dimension_numbers<[1], [0], [0], [1], [0, 0, 1, 1], [], []>} : vector<32x32xbf16>, vector<32x32xbf16>, vector<32x32xf32> -> vector<32x32xf32>
    %c0_78 = arith.constant 0 : index
    %c0_79 = arith.constant 0 : index
    %167 = vector.load %arg22[%c0_78, %c0_79] : memref<1x32xf32, #tpu.memory_space<vmem>>, vector<1x32xf32>
    %168 = vector.broadcast %167 : vector<1x32xf32> to vector<32x32xf32>
    %169 = arith.addf %166, %168 : vector<32x32xf32>
    %170 = arith.truncf %157 : vector<16x32xf32> to vector<16x32xbf16>
    %171 = vector.shape_cast %170 : vector<16x32xbf16> to vector<2x8x32xbf16>
    %172 = arith.truncf %163 : vector<32x32xf32> to vector<32x32xbf16>
    %173 = vector.shape_cast %172 : vector<32x32xbf16> to vector<2x16x32xbf16>
    %174 = arith.truncf %169 : vector<32x32xf32> to vector<32x32xbf16>
    %175 = vector.shape_cast %174 : vector<32x32xbf16> to vector<2x16x32xbf16>
    %c0_80 = arith.constant 0 : index
    %c0_81 = arith.constant 0 : index
    %176 = vector.load %arg23[%c0_80, %c0_81] : memref<32x32xbf16, #tpu.memory_space<vmem>>, vector<32x32xbf16>
    %cst_82 = arith.constant 0.000000e+00 : f32
    %177 = vector.broadcast %cst_82 : f32 to vector<16x32xf32>
    %178 = vector.extract_strided_slice %171 {offsets = [0, 0, 0], sizes = [2, 8, 8], strides = [1, 1, 1]} : vector<2x8x32xbf16> to vector<2x8x8xbf16>
    %179 = vector.extract_strided_slice %173 {offsets = [0, 0, 0], sizes = [2, 16, 8], strides = [1, 1, 1]} : vector<2x16x32xbf16> to vector<2x16x8xbf16>
    %180 = vector.extract_strided_slice %175 {offsets = [0, 0, 0], sizes = [2, 16, 8], strides = [1, 1, 1]} : vector<2x16x32xbf16> to vector<2x16x8xbf16>
    "tpu.trace_start"() <{level = 10 : i32, message = "bqd,bkd->bqk"}> : () -> ()
    %cst_83 = arith.constant dense<0.000000e+00> : vector<2x8x16xf32>
    %181 = tpu.matmul %178, %179, %cst_83 {dimension_numbers = #tpu.dot_dimension_numbers<[2], [2], [1], [1], [0, 0, 0, 1, 1, 1], [0], [0]>} : vector<2x8x8xbf16>, vector<2x16x8xbf16>, vector<2x8x16xf32> -> vector<2x8x16xf32>
    "tpu.trace_stop"() : () -> ()
    %182 = vector.broadcast %149 : vector<2x1x16xf32> to vector<2x8x16xf32>
    %183 = arith.addf %181, %182 : vector<2x8x16xf32>
    %cst_84 = arith.constant dense<0xFF800000> : vector<2x8xf32>
    %184 = vector.multi_reduction <maximumf>, %183, %cst_84 [2] : vector<2x8x16xf32> to vector<2x8xf32>
    %185 = vector.shape_cast %184 : vector<2x8xf32> to vector<2x8x1xf32>
    %186 = vector.broadcast %185 : vector<2x8x1xf32> to vector<2x8x16xf32>
    %187 = arith.subf %183, %186 : vector<2x8x16xf32>
    %188 = math.exp %187 : vector<2x8x16xf32>
    %cst_85 = arith.constant dense<0.000000e+00> : vector<2x8xf32>
    %189 = vector.multi_reduction <add>, %188, %cst_85 [2] : vector<2x8x16xf32> to vector<2x8xf32>
    %190 = vector.shape_cast %189 : vector<2x8xf32> to vector<2x8x1xf32>
    %191 = tpu.reciprocal %190 {approx = true} : vector<2x8x1xf32> -> vector<2x8x1xf32>
    %192 = vector.broadcast %191 : vector<2x8x1xf32> to vector<2x8x16xf32>
    %193 = arith.mulf %188, %192 : vector<2x8x16xf32>
    %194 = arith.truncf %193 : vector<2x8x16xf32> to vector<2x8x16xbf16>
    "tpu.trace_start"() <{level = 10 : i32, message = "bqk,bkd->bqd"}> : () -> ()
    %cst_86 = arith.constant dense<0.000000e+00> : vector<2x8x8xf32>
    %195 = tpu.matmul %194, %180, %cst_86 {dimension_numbers = #tpu.dot_dimension_numbers<[2], [1], [1], [2], [0, 0, 0, 1, 1, 2], [0], [0]>} : vector<2x8x16xbf16>, vector<2x16x8xbf16>, vector<2x8x8xf32> -> vector<2x8x8xf32>
    "tpu.trace_stop"() : () -> ()
    %196 = vector.shape_cast %195 : vector<2x8x8xf32> to vector<16x8xf32>
    %197 = arith.truncf %196 : vector<16x8xf32> to vector<16x8xbf16>
    %198 = vector.extract_strided_slice %176 {offsets = [0, 0], sizes = [8, 32], strides = [1, 1]} : vector<32x32xbf16> to vector<8x32xbf16>
    %cst_87 = arith.constant dense<0.000000e+00> : vector<16x32xf32>
    %199 = tpu.matmul %197, %198, %cst_87 {dimension_numbers = #tpu.dot_dimension_numbers<[1], [0], [0], [1], [0, 0, 1, 1], [], []>} : vector<16x8xbf16>, vector<8x32xbf16>, vector<16x32xf32> -> vector<16x32xf32>
    %200 = arith.addf %177, %199 : vector<16x32xf32>
    %201 = vector.extract_strided_slice %171 {offsets = [0, 0, 8], sizes = [2, 8, 8], strides = [1, 1, 1]} : vector<2x8x32xbf16> to vector<2x8x8xbf16>
    %202 = vector.extract_strided_slice %173 {offsets = [0, 0, 8], sizes = [2, 16, 8], strides = [1, 1, 1]} : vector<2x16x32xbf16> to vector<2x16x8xbf16>
    %203 = vector.extract_strided_slice %175 {offsets = [0, 0, 8], sizes = [2, 16, 8], strides = [1, 1, 1]} : vector<2x16x32xbf16> to vector<2x16x8xbf16>
    "tpu.trace_start"() <{level = 10 : i32, message = "bqd,bkd->bqk"}> : () -> ()
    %cst_88 = arith.constant dense<0.000000e+00> : vector<2x8x16xf32>
    %204 = tpu.matmul %201, %202, %cst_88 {dimension_numbers = #tpu.dot_dimension_numbers<[2], [2], [1], [1], [0, 0, 0, 1, 1, 1], [0], [0]>} : vector<2x8x8xbf16>, vector<2x16x8xbf16>, vector<2x8x16xf32> -> vector<2x8x16xf32>
    "tpu.trace_stop"() : () -> ()
    %205 = vector.broadcast %149 : vector<2x1x16xf32> to vector<2x8x16xf32>
    %206 = arith.addf %204, %205 : vector<2x8x16xf32>
    %cst_89 = arith.constant dense<0xFF800000> : vector<2x8xf32>
    %207 = vector.multi_reduction <maximumf>, %206, %cst_89 [2] : vector<2x8x16xf32> to vector<2x8xf32>
    %208 = vector.shape_cast %207 : vector<2x8xf32> to vector<2x8x1xf32>
    %209 = vector.broadcast %208 : vector<2x8x1xf32> to vector<2x8x16xf32>
    %210 = arith.subf %206, %209 : vector<2x8x16xf32>
    %211 = math.exp %210 : vector<2x8x16xf32>
    %cst_90 = arith.constant dense<0.000000e+00> : vector<2x8xf32>
    %212 = vector.multi_reduction <add>, %211, %cst_90 [2] : vector<2x8x16xf32> to vector<2x8xf32>
    %213 = vector.shape_cast %212 : vector<2x8xf32> to vector<2x8x1xf32>
    %214 = tpu.reciprocal %213 {approx = true} : vector<2x8x1xf32> -> vector<2x8x1xf32>
    %215 = vector.broadcast %214 : vector<2x8x1xf32> to vector<2x8x16xf32>
    %216 = arith.mulf %211, %215 : vector<2x8x16xf32>
    %217 = arith.truncf %216 : vector<2x8x16xf32> to vector<2x8x16xbf16>
    "tpu.trace_start"() <{level = 10 : i32, message = "bqk,bkd->bqd"}> : () -> ()
    %cst_91 = arith.constant dense<0.000000e+00> : vector<2x8x8xf32>
    %218 = tpu.matmul %217, %203, %cst_91 {dimension_numbers = #tpu.dot_dimension_numbers<[2], [1], [1], [2], [0, 0, 0, 1, 1, 2], [0], [0]>} : vector<2x8x16xbf16>, vector<2x16x8xbf16>, vector<2x8x8xf32> -> vector<2x8x8xf32>
    "tpu.trace_stop"() : () -> ()
    %219 = vector.shape_cast %218 : vector<2x8x8xf32> to vector<16x8xf32>
    %220 = arith.truncf %219 : vector<16x8xf32> to vector<16x8xbf16>
    %221 = vector.extract_strided_slice %176 {offsets = [8, 0], sizes = [8, 32], strides = [1, 1]} : vector<32x32xbf16> to vector<8x32xbf16>
    %cst_92 = arith.constant dense<0.000000e+00> : vector<16x32xf32>
    %222 = tpu.matmul %220, %221, %cst_92 {dimension_numbers = #tpu.dot_dimension_numbers<[1], [0], [0], [1], [0, 0, 1, 1], [], []>} : vector<16x8xbf16>, vector<8x32xbf16>, vector<16x32xf32> -> vector<16x32xf32>
    %223 = arith.addf %200, %222 : vector<16x32xf32>
    %224 = vector.extract_strided_slice %171 {offsets = [0, 0, 16], sizes = [2, 8, 8], strides = [1, 1, 1]} : vector<2x8x32xbf16> to vector<2x8x8xbf16>
    %225 = vector.extract_strided_slice %173 {offsets = [0, 0, 16], sizes = [2, 16, 8], strides = [1, 1, 1]} : vector<2x16x32xbf16> to vector<2x16x8xbf16>
    %226 = vector.extract_strided_slice %175 {offsets = [0, 0, 16], sizes = [2, 16, 8], strides = [1, 1, 1]} : vector<2x16x32xbf16> to vector<2x16x8xbf16>
    "tpu.trace_start"() <{level = 10 : i32, message = "bqd,bkd->bqk"}> : () -> ()
    %cst_93 = arith.constant dense<0.000000e+00> : vector<2x8x16xf32>
    %227 = tpu.matmul %224, %225, %cst_93 {dimension_numbers = #tpu.dot_dimension_numbers<[2], [2], [1], [1], [0, 0, 0, 1, 1, 1], [0], [0]>} : vector<2x8x8xbf16>, vector<2x16x8xbf16>, vector<2x8x16xf32> -> vector<2x8x16xf32>
    "tpu.trace_stop"() : () -> ()
    %228 = vector.broadcast %149 : vector<2x1x16xf32> to vector<2x8x16xf32>
    %229 = arith.addf %227, %228 : vector<2x8x16xf32>
    %cst_94 = arith.constant dense<0xFF800000> : vector<2x8xf32>
    %230 = vector.multi_reduction <maximumf>, %229, %cst_94 [2] : vector<2x8x16xf32> to vector<2x8xf32>
    %231 = vector.shape_cast %230 : vector<2x8xf32> to vector<2x8x1xf32>
    %232 = vector.broadcast %231 : vector<2x8x1xf32> to vector<2x8x16xf32>
    %233 = arith.subf %229, %232 : vector<2x8x16xf32>
    %234 = math.exp %233 : vector<2x8x16xf32>
    %cst_95 = arith.constant dense<0.000000e+00> : vector<2x8xf32>
    %235 = vector.multi_reduction <add>, %234, %cst_95 [2] : vector<2x8x16xf32> to vector<2x8xf32>
    %236 = vector.shape_cast %235 : vector<2x8xf32> to vector<2x8x1xf32>
    %237 = tpu.reciprocal %236 {approx = true} : vector<2x8x1xf32> -> vector<2x8x1xf32>
    %238 = vector.broadcast %237 : vector<2x8x1xf32> to vector<2x8x16xf32>
    %239 = arith.mulf %234, %238 : vector<2x8x16xf32>
    %240 = arith.truncf %239 : vector<2x8x16xf32> to vector<2x8x16xbf16>
    "tpu.trace_start"() <{level = 10 : i32, message = "bqk,bkd->bqd"}> : () -> ()
    %cst_96 = arith.constant dense<0.000000e+00> : vector<2x8x8xf32>
    %241 = tpu.matmul %240, %226, %cst_96 {dimension_numbers = #tpu.dot_dimension_numbers<[2], [1], [1], [2], [0, 0, 0, 1, 1, 2], [0], [0]>} : vector<2x8x16xbf16>, vector<2x16x8xbf16>, vector<2x8x8xf32> -> vector<2x8x8xf32>
    "tpu.trace_stop"() : () -> ()
    %242 = vector.shape_cast %241 : vector<2x8x8xf32> to vector<16x8xf32>
    %243 = arith.truncf %242 : vector<16x8xf32> to vector<16x8xbf16>
    %244 = vector.extract_strided_slice %176 {offsets = [16, 0], sizes = [8, 32], strides = [1, 1]} : vector<32x32xbf16> to vector<8x32xbf16>
    %cst_97 = arith.constant dense<0.000000e+00> : vector<16x32xf32>
    %245 = tpu.matmul %243, %244, %cst_97 {dimension_numbers = #tpu.dot_dimension_numbers<[1], [0], [0], [1], [0, 0, 1, 1], [], []>} : vector<16x8xbf16>, vector<8x32xbf16>, vector<16x32xf32> -> vector<16x32xf32>
    %246 = arith.addf %223, %245 : vector<16x32xf32>
    %247 = vector.extract_strided_slice %171 {offsets = [0, 0, 24], sizes = [2, 8, 8], strides = [1, 1, 1]} : vector<2x8x32xbf16> to vector<2x8x8xbf16>
    %248 = vector.extract_strided_slice %173 {offsets = [0, 0, 24], sizes = [2, 16, 8], strides = [1, 1, 1]} : vector<2x16x32xbf16> to vector<2x16x8xbf16>
    %249 = vector.extract_strided_slice %175 {offsets = [0, 0, 24], sizes = [2, 16, 8], strides = [1, 1, 1]} : vector<2x16x32xbf16> to vector<2x16x8xbf16>
    "tpu.trace_start"() <{level = 10 : i32, message = "bqd,bkd->bqk"}> : () -> ()
    %cst_98 = arith.constant dense<0.000000e+00> : vector<2x8x16xf32>
    %250 = tpu.matmul %247, %248, %cst_98 {dimension_numbers = #tpu.dot_dimension_numbers<[2], [2], [1], [1], [0, 0, 0, 1, 1, 1], [0], [0]>} : vector<2x8x8xbf16>, vector<2x16x8xbf16>, vector<2x8x16xf32> -> vector<2x8x16xf32>
    "tpu.trace_stop"() : () -> ()
    %251 = vector.broadcast %149 : vector<2x1x16xf32> to vector<2x8x16xf32>
    %252 = arith.addf %250, %251 : vector<2x8x16xf32>
    %cst_99 = arith.constant dense<0xFF800000> : vector<2x8xf32>
    %253 = vector.multi_reduction <maximumf>, %252, %cst_99 [2] : vector<2x8x16xf32> to vector<2x8xf32>
    %254 = vector.shape_cast %253 : vector<2x8xf32> to vector<2x8x1xf32>
    %255 = vector.broadcast %254 : vector<2x8x1xf32> to vector<2x8x16xf32>
    %256 = arith.subf %252, %255 : vector<2x8x16xf32>
    %257 = math.exp %256 : vector<2x8x16xf32>
    %cst_100 = arith.constant dense<0.000000e+00> : vector<2x8xf32>
    %258 = vector.multi_reduction <add>, %257, %cst_100 [2] : vector<2x8x16xf32> to vector<2x8xf32>
    %259 = vector.shape_cast %258 : vector<2x8xf32> to vector<2x8x1xf32>
    %260 = tpu.reciprocal %259 {approx = true} : vector<2x8x1xf32> -> vector<2x8x1xf32>
    %261 = vector.broadcast %260 : vector<2x8x1xf32> to vector<2x8x16xf32>
    %262 = arith.mulf %257, %261 : vector<2x8x16xf32>
    %263 = arith.truncf %262 : vector<2x8x16xf32> to vector<2x8x16xbf16>
    "tpu.trace_start"() <{level = 10 : i32, message = "bqk,bkd->bqd"}> : () -> ()
    %cst_101 = arith.constant dense<0.000000e+00> : vector<2x8x8xf32>
    %264 = tpu.matmul %263, %249, %cst_101 {dimension_numbers = #tpu.dot_dimension_numbers<[2], [1], [1], [2], [0, 0, 0, 1, 1, 2], [0], [0]>} : vector<2x8x16xbf16>, vector<2x16x8xbf16>, vector<2x8x8xf32> -> vector<2x8x8xf32>
    "tpu.trace_stop"() : () -> ()
    %265 = vector.shape_cast %264 : vector<2x8x8xf32> to vector<16x8xf32>
    %266 = arith.truncf %265 : vector<16x8xf32> to vector<16x8xbf16>
    %267 = vector.extract_strided_slice %176 {offsets = [24, 0], sizes = [8, 32], strides = [1, 1]} : vector<32x32xbf16> to vector<8x32xbf16>
    %cst_102 = arith.constant dense<0.000000e+00> : vector<16x32xf32>
    %268 = tpu.matmul %266, %267, %cst_102 {dimension_numbers = #tpu.dot_dimension_numbers<[1], [0], [0], [1], [0, 0, 1, 1], [], []>} : vector<16x8xbf16>, vector<8x32xbf16>, vector<16x32xf32> -> vector<16x32xf32>
    %269 = arith.addf %246, %268 : vector<16x32xf32>
    %c0_103 = arith.constant 0 : index
    %c0_104 = arith.constant 0 : index
    %270 = vector.load %arg24[%c0_103, %c0_104] : memref<1x32xf32, #tpu.memory_space<vmem>>, vector<1x32xf32>
    %271 = vector.broadcast %270 : vector<1x32xf32> to vector<16x32xf32>
    %272 = arith.addf %269, %271 : vector<16x32xf32>
    %273 = arith.addf %142, %272 : vector<16x32xf32>
    %c0_105 = arith.constant 0 : index
    %c0_106 = arith.constant 0 : index
    %274 = vector.load %arg25[%c0_105, %c0_106] : memref<1x32xf32, #tpu.memory_space<vmem>>, vector<1x32xf32>
    %c0_107 = arith.constant 0 : index
    %c0_108 = arith.constant 0 : index
    %275 = vector.load %arg26[%c0_107, %c0_108] : memref<1x32xf32, #tpu.memory_space<vmem>>, vector<1x32xf32>
    %cst_109 = arith.constant dense<0.000000e+00> : vector<16xf32>
    %276 = vector.multi_reduction <add>, %273, %cst_109 [1] : vector<16x32xf32> to vector<16xf32>
    %277 = vector.shape_cast %276 : vector<16xf32> to vector<16x1xf32>
    %cst_110 = arith.constant 3.200000e+01 : f32
    %278 = vector.broadcast %cst_110 : f32 to vector<16x1xf32>
    %279 = arith.divf %277, %278 : vector<16x1xf32>
    %280 = arith.mulf %273, %273 : vector<16x32xf32>
    %cst_111 = arith.constant dense<0.000000e+00> : vector<16xf32>
    %281 = vector.multi_reduction <add>, %280, %cst_111 [1] : vector<16x32xf32> to vector<16xf32>
    %282 = vector.shape_cast %281 : vector<16xf32> to vector<16x1xf32>
    %cst_112 = arith.constant 3.200000e+01 : f32
    %283 = vector.broadcast %cst_112 : f32 to vector<16x1xf32>
    %284 = arith.divf %282, %283 : vector<16x1xf32>
    %285 = arith.mulf %279, %279 : vector<16x1xf32>
    %286 = arith.subf %284, %285 : vector<16x1xf32>
    %287 = vector.broadcast %279 : vector<16x1xf32> to vector<16x32xf32>
    %288 = arith.subf %273, %287 : vector<16x32xf32>
    %cst_113 = arith.constant 9.99999974E-6 : f32
    %289 = vector.broadcast %cst_113 : f32 to vector<16x1xf32>
    %290 = arith.addf %286, %289 : vector<16x1xf32>
    %291 = math.rsqrt %290 : vector<16x1xf32>
    %292 = vector.broadcast %291 : vector<16x1xf32> to vector<16x32xf32>
    %293 = arith.mulf %288, %292 : vector<16x32xf32>
    %294 = vector.broadcast %274 : vector<1x32xf32> to vector<16x32xf32>
    %295 = arith.mulf %293, %294 : vector<16x32xf32>
    %296 = vector.broadcast %275 : vector<1x32xf32> to vector<16x32xf32>
    %297 = arith.addf %295, %296 : vector<16x32xf32>
    %298 = arith.truncf %297 : vector<16x32xf32> to vector<16x32xbf16>
    %c0_114 = arith.constant 0 : index
    %c0_115 = arith.constant 0 : index
    %299 = vector.load %arg27[%c0_114, %c0_115] : memref<32x64xbf16, #tpu.memory_space<vmem>>, vector<32x64xbf16>
    %cst_116 = arith.constant dense<0.000000e+00> : vector<16x64xf32>
    %300 = tpu.matmul %298, %299, %cst_116 {dimension_numbers = #tpu.dot_dimension_numbers<[1], [0], [0], [1], [0, 0, 1, 1], [], []>} : vector<16x32xbf16>, vector<32x64xbf16>, vector<16x64xf32> -> vector<16x64xf32>
    %c0_117 = arith.constant 0 : index
    %c0_118 = arith.constant 0 : index
    %301 = vector.load %arg28[%c0_117, %c0_118] : memref<1x64xf32, #tpu.memory_space<vmem>>, vector<1x64xf32>
    %302 = vector.broadcast %301 : vector<1x64xf32> to vector<16x64xf32>
    %303 = arith.addf %300, %302 : vector<16x64xf32>
    %cst_119 = arith.constant 0.000000e+00 : f32
    %304 = vector.broadcast %cst_119 : f32 to vector<16x64xf32>
    %305 = arith.maximumf %303, %304 : vector<16x64xf32>
    %306 = arith.truncf %305 : vector<16x64xf32> to vector<16x64xbf16>
    %c0_120 = arith.constant 0 : index
    %c0_121 = arith.constant 0 : index
    %307 = vector.load %arg29[%c0_120, %c0_121] : memref<64x32xbf16, #tpu.memory_space<vmem>>, vector<64x32xbf16>
    %cst_122 = arith.constant dense<0.000000e+00> : vector<16x32xf32>
    %308 = tpu.matmul %306, %307, %cst_122 {dimension_numbers = #tpu.dot_dimension_numbers<[1], [0], [0], [1], [0, 0, 1, 1], [], []>} : vector<16x64xbf16>, vector<64x32xbf16>, vector<16x32xf32> -> vector<16x32xf32>
    %c0_123 = arith.constant 0 : index
    %c0_124 = arith.constant 0 : index
    %309 = vector.load %arg30[%c0_123, %c0_124] : memref<1x32xf32, #tpu.memory_space<vmem>>, vector<1x32xf32>
    %310 = vector.broadcast %309 : vector<1x32xf32> to vector<16x32xf32>
    %311 = arith.addf %308, %310 : vector<16x32xf32>
    %312 = arith.addf %297, %311 : vector<16x32xf32>
    %c0_125 = arith.constant 0 : index
    %c0_126 = arith.constant 0 : index
    %313 = vector.load %arg31[%c0_125, %c0_126] : memref<1x32xf32, #tpu.memory_space<vmem>>, vector<1x32xf32>
    %c0_127 = arith.constant 0 : index
    %c0_128 = arith.constant 0 : index
    %314 = vector.load %arg32[%c0_127, %c0_128] : memref<1x32xf32, #tpu.memory_space<vmem>>, vector<1x32xf32>
    %cst_129 = arith.constant dense<0.000000e+00> : vector<16xf32>
    %315 = vector.multi_reduction <add>, %312, %cst_129 [1] : vector<16x32xf32> to vector<16xf32>
    %316 = vector.shape_cast %315 : vector<16xf32> to vector<16x1xf32>
    %cst_130 = arith.constant 3.200000e+01 : f32
    %317 = vector.broadcast %cst_130 : f32 to vector<16x1xf32>
    %318 = arith.divf %316, %317 : vector<16x1xf32>
    %319 = arith.mulf %312, %312 : vector<16x32xf32>
    %cst_131 = arith.constant dense<0.000000e+00> : vector<16xf32>
    %320 = vector.multi_reduction <add>, %319, %cst_131 [1] : vector<16x32xf32> to vector<16xf32>
    %321 = vector.shape_cast %320 : vector<16xf32> to vector<16x1xf32>
    %cst_132 = arith.constant 3.200000e+01 : f32
    %322 = vector.broadcast %cst_132 : f32 to vector<16x1xf32>
    %323 = arith.divf %321, %322 : vector<16x1xf32>
    %324 = arith.mulf %318, %318 : vector<16x1xf32>
    %325 = arith.subf %323, %324 : vector<16x1xf32>
    %326 = vector.broadcast %318 : vector<16x1xf32> to vector<16x32xf32>
    %327 = arith.subf %312, %326 : vector<16x32xf32>
    %cst_133 = arith.constant 9.99999974E-6 : f32
    %328 = vector.broadcast %cst_133 : f32 to vector<16x1xf32>
    %329 = arith.addf %325, %328 : vector<16x1xf32>
    %330 = math.rsqrt %329 : vector<16x1xf32>
    %331 = vector.broadcast %330 : vector<16x1xf32> to vector<16x32xf32>
    %332 = arith.mulf %327, %331 : vector<16x32xf32>
    %333 = vector.broadcast %313 : vector<1x32xf32> to vector<16x32xf32>
    %334 = arith.mulf %332, %333 : vector<16x32xf32>
    %335 = vector.broadcast %314 : vector<1x32xf32> to vector<16x32xf32>
    %336 = arith.addf %334, %335 : vector<16x32xf32>
    %337 = vector.shape_cast %336 : vector<16x32xf32> to vector<2x8x32xf32>
    %c0_134 = arith.constant 0 : index
    %c0_135 = arith.constant 0 : index
    %c0_136 = arith.constant 0 : index
    %338 = vector.load %arg33[%c0_134, %c0_135, %c0_136] : memref<2x8x32xf32, #tpu.memory_space<vmem>>, vector<2x8x32xf32>
    tpu.vector_store %arg33[%c0_134, %c0_135, %c0_136], %337 {strides = array<i32>} : memref<2x8x32xf32, #tpu.memory_space<vmem>>, vector<2x8x32xf32>,
    return
  }
  func.func @transform_0(%arg0: i32) -> (i32, i32, i32) {
    %c0_i32 = arith.constant 0 : i32
    %c0_i32_0 = arith.constant 0 : i32
    %c0_i32_1 = arith.constant 0 : i32
    return %arg0, %c0_i32, %c0_i32_0 : i32, i32, i32
  }
  func.func @transform_1(%arg0: i32) -> (i32, i32, i32) {
    %c0_i32 = arith.constant 0 : i32
    %c0_i32_0 = arith.constant 0 : i32
    %c0_i32_1 = arith.constant 0 : i32
    return %arg0, %c0_i32, %c0_i32_0 : i32, i32, i32
  }
  func.func @transform_2(%arg0: i32) -> (i32, i32, i32) {
    %c0_i32 = arith.constant 0 : i32
    %c0_i32_0 = arith.constant 0 : i32
    %c0_i32_1 = arith.constant 0 : i32
    return %arg0, %c0_i32, %c0_i32_0 : i32, i32, i32
  }
  func.func @transform_3(%arg0: i32) -> (i32, i32, i32) {
    %c0_i32 = arith.constant 0 : i32
    %c0_i32_0 = arith.constant 0 : i32
    %c0_i32_1 = arith.constant 0 : i32
    return %arg0, %c0_i32, %c0_i32_0 : i32, i32, i32
  }
  func.func @transform_4(%arg0: i32) -> (i32, i32, i32) {
    %c0_i32 = arith.constant 0 : i32
    %c0_i32_0 = arith.constant 0 : i32
    %c0_i32_1 = arith.constant 0 : i32
    return %arg0, %c0_i32, %c0_i32_0 : i32, i32, i32
  }
  func.func @transform_5(%arg0: i32) -> (i32, i32, i32) {
    %c0_i32 = arith.constant 0 : i32
    %c0_i32_0 = arith.constant 0 : i32
    %c0_i32_1 = arith.constant 0 : i32
    return %arg0, %c0_i32, %c0_i32_0 : i32, i32, i32
  }
  func.func @transform_6(%arg0: i32) -> (i32, i32) {
    %c0_i32 = arith.constant 0 : i32
    %c0_i32_0 = arith.constant 0 : i32
    %c0_i32_1 = arith.constant 0 : i32
    return %c0_i32, %c0_i32_0 : i32, i32
  }
  func.func @transform_7(%arg0: i32) -> (i32, i32) {
    %c0_i32 = arith.constant 0 : i32
    %c0_i32_0 = arith.constant 0 : i32
    %c0_i32_1 = arith.constant 0 : i32
    return %c0_i32, %c0_i32_0 : i32, i32
  }
  func.func @transform_8(%arg0: i32) -> (i32, i32) {
    %c0_i32 = arith.constant 0 : i32
    %c0_i32_0 = arith.constant 0 : i32
    %c0_i32_1 = arith.constant 0 : i32
    return %c0_i32, %c0_i32_0 : i32, i32
  }
  func.func @transform_9(%arg0: i32) -> (i32, i32) {
    %c0_i32 = arith.constant 0 : i32
    %c0_i32_0 = arith.constant 0 : i32
    %c0_i32_1 = arith.constant 0 : i32
    return %c0_i32, %c0_i32_0 : i32, i32
  }
  func.func @transform_10(%arg0: i32) -> (i32, i32) {
    %c0_i32 = arith.constant 0 : i32
    %c0_i32_0 = arith.constant 0 : i32
    %c0_i32_1 = arith.constant 0 : i32
    return %c0_i32, %c0_i32_0 : i32, i32
  }
  func.func @transform_11(%arg0: i32) -> (i32, i32) {
    %c0_i32 = arith.constant 0 : i32
    %c0_i32_0 = arith.constant 0 : i32
    %c0_i32_1 = arith.constant 0 : i32
    return %c0_i32, %c0_i32_0 : i32, i32
  }
  func.func @transform_12(%arg0: i32) -> (i32, i32) {
    %c0_i32 = arith.constant 0 : i32
    %c0_i32_0 = arith.constant 0 : i32
    %c0_i32_1 = arith.constant 0 : i32
    return %c0_i32, %c0_i32_0 : i32, i32
  }
  func.func @transform_13(%arg0: i32) -> (i32, i32) {
    %c0_i32 = arith.constant 0 : i32
    %c0_i32_0 = arith.constant 0 : i32
    %c0_i32_1 = arith.constant 0 : i32
    return %c0_i32, %c0_i32_0 : i32, i32
  }
  func.func @transform_14(%arg0: i32) -> (i32, i32) {
    %c0_i32 = arith.constant 0 : i32
    %c0_i32_0 = arith.constant 0 : i32
    %c0_i32_1 = arith.constant 0 : i32
    return %c0_i32, %c0_i32_0 : i32, i32
  }
  func.func @transform_15(%arg0: i32) -> (i32, i32) {
    %c0_i32 = arith.constant 0 : i32
    %c0_i32_0 = arith.constant 0 : i32
    %c0_i32_1 = arith.constant 0 : i32
    return %c0_i32, %c0_i32_0 : i32, i32
  }
  func.func @transform_16(%arg0: i32) -> (i32, i32) {
    %c0_i32 = arith.constant 0 : i32
    %c0_i32_0 = arith.constant 0 : i32
    %c0_i32_1 = arith.constant 0 : i32
    return %c0_i32, %c0_i32_0 : i32, i32
  }
  func.func @transform_17(%arg0: i32) -> (i32, i32) {
    %c0_i32 = arith.constant 0 : i32
    %c0_i32_0 = arith.constant 0 : i32
    %c0_i32_1 = arith.constant 0 : i32
    return %c0_i32, %c0_i32_0 : i32, i32
  }
  func.func @transform_18(%arg0: i32) -> (i32, i32) {
    %c0_i32 = arith.constant 0 : i32
    %c0_i32_0 = arith.constant 0 : i32
    %c0_i32_1 = arith.constant 0 : i32
    return %c0_i32, %c0_i32_0 : i32, i32
  }
  func.func @transform_19(%arg0: i32) -> (i32, i32) {
    %c0_i32 = arith.constant 0 : i32
    %c0_i32_0 = arith.constant 0 : i32
    %c0_i32_1 = arith.constant 0 : i32
    return %c0_i32, %c0_i32_0 : i32, i32
  }
  func.func @transform_20(%arg0: i32) -> (i32, i32) {
    %c0_i32 = arith.constant 0 : i32
    %c0_i32_0 = arith.constant 0 : i32
    %c0_i32_1 = arith.constant 0 : i32
    return %c0_i32, %c0_i32_0 : i32, i32
  }
  func.func @transform_21(%arg0: i32) -> (i32, i32) {
    %c0_i32 = arith.constant 0 : i32
    %c0_i32_0 = arith.constant 0 : i32
    %c0_i32_1 = arith.constant 0 : i32
    return %c0_i32, %c0_i32_0 : i32, i32
  }
  func.func @transform_22(%arg0: i32) -> (i32, i32) {
    %c0_i32 = arith.constant 0 : i32
    %c0_i32_0 = arith.constant 0 : i32
    %c0_i32_1 = arith.constant 0 : i32
    return %c0_i32, %c0_i32_0 : i32, i32
  }
  func.func @transform_23(%arg0: i32) -> (i32, i32) {
    %c0_i32 = arith.constant 0 : i32
    %c0_i32_0 = arith.constant 0 : i32
    %c0_i32_1 = arith.constant 0 : i32
    return %c0_i32, %c0_i32_0 : i32, i32
  }
  func.func @transform_24(%arg0: i32) -> (i32, i32) {
    %c0_i32 = arith.constant 0 : i32
    %c0_i32_0 = arith.constant 0 : i32
    %c0_i32_1 = arith.constant 0 : i32
    return %c0_i32, %c0_i32_0 : i32, i32
  }
  func.func @transform_25(%arg0: i32) -> (i32, i32) {
    %c0_i32 = arith.constant 0 : i32
    %c0_i32_0 = arith.constant 0 : i32
    %c0_i32_1 = arith.constant 0 : i32
    return %c0_i32, %c0_i32_0 : i32, i32
  }
  func.func @transform_26(%arg0: i32) -> (i32, i32) {
    %c0_i32 = arith.constant 0 : i32
    %c0_i32_0 = arith.constant 0 : i32
    %c0_i32_1 = arith.constant 0 : i32
    return %c0_i32, %c0_i32_0 : i32, i32
  }
  func.func @transform_27(%arg0: i32) -> (i32, i32) {
    %c0_i32 = arith.constant 0 : i32
    %c0_i32_0 = arith.constant 0 : i32
    %c0_i32_1 = arith.constant 0 : i32
    return %c0_i32, %c0_i32_0 : i32, i32
  }
  func.func @transform_28(%arg0: i32) -> (i32, i32) {
    %c0_i32 = arith.constant 0 : i32
    %c0_i32_0 = arith.constant 0 : i32
    %c0_i32_1 = arith.constant 0 : i32
    return %c0_i32, %c0_i32_0 : i32, i32
  }
  func.func @transform_29(%arg0: i32) -> (i32, i32) {
    %c0_i32 = arith.constant 0 : i32
    %c0_i32_0 = arith.constant 0 : i32
    %c0_i32_1 = arith.constant 0 : i32
    return %c0_i32, %c0_i32_0 : i32, i32
  }
  func.func @transform_30(%arg0: i32) -> (i32, i32) {
    %c0_i32 = arith.constant 0 : i32
    %c0_i32_0 = arith.constant 0 : i32
    %c0_i32_1 = arith.constant 0 : i32
    return %c0_i32, %c0_i32_0 : i32, i32
  }
  func.func @transform_31(%arg0: i32) -> (i32, i32) {
    %c0_i32 = arith.constant 0 : i32
    %c0_i32_0 = arith.constant 0 : i32
    %c0_i32_1 = arith.constant 0 : i32
    return %c0_i32, %c0_i32_0 : i32, i32
  }
  func.func @transform_32(%arg0: i32) -> (i32, i32, i32) {
    %c0_i32 = arith.constant 0 : i32
    %c0_i32_0 = arith.constant 0 : i32
    %c0_i32_1 = arith.constant 0 : i32
    return %arg0, %c0_i32, %c0_i32_0 : i32, i32, i32
  }
}

</mosaic_0001>

<bundles_post_ra>
// kernel: tpu_custom_call.1
= control target key start
LH: loop header
LB: loop body
LE: loop exit
PB: predicated region body
PF: predicated region fallthrough
CT: control target
= control target key end

     0   :  { %s6189_s6 = smov 1   ;;  %s6190_s10 = smov 2   ;;  %s7443_s0 = inlined_call_operand.smem [shape: u32[33], index: -1, kind: input, shape index: {}] }
   0x1   :  { %s6261_s5 = sld [smem:[%s7443_s0]]   ;;  %s6191_s14 = smov 3  }
   0x2   :  { %s6266_s9 = sld [smem:[%s7443_s0 + %s6189_s6]]   ;;  %s6192_s18 = smov 4  }
   0x3   :  { %s6271_s13 = sld [smem:[%s7443_s0 + %s6190_s10]]   ;;  %s6193_s22 = smov 5  }
   0x4   :  { %s6276_s17 = sld [smem:[%s7443_s0 + %s6191_s14]]   ;;  %s6194_s26 = smov 6  }
   0x5   :  { %s6281_s21 = sld [smem:[%s7443_s0 + %s6192_s18]]   ;;  %s6195_s30 = smov 7  }
   0x6   :  { %s6286_s25 = sld [smem:[%s7443_s0 + %s6193_s22]]   ;;  %s6196_s4 = smov 8  }
   0x7   :  { %7494 = sst [smem:[#allocation43_spill]] %s6261_s5  ;;  %s6197_s10 = smov 9  }
   0x8   :  { %7495 = sst [smem:[#allocation44_spill]] %s6266_s9  ;;  %s6198_s15 = smov 10  }
   0x9   :  { %7496 = sst [smem:[#allocation45_spill]] %s6271_s13  ;;  %s6199_s20 = smov 11  }
   0xa   :  { %7497 = sst [smem:[#allocation46_spill]] %s6276_s17  ;;  %s6201_s1 = smov 13  }
   0xb   :  { %s6291_s29 = sld [smem:[%s7443_s0 + %s6194_s26]]   ;;  %s6200_s26 = smov 12  }
   0xc   :  { %7498 = sst [smem:[#allocation47_spill]] %s6286_s25  ;;  %s6202_s7 = smov 14  }
   0xd   :  { %s6296_s3 = sld [smem:[%s7443_s0 + %s6195_s30]]   ;;  %s6204_s22 = smov 16  }
   0xe   :  { %s6301_s8 = sld [smem:[%s7443_s0 + %s6196_s4]]   ;;  %s6205_s28 = smov 17  }
   0xf   :  { %s6306_s14 = sld [smem:[%s7443_s0 + %s6197_s10]]  }
  0x10   :  { %s6311_s19 = sld [smem:[%s7443_s0 + %s6198_s15]]   ;;  %s6203_s15 = smov 15  }
  0x11   :  { %7499 = sst [smem:[#allocation48_spill]] %s6291_s29 }
  0x12   :  { %s6316_s24 = sld [smem:[%s7443_s0 + %s6199_s20]]  }
  0x13   :  { %7500 = sst [smem:[#allocation49_spill]] %s6296_s3 }
  0x14   :  { %7501 = sst [smem:[#allocation50_spill]] %s6301_s8 }
  0x15   :  { %7502 = sst [smem:[#allocation51_spill]] %s6306_s14 }
  0x16   :  { %7503 = sst [smem:[#allocation52_spill]] %s6311_s19 }
  0x17   :  { %s6321_s30 = sld [smem:[%s7443_s0 + %s6200_s26]]  }
  0x18   :  { %s6326_s6 = sld [smem:[%s7443_s0 + %s6201_s1]]  }
  0x19   :  { %s6331_s12 = sld [smem:[%s7443_s0 + %s6202_s7]]   ;;  %s6206_s7 = smov 18  }
  0x1a   :  { %s6336_s20 = sld [smem:[%s7443_s0 + %s6203_s15]]   ;;  %s6207_s15 = smov 19  }
  0x1b   :  { %s6341_s27 = sld [smem:[%s7443_s0 + %s6204_s22]]   ;;  %s6208_s22 = smov 20  }
  0x1c   :  { %s6346_s4 = sld [smem:[%s7443_s0 + %s6205_s28]]   ;;  %s6209_s28 = smov 21  }
  0x1d   :  { %7504 = sst [smem:[#allocation53_spill]] %s6321_s30 }
  0x1e   :  { %7505 = sst [smem:[#allocation54_spill]] %s6326_s6 }
  0x1f   :  { %7506 = sst [smem:[#allocation55_spill]] %s6331_s12 }
  0x20   :  { %s6351_s19 = sld [smem:[%s7443_s0 + %s6206_s7]]   ;;  %s6210_s7 = smov 22  }
  0x21   :  { %7507 = sst [smem:[#allocation56_spill]] %s6341_s27 }
  0x22   :  { %7508 = sst [smem:[#allocation57_spill]] %s6346_s4 }
  0x23   :  { %s6356_s29 = sld [smem:[%s7443_s0 + %s6207_s15]]   ;;  %s6211_s15 = smov 23  }
  0x24   :  { %s6361_s27 = sld [smem:[%s7443_s0 + %s6208_s22]]   ;;  %s6212_s22 = smov 24  }
  0x25   :  { %s6366_s5 = sld [smem:[%s7443_s0 + %s6209_s28]]   ;;  %s6213_s28 = smov 25  }
  0x26   :  { %7509 = sst [smem:[#allocation58_spill]] %s6351_s19 }
  0x27   :  { %s6371_s19 = sld [smem:[%s7443_s0 + %s6210_s7]]   ;;  %s6214_s7 = smov 26  }
  0x28   :  { %s6381_s25 = sld [smem:[%s7443_s0 + %s6212_s22]]   ;;  %s6216_s22 = smov 28  }
  0x29   :  { %7510 = sst [smem:[#allocation59_spill]] %s6356_s29 }
  0x2a   :  { %s6376_s29 = sld [smem:[%s7443_s0 + %s6211_s15]]   ;;  %s6215_s15 = smov 27  }
  0x2b   :  { %7511 = sst [smem:[#allocation60_spill]] %s6366_s5 }
  0x2c   :  { %s6386_s5 = sld [smem:[%s7443_s0 + %s6213_s28]]   ;;  %s6217_s28 = smov 29  }
  0x2d   :  { %7512 = sst [smem:[#allocation61_spill]] %s6371_s19 }
  0x2e   :  { %s6391_s19 = sld [smem:[%s7443_s0 + %s6214_s7]]   ;;  %s6218_s7 = smov 30  }
  0x2f   :  { %s6396_s17 = sld [smem:[%s7443_s0 + %s6215_s15]]   ;;  %s6219_s15 = smov 31  }
  0x30   :  { %7513 = sst [smem:[#allocation62_spill]] %s6376_s29 }
  0x31   :  { %s6401_s9 = sld [smem:[%s7443_s0 + %s6216_s22]]   ;;  %s6220_s22 = smov 32  }
  0x32   :  { %7514 = sst [smem:[#allocation63_spill]] %s6386_s5 }
  0x33   :  { %s6406_s5 = sld [smem:[%s7443_s0 + %s6217_s28]]  }
  0x34   :  { %7515 = sst [smem:[#allocation64_spill]] %s6391_s19 }
  0x35   :  { %7516 = sst [smem:[#allocation65_spill]] %s6396_s17 }
  0x36   :  { %s6411_s19 = sld [smem:[%s7443_s0 + %s6218_s7]]  }
  0x37   :  { %7517 = sst [smem:[#allocation66_spill]] %s6401_s9 }
  0x38   :  { %s6416_s17 = sld [smem:[%s7443_s0 + %s6219_s15]]  }
  0x39   :  { %7518 = sst [smem:[#allocation67_spill]] %s6406_s5 }
  0x3a   :  { %s6421_s9 = sld [smem:[%s7443_s0 + %s6220_s22]]  }
  0x3c   :  { %7519 = sst [smem:[#allocation68_spill]] %s6411_s19 }
  0x3e   :  { %7520 = sst [smem:[#allocation69_spill]] %s6416_s17 }
  0x40   :  { %7521 = sst [smem:[#allocation70_spill]] %s6421_s9 }
  0x41   :  { %70 = vsyncpa [#allocation3], 0 }
  0x42   :  { %72 = vsyncpa [#allocation3 + $0x1], 0 }
  0x43   :  { %73 = vsyncpa [#allocation6], 0 }
  0x44   :  { %75 = vsyncpa [#allocation6 + $0x1], 0 }
  0x45   :  { %76 = vsyncpa [#allocation9], 0 }
  0x46   :  { %78 = vsyncpa [#allocation9 + $0x1], 0 }
  0x47   :  { %79 = vsyncpa [#allocation12], 0 }
  0x48   :  { %80 = vsyncpa [#allocation15], 0 }
  0x49   :  { %81 = vsyncpa [#allocation18], 0 }
  0x4a   :  { %82 = vsyncpa [#allocation21], 0 }
  0x4b   :  { %83 = vsyncpa [#allocation24], 0 }
  0x4c   :  { %84 = vsyncpa [#allocation27], 0 }
  0x4d   :  { %85 = vsyncpa [#allocation30], 0 }
  0x4e   :  { %86 = vsyncpa [#allocation4], 0 }
  0x4f   :  { %88 = vsyncpa [#allocation4 + $0x1], 0  ;;  %s6423_s28 = smov 0   ;;  %s6425_s1 = smov 0  }
  0x50   :  { %s6427_s0 = smov 0   ;;  %s6429_s2 = smov 0  }
  0x51 LB: > { %s7522_s8 = sld [smem:[#allocation50_spill]]  ;;  %s7523_s6 = sld [smem:[#allocation54_spill]]  ;;  %s6175_s28 = sphi %s6423_s28, %s7600_s28   ;;  %s6187_s2 = sphi %s6429_s2, %s7597_s2   ;;  %s6183_s0 = sphi %s6427_s0, %s7599_s0   ;;  %s6179_s1 = sphi %s6425_s1, %s7601_s1  }
  0x52   : > { %s7524_s13 = sld [smem:[#allocation45_spill]]  ;;  %s7526_s29 = sld [smem:[#allocation62_spill]] }
  0x53   : > { %s7525_s30 = sld [smem:[#allocation53_spill]]  ;;  %s7527_s12 = sld [smem:[#allocation55_spill]] }
  0x54   : > { %s7528_s4 = sld [smem:[#allocation57_spill]]  ;;  %s7529_s14 = sld [smem:[#allocation51_spill]] }
  0x55   : > { %s7530_s3 = sld [smem:[#allocation49_spill]]  ;;  %7531 = sst [smem:[#allocation71_spill]] %s6175_s28 }
  0x56   : > { %7532 = sst [smem:[#allocation72_spill]] %s6183_s0  ;;  %s6221_s7 = smov [#allocation11]  }
  0x57   : > { %s843_s10 = sshll.u32 %s6221_s7, 4  ;;  %s6444_s11 = sadd.s32 4294967295, %s6187_s2   ;;  %s6449_s10 = int_to_ptr.vmem [resolvable:$true] %s843_s10 }
  0x58   : > { %p4648_p0 = scmp.ge.s32.totalorder %s6187_s2, 1  ;;  %p7456_p1 = scmp.eq.s32.totalorder %s6444_s11, 0 }
  0x59   : > { %p827_p2 = scmp.lt.s32.totalorder %s6187_s2, 3  ;;  %s6222_s16 = smov [#allocation14]  }
  0x5a   : > { %s867_s18 = sshll.u32 %s6222_s16, 4  ;;  %s6223_s23 = smov [#allocation17]   ;;  %s6458_s18 = int_to_ptr.vmem [resolvable:$true] %s867_s18 }
  0x5b   : > { %p6451_p3 = pnand %p4648_p0, %p827_p2  ;;  %s891_s26 = sshll.u32 %s6223_s23, 4  ;;  %s6466_s26 = int_to_ptr.vmem [resolvable:$true] %s891_s26 }
  0x5c   : > { %s5571_s7 = scalar_lea.hbm %s7530_s3, 16 }
  0x5d   : > { %s7533_s15 = scalar_select %p6451_p3, 1, 0 }
  0x5e   : > { %p5299_p5 = pneg %p6451_p3  ;;  %p5572_p7 = scmp.ne.s32.totalorder %s7530_s3, %s5571_s7 }
  0x5f   : > { %p5578_p11 = scmp.lt.u32.totalorder %s5571_s7, %s7530_s3 }
  0x60   : > { %p6462_p6 = pnand %p5299_p5, %p7456_p1 }
  0x62   : > { %s7534_s22 = scalar_select %p6462_p6, 1, 0 }
  0x63   : > { %p6472_p8 = pneg %p6462_p6 }
  0x65   : > { %s7535_s9 = scalar_select %p6472_p8, 1, 0 }
  0x66   : > { %p5574_p9 = pnand %p6472_p8, %p5572_p7 }
  0x68   : > { %p5575_p10 = pneg %p5574_p9 }
  0x6a   : > { %p5580_p12 = pnand %p5578_p11, %p5575_p10 }
  0x6c   : > { %5583 = shalt.err (!%p5580_p12)
}
  0x6d   : > { %s5584_s16 = scalar_lea.vmem %s6449_s10, 16  ;;  %s5591_s23 = scalar_lea.vmem %s6449_s10, 32 }
  0x6e   : > { %p5585_p13 = scmp.ne.s32.totalorder %s6449_s10, %s5584_s16  ;;  %p5592_p5 = scmp.lt.s32.totalorder %s6449_s10, %s6449_s10 }
  0x6f   : > { %p5593_p4 = scmp.lt.s32.totalorder %s5591_s23, %s5584_s16 }
  0x70   : > { %p5587_p0 = pnand %p5585_p13, %p6472_p8 }
  0x71   : > { %p5594_p1 = por %p5593_p4, %p5592_p5 }
  0x72   : > { %p5588_p2 = pneg %p5587_p0 }
  0x74   : > { %p5595_p7 = pnand %p5594_p1, %p5588_p2 }
  0x76   : > { %5598 = shalt.err (!%p5595_p7)
}
  0x77   : > { %5302 = dma.hbm_to_vmem [thread:$0]  (!%p6462_p6), %s7530_s3, 16, %s6449_s10, [#allocation12]  }
  0x78   : > { %s5599_s7 = scalar_lea.hbm %s7529_s14, 16 }
  0x79   : > { %p5600_p9 = scmp.ne.s32.totalorder %s7529_s14, %s5599_s7  ;;  %p5606_p12 = scmp.lt.u32.totalorder %s5599_s7, %s7529_s14 }
  0x7b   : > { %p5602_p10 = pnand %p5600_p9, %p6472_p8 }
  0x7d   : > { %p5603_p11 = pneg %p5602_p10 }
  0x7f   : > { %p5608_p13 = pnand %p5606_p12, %p5603_p11 }
  0x81   : > { %5611 = shalt.err (!%p5608_p13)
}
  0x82   : > { %s5612_s16 = scalar_lea.vmem %s6458_s18, 16  ;;  %s5619_s23 = scalar_lea.vmem %s6458_s18, 32 }
  0x83   : > { %p5613_p1 = scmp.ne.s32.totalorder %s6458_s18, %s5612_s16  ;;  %p5620_p2 = scmp.lt.s32.totalorder %s6458_s18, %s6458_s18 }
  0x84   : > { %p5621_p5 = scmp.lt.s32.totalorder %s5619_s23, %s5612_s16 }
  0x85   : > { %p5615_p4 = pnand %p5613_p1, %p6472_p8 }
  0x86   : > { %p5622_p7 = por %p5621_p5, %p5620_p2 }
  0x87   : > { %p5616_p0 = pneg %p5615_p4 }
  0x89   : > { %p5623_p9 = pnand %p5622_p7, %p5616_p0 }
  0x8b   : > { %5626 = shalt.err (!%p5623_p9)
}
  0x8c   : > { %5308 = dma.hbm_to_vmem [thread:$0]  (!%p6462_p6), %s7529_s14, 16, %s6458_s18, [#allocation15]  }
  0x8d   : > { %s5627_s10 = scalar_lea.hbm %s7525_s30, 256 }
  0x8e   : > { %p5628_p10 = scmp.ne.s32.totalorder %s7525_s30, %s5627_s10  ;;  %p5634_p13 = scmp.lt.u32.totalorder %s5627_s10, %s7525_s30 }
  0x90   : > { %p5630_p11 = pnand %p5628_p10, %p6472_p8 }
  0x92   : > { %p5631_p12 = pneg %p5630_p11 }
  0x94   : > { %p5636_p1 = pnand %p5634_p13, %p5631_p12 }
  0x96   : > { %5639 = shalt.err (!%p5636_p1)
}
  0x97   : > { %s5640_s7 = scalar_lea.vmem %s6466_s26, 256  ;;  %p5648_p5 = scmp.lt.s32.totalorder %s6466_s26, %s6466_s26 }
  0x98   : > { %p5641_p4 = scmp.ne.s32.totalorder %s6466_s26, %s5640_s7  ;;  %p5649_p7 = scmp.lt.s32.totalorder %s5640_s7, %s5640_s7 }
  0x9a   : > { %p5643_p0 = pnand %p5641_p4, %p6472_p8  ;;  %p5650_p9 = por %p5649_p7, %p5648_p5 }
  0x9c   : > { %p5644_p2 = pneg %p5643_p0 }
  0x9e   : > { %p5651_p3 = pnand %p5650_p9, %p5644_p2 }
  0xa0   : > { %5654 = shalt.err (!%p5651_p3)
}
  0xa1   : > { %s7460_s18 = smov 64   ;;  %s7462_s16 = smov 4  }
  0xa2   : > { %5314 = dma.hbm_to_vmem [thread:$0]  (!%p6462_p6), %s7525_s30, 256, %s6466_s26, [#allocation18], %s7460_s18, %s7460_s18, %s7462_s16  }
  0xa3   : > { %s6226_s23 = smov [#allocation20]   ;;  %s6227_s7 = smov [#allocation23]  }
  0xa4   : > { %s916_s10 = sshll.u32 %s6226_s23, 4  ;;  %s941_s3 = sshll.u32 %s6227_s7, 4  ;;  %s917_s10 = int_to_ptr.vmem [resolvable:$true] %s916_s10  ;;  %s942_s3 = int_to_ptr.vmem [resolvable:$true] %s941_s3 }
  0xa5   : > { %s5655_s14 = scalar_lea.hbm %s7527_s12, 16 }
  0xa6   : > { %p5656_p3 = scmp.ne.s32.totalorder %s7527_s12, %s5655_s14  ;;  %p5662_p12 = scmp.lt.u32.totalorder %s5655_s14, %s7527_s12 }
  0xa8   : > { %p5658_p10 = pnand %p5656_p3, %p6472_p8 }
  0xaa   : > { %p5659_p11 = pneg %p5658_p10 }
  0xac   : > { %p5664_p13 = pnand %p5662_p12, %p5659_p11 }
  0xae   : > { %5667 = shalt.err (!%p5664_p13)
}
  0xaf   : > { %s5668_s17 = scalar_lea.vmem %s917_s10, 16  ;;  %s5675_s26 = scalar_lea.vmem %s917_s10, 32 }
  0xb0   : > { %p5669_p1 = scmp.ne.s32.totalorder %s917_s10, %s5668_s17  ;;  %p5676_p2 = scmp.lt.s32.totalorder %s917_s10, %s917_s10 }
  0xb1   : > { %p5677_p5 = scmp.lt.s32.totalorder %s5675_s26, %s5668_s17 }
  0xb2   : > { %p5671_p4 = pnand %p5669_p1, %p6472_p8 }
  0xb3   : > { %p5678_p7 = por %p5677_p5, %p5676_p2 }
  0xb4   : > { %p5672_p0 = pneg %p5671_p4 }
  0xb6   : > { %p5679_p9 = pnand %p5678_p7, %p5672_p0 }
  0xb8   : > { %5682 = shalt.err (!%p5679_p9)
}
  0xb9   : > { %5320 = dma.hbm_to_vmem [thread:$0]  (!%p6462_p6), %s7527_s12, 16, %s917_s10, [#allocation21]  }
  0xba   : > { %s5683_s14 = scalar_lea.hbm %s7528_s4, 16 }
  0xbb   : > { %p5684_p3 = scmp.ne.s32.totalorder %s7528_s4, %s5683_s14  ;;  %p5690_p12 = scmp.lt.u32.totalorder %s5683_s14, %s7528_s4 }
  0xbd   : > { %p5686_p10 = pnand %p5684_p3, %p6472_p8 }
  0xbf   : > { %p5687_p11 = pneg %p5686_p10 }
  0xc1   : > { %p5692_p13 = pnand %p5690_p12, %p5687_p11 }
  0xc3   : > { %5695 = shalt.err (!%p5692_p13)
}
  0xc4   : > { %s5696_s17 = scalar_lea.vmem %s942_s3, 16  ;;  %s5703_s23 = scalar_lea.vmem %s942_s3, 32 }
  0xc5   : > { %p5697_p1 = scmp.ne.s32.totalorder %s942_s3, %s5696_s17  ;;  %p5704_p2 = scmp.lt.s32.totalorder %s942_s3, %s942_s3 }
  0xc6   : > { %p5705_p5 = scmp.lt.s32.totalorder %s5703_s23, %s5696_s17 }
  0xc7   : > { %p5699_p4 = pnand %p5697_p1, %p6472_p8 }
  0xc8   : > { %p5706_p7 = por %p5705_p5, %p5704_p2 }
  0xc9   : > { %p5700_p0 = pneg %p5699_p4 }
  0xcb   : > { %p5707_p9 = pnand %p5706_p7, %p5700_p0 }
  0xcd   : > { %5710 = shalt.err (!%p5707_p9)
}
  0xce   : > { %5326 = dma.hbm_to_vmem [thread:$0]  (!%p6462_p6), %s7528_s4, 16, %s942_s3, [#allocation24]  }
  0xcf   : > { %s6228_s10 = smov [#allocation26]   ;;  %s5711_s26 = scalar_lea.hbm %s7526_s29, 16 }
  0xd0   : > { %s977_s7 = sshll.u32 %s6228_s10, 4  ;;  %p5712_p3 = scmp.ne.s32.totalorder %s7526_s29, %s5711_s26  ;;  %s978_s7 = int_to_ptr.vmem [resolvable:$true] %s977_s7 }
  0xd1   : > { %p5718_p12 = scmp.lt.u32.totalorder %s5711_s26, %s7526_s29 }
  0xd2   : > { %p5714_p10 = pnand %p5712_p3, %p6472_p8 }
  0xd4   : > { %p5715_p11 = pneg %p5714_p10 }
  0xd6   : > { %p5720_p13 = pnand %p5718_p12, %p5715_p11 }
  0xd8   : > { %5723 = shalt.err (!%p5720_p13)
}
  0xd9   : > { %s5724_s14 = scalar_lea.vmem %s978_s7, 16  ;;  %s5731_s17 = scalar_lea.vmem %s978_s7, 32 }
  0xda   : > { %p5725_p1 = scmp.ne.s32.totalorder %s978_s7, %s5724_s14  ;;  %p5732_p2 = scmp.lt.s32.totalorder %s978_s7, %s978_s7 }
  0xdb   : > { %p5733_p5 = scmp.lt.s32.totalorder %s5731_s17, %s5724_s14 }
  0xdc   : > { %p5727_p4 = pnand %p5725_p1, %p6472_p8 }
  0xdd   : > { %p5734_p7 = por %p5733_p5, %p5732_p2 }
  0xde   : > { %p5728_p0 = pneg %p5727_p4 }
  0xe0   : > { %p5735_p9 = pnand %p5734_p7, %p5728_p0 }
  0xe2   : > { %5738 = shalt.err (!%p5735_p9)
}
  0xe3   : > { %5332 = dma.hbm_to_vmem [thread:$0]  (!%p6462_p6), %s7526_s29, 16, %s978_s7, [#allocation27]  }
  0xe4   : > { %s4647_s3 = sadd.s32 4294967294, %s6187_s2   ;;  %s6556_s23 = sadd.s32 1, %s6187_s2  }
  0xe5   : > { %7536 = sst [smem:[#allocation73_spill]] %s6556_s23  ;;  %s124_s10 = ssub.s32 %s6187_s2, %s6556_s23 }
  0xe6   : > { %s127_s26 = sadd.s32 1, %s6183_s0  ;;  %p125_p3 = scmp.eq.s32.totalorder %s124_s10, 0 }
  0xe7   : > { %p134_p10 = scmp.ne.s32.totalorder %s6183_s0, %s6179_s1  ;;  %p135_p11 = scmp.eq.s32.totalorder %s6187_s2, 0 }
  0xe8   : > { %p140_p12 = scmp.ne.s32.totalorder %s6179_s1, %s6175_s28  ;;  %p7538_p1 = scmp.eq.s32.totalorder %s6444_s11, 0 }
  0xe9   : > { %s6567_s14 = scalar_select %p125_p3, %s6183_s0, %s127_s26  }
  0xea   : > { %p136_p13 = por %p135_p11, %p134_p10  ;;  %p6571_p4 = por %p7538_p1, %p140_p12 }
  0xeb   : > { %7537 = sst [smem:[#allocation74_spill]] %s6567_s14  ;;  %p814_p0 = scmp.eq.s32.totalorder %s6444_s11, 1 }
  0xec   : > { %s7539_s7 = scalar_select %p6571_p4, 1, 0 }
  0xed   : > { %p820_p2 = scmp.eq.s32.totalorder %s4647_s3, 1  ;;  %p5372_p5 = scmp.lt.s32.totalorder %s6187_s2, 2 }
  0xee   : > { %s6578_s17 = sand.u32 1, %s6183_s0   ;;  %p6580_p7 = por %p814_p0, %p134_p10 }
  0xef   : > { %p6584_p9 = por %p820_p2, %p140_p12  ;;  %s6589_s18 = sshll.u32 %s6578_s17, 5 }
  0xf0   : > { %s7540_s10 = scalar_select %p6580_p7, 1, 0 }
  0xf1   : > { %s7542_s26 = scalar_select %p6584_p9, 1, 0 }
  0xf2   : > { %7541 = sst [smem:[#allocation75_spill]] %s7540_s10  ;;  %s6592_s16 = sshll.u32 %s6187_s2, 9 }
  0xf3   : > { %7543 = sst [smem:[#allocation76_spill]] %s7542_s26  ;;  %p6594_p3 = pnand %p5372_p5, %p136_p13 }
  0xf4   : > { %s7478_s4 = sand.u32 1, %s6187_s2   ;;  %s6601_s12 = scalar_lea.hbm %s7524_s13, %s6592_s16 }
  0xf5   : > { %s7544_s3 = scalar_select %p6594_p3, 1, 0 }
  0xf6   : > { %s1063_s29 = scalar_lea.vmem [#allocation5], %s6589_s18  ;;  %s6608_s14 = scalar_lea.sflag [#allocation6], %s7478_s4 }
  0xf7   : > { %s1071_s30 = sshll.u32 %s1063_s29, 4  ;;  %s5739_s0 = scalar_lea.hbm %s6601_s12, 512  ;;  %s6604_s30 = int_to_ptr.vmem [resolvable:$true] %s1071_s30 }
  0xf8   : > { %p5740_p10 = scmp.ne.s32.totalorder %s6601_s12, %s5739_s0  ;;  %p6614_p11 = pneg %p6594_p3 }
  0xf9   : > { %s5744_s26 = scalar_lea.hbm %s7524_s13, 1024  ;;  %p5745_p1 = scmp.lt.u32.totalorder %s6601_s12, %s7524_s13 }
  0xfa   : > { %s7545_s23 = scalar_select %p6614_p11, 1, 0 }
  0xfb   : > { %p5742_p12 = pnand %p6614_p11, %p5740_p10  ;;  %p5746_p0 = scmp.lt.u32.totalorder %s5744_s26, %s5739_s0 }
  0xfc   : > { %p5748_p5 = scmp.lt.u32.totalorder %s5739_s0, %s6601_s12 }
  0xfd   : > { %p5743_p13 = pneg %p5742_p12  ;;  %p5747_p2 = por %p5746_p0, %p5745_p1 }
  0xff   : > { %p5749_p9 = por %p5748_p5, %p5747_p2 }
 0x101   : > { %p5750_p7 = pnand %p5749_p9, %p5743_p13 }
 0x103   : > { %5753 = shalt.err (!%p5750_p7)
}
 0x104   : > { %s5754_s29 = scalar_lea.vmem %s6604_s30, 512  ;;  %s6229_s4 = smov [#allocation5]  }
 0x105   : > { %p5755_p4 = scmp.ne.s32.totalorder %s6604_s30, %s5754_s29  ;;  %s5759_s28 = sshll.u32 %s6229_s4, 4  ;;  %s5760_s28 = int_to_ptr.vmem [resolvable:$false] %s5759_s28 }
 0x106   : > { %s5761_s10 = scalar_lea.vmem %s5760_s28, 1024  ;;  %p5762_p10 = scmp.lt.s32.totalorder %s6604_s30, %s5760_s28 }
 0x107   : > { %p5757_p6 = pnand %p5755_p4, %p6614_p11  ;;  %p5763_p12 = scmp.lt.s32.totalorder %s5761_s10, %s5754_s29 }
 0x109   : > { %p5758_p8 = pneg %p5757_p6  ;;  %p5764_p1 = por %p5763_p12, %p5762_p10 }
 0x10b   : > { %p5765_p0 = pnand %p5764_p1, %p5758_p8 }
 0x10d   : > { %5768 = shalt.err (!%p5765_p0)
}
 0x10e   : > { %s7487_s0 = smov 128   ;;  %s7489_s4 = smov 8  }
 0x10f   : > { %5345 = dma.hbm_to_vmem [thread:$0]  (!%p6594_p3), %s6601_s12, 512, %s6604_s30, %s6608_s14, %s7487_s0, %s7487_s0, %s7489_s4  }
 0x110   : > { %s6639_s28 = scalar_lea.hbm %s6281_s21, %s6592_s16  ;;  %s1106_s10 = scalar_lea.vmem [#allocation8], %s6589_s18 }
 0x111   : > { %s1114_s26 = sshll.u32 %s1106_s10, 4  ;;  %s7546_s29 = sand.u32 1, %s6187_s2   ;;  %s6642_s26 = int_to_ptr.vmem [resolvable:$true] %s1114_s26 }
 0x112   : > { %s6646_s13 = scalar_lea.sflag [#allocation9], %s7546_s29  ;;  %s5769_s19 = scalar_lea.hbm %s6639_s28, 512 }
 0x113   : > { %p5770_p6 = scmp.ne.s32.totalorder %s6639_s28, %s5769_s19  ;;  %s5774_s5 = scalar_lea.hbm %s6281_s21, 1024 }
 0x114   : > { %p5775_p7 = scmp.lt.u32.totalorder %s6639_s28, %s6281_s21  ;;  %p5776_p9 = scmp.lt.u32.totalorder %s5774_s5, %s5769_s19 }
 0x115   : > { %p5772_p8 = pnand %p5770_p6, %p6614_p11  ;;  %p5778_p2 = scmp.lt.u32.totalorder %s5769_s19, %s6639_s28 }
 0x116   : > { %p5777_p13 = por %p5776_p9, %p5775_p7 }
 0x117   : > { %p5773_p4 = pneg %p5772_p8 }
 0x118   : > { %p5779_p5 = por %p5778_p2, %p5777_p13 }
 0x11a   : > { %p5780_p10 = pnand %p5779_p5, %p5773_p4 }
 0x11c   : > { %5783 = shalt.err (!%p5780_p10)
}
 0x11d   : > { %s5784_s30 = scalar_lea.vmem %s6642_s26, 512  ;;  %s6232_s12 = smov [#allocation8]  }
 0x11e   : > { %p5785_p12 = scmp.ne.s32.totalorder %s6642_s26, %s5784_s30  ;;  %s5789_s10 = sshll.u32 %s6232_s12, 4  ;;  %s5790_s10 = int_to_ptr.vmem [resolvable:$false] %s5789_s10 }
 0x11f   : > { %s5791_s29 = scalar_lea.vmem %s5790_s10, 1024  ;;  %p5792_p6 = scmp.lt.s32.totalorder %s6642_s26, %s5790_s10 }
 0x120   : > { %p5787_p1 = pnand %p5785_p12, %p6614_p11  ;;  %p5793_p8 = scmp.lt.s32.totalorder %s5791_s29, %s5784_s30 }
 0x122   : > { %p5788_p0 = pneg %p5787_p1  ;;  %p5794_p7 = por %p5793_p8, %p5792_p6 }
 0x124   : > { %p5795_p9 = pnand %p5794_p7, %p5788_p0 }
 0x126   : > { %5798 = shalt.err (!%p5795_p9)
}
 0x127   : > { %5351 = dma.hbm_to_vmem [thread:$0]  (!%p6594_p3), %s6639_s28, 512, %s6642_s26, %s6646_s13, %s7487_s0, %s7487_s0, %s7489_s4  }
 0x128   : > { %s6233_s5 = smov [#allocation13]   ;;  %s6234_s30 = smov [#allocation16]  }
 0x129   : > { %s853_s19 = sshll.u32 %s6233_s5, 4  ;;  %s881_s12 = sshll.u32 %s6234_s30, 4  ;;  %s854_s19 = int_to_ptr.vmem [resolvable:$true] %s853_s19  ;;  %s882_s12 = int_to_ptr.vmem [resolvable:$true] %s881_s12 }
 0x12a   : > { %s5799_s10 = scalar_lea.hbm %s7522_s8, 256  ;;  %p7547_p13 = scmp.ne.s32.totalorder %s7535_s9, 0 }
 0x12b   : > { %p5800_p4 = scmp.ne.s32.totalorder %s7522_s8, %s5799_s10  ;;  %p5806_p10 = scmp.lt.u32.totalorder %s5799_s10, %s7522_s8 }
 0x12d   : > { %p5802_p2 = pnand %p5800_p4, %p7547_p13 }
 0x12f   : > { %p5803_p5 = pneg %p5802_p2 }
 0x131   : > { %p5808_p12 = pnand %p5806_p10, %p5803_p5 }
 0x133   : > { %5811 = shalt.err (!%p5808_p12)
}
 0x134   : > { %s5812_s29 = scalar_lea.vmem %s854_s19, 256  ;;  %p5820_p8 = scmp.lt.s32.totalorder %s854_s19, %s854_s19 }
 0x135   : > { %p5813_p1 = scmp.ne.s32.totalorder %s854_s19, %s5812_s29  ;;  %p5821_p7 = scmp.lt.s32.totalorder %s5812_s29, %s5812_s29 }
 0x137   : > { %p5815_p0 = pnand %p5813_p1, %p7547_p13  ;;  %p5822_p9 = por %p5821_p7, %p5820_p8 }
 0x139   : > { %p5816_p6 = pneg %p5815_p0 }
 0x13b   : > { %p5823_p3 = pnand %p5822_p9, %p5816_p6 }
 0x13d   : > { %5826 = shalt.err (!%p5823_p3)
}
 0x13e   : > { %p7548_p11 = scmp.ne.s32.totalorder %s7534_s22, 0  ;;  %s7549_s28 = smov 4  }
 0x13f   : > { %s7550_s26 = smov 64   ;;  %s5827_s5 = scalar_lea.hbm %s6316_s24, 16 }
 0x140   : > { %5305 = dma.hbm_to_vmem [thread:$0]  (!%p7548_p11), %s7522_s8, 256, %s854_s19, [#allocation12], %s7550_s26, %s7550_s26, %s7549_s28  }
 0x141   : > { %p5828_p4 = scmp.ne.s32.totalorder %s6316_s24, %s5827_s5  ;;  %p5834_p10 = scmp.lt.u32.totalorder %s5827_s5, %s6316_s24 }
 0x143   : > { %p5830_p2 = pnand %p5828_p4, %p7547_p13 }
 0x145   : > { %p5831_p5 = pneg %p5830_p2 }
 0x147   : > { %p5836_p12 = pnand %p5834_p10, %p5831_p5 }
 0x149   : > { %5839 = shalt.err (!%p5836_p12)
}
 0x14a   : > { %s5840_s30 = scalar_lea.vmem %s882_s12, 16  ;;  %s5847_s10 = scalar_lea.vmem %s882_s12, 32 }
 0x14b   : > { %p5841_p3 = scmp.ne.s32.totalorder %s882_s12, %s5840_s30  ;;  %p5848_p6 = scmp.lt.s32.totalorder %s882_s12, %s882_s12 }
 0x14c   : > { %p5849_p8 = scmp.lt.s32.totalorder %s5847_s10, %s5840_s30 }
 0x14d   : > { %p5843_p1 = pnand %p5841_p3, %p7547_p13 }
 0x14e   : > { %p5850_p7 = por %p5849_p8, %p5848_p6 }
 0x14f   : > { %p5844_p0 = pneg %p5843_p1 }
 0x151   : > { %p5851_p9 = pnand %p5850_p7, %p5844_p0 }
 0x153   : > { %5854 = shalt.err (!%p5851_p9)
}
 0x154   : > { %5311 = dma.hbm_to_vmem [thread:$0]  (!%p7548_p11), %s6316_s24, 16, %s882_s12, [#allocation15]  }
 0x155   : > { %s6235_s19 = smov [#allocation19]   ;;  %s6236_s5 = smov [#allocation22]  }
 0x156   : > { %s905_s29 = sshll.u32 %s6235_s19, 4  ;;  %s927_s0 = sshll.u32 %s6236_s5, 4  ;;  %s906_s29 = int_to_ptr.vmem [resolvable:$true] %s905_s29  ;;  %s928_s0 = int_to_ptr.vmem [resolvable:$true] %s927_s0 }
 0x157   : > { %s5855_s4 = scalar_lea.hbm %s7523_s6, 16 }
 0x158   : > { %p5856_p4 = scmp.ne.s32.totalorder %s7523_s6, %s5855_s4  ;;  %p5862_p10 = scmp.lt.u32.totalorder %s5855_s4, %s7523_s6 }
 0x15a   : > { %p5858_p2 = pnand %p5856_p4, %p7547_p13 }
 0x15c   : > { %p5859_p5 = pneg %p5858_p2 }
 0x15e   : > { %p5864_p12 = pnand %p5862_p10, %p5859_p5 }
 0x160   : > { %5867 = shalt.err (!%p5864_p12)
}
 0x161   : > { %s5868_s30 = scalar_lea.vmem %s906_s29, 16  ;;  %s5875_s12 = scalar_lea.vmem %s906_s29, 32 }
 0x162   : > { %p5869_p3 = scmp.ne.s32.totalorder %s906_s29, %s5868_s30  ;;  %p5876_p6 = scmp.lt.s32.totalorder %s906_s29, %s906_s29 }
 0x163   : > { %p5877_p8 = scmp.lt.s32.totalorder %s5875_s12, %s5868_s30 }
 0x164   : > { %p5871_p1 = pnand %p5869_p3, %p7547_p13 }
 0x165   : > { %p5878_p7 = por %p5877_p8, %p5876_p6 }
 0x166   : > { %p5872_p0 = pneg %p5871_p1 }
 0x168   : > { %p5879_p9 = pnand %p5878_p7, %p5872_p0 }
 0x16a   : > { %5882 = shalt.err (!%p5879_p9)
}
 0x16b   : > { %5317 = dma.hbm_to_vmem [thread:$0]  (!%p7548_p11), %s7523_s6, 16, %s906_s29, [#allocation18]  }
 0x16c   : > { %s5883_s4 = scalar_lea.hbm %s6336_s20, 16 }
 0x16d   : > { %p5884_p4 = scmp.ne.s32.totalorder %s6336_s20, %s5883_s4  ;;  %p5890_p10 = scmp.lt.u32.totalorder %s5883_s4, %s6336_s20 }
 0x16f   : > { %p5886_p2 = pnand %p5884_p4, %p7547_p13 }
 0x171   : > { %p5887_p5 = pneg %p5886_p2 }
 0x173   : > { %p5892_p12 = pnand %p5890_p10, %p5887_p5 }
 0x175   : > { %5895 = shalt.err (!%p5892_p12)
}
 0x176   : > { %s5896_s10 = scalar_lea.vmem %s928_s0, 16  ;;  %s5903_s19 = scalar_lea.vmem %s928_s0, 32 }
 0x177   : > { %p5897_p3 = scmp.ne.s32.totalorder %s928_s0, %s5896_s10  ;;  %p5904_p6 = scmp.lt.s32.totalorder %s928_s0, %s928_s0 }
 0x178   : > { %p5905_p8 = scmp.lt.s32.totalorder %s5903_s19, %s5896_s10 }
 0x179   : > { %p5899_p1 = pnand %p5897_p3, %p7547_p13 }
 0x17a   : > { %p5906_p7 = por %p5905_p8, %p5904_p6 }
 0x17b   : > { %p5900_p0 = pneg %p5899_p1 }
 0x17d   : > { %p5907_p9 = pnand %p5906_p7, %p5900_p0 }
 0x17f   : > { %5910 = shalt.err (!%p5907_p9)
}
 0x180   : > { %5323 = dma.hbm_to_vmem [thread:$0]  (!%p7548_p11), %s6336_s20, 16, %s928_s0, [#allocation21]  }
 0x181   : > { %s6237_s29 = smov [#allocation25]   ;;  %s6238_s30 = smov [#allocation28]  }
 0x182   : > { %s957_s5 = sshll.u32 %s6237_s29, 4  ;;  %s988_s12 = sshll.u32 %s6238_s30, 4  ;;  %s958_s5 = int_to_ptr.vmem [resolvable:$true] %s957_s5  ;;  %s989_s12 = int_to_ptr.vmem [resolvable:$true] %s988_s12 }
 0x183   : > { %s5911_s4 = scalar_lea.hbm %s6361_s27, 256 }
 0x184   : > { %p5912_p4 = scmp.ne.s32.totalorder %s6361_s27, %s5911_s4  ;;  %p5918_p10 = scmp.lt.u32.totalorder %s5911_s4, %s6361_s27 }
 0x186   : > { %p5914_p2 = pnand %p5912_p4, %p7547_p13 }
 0x188   : > { %p5915_p5 = pneg %p5914_p2 }
 0x18a   : > { %p5920_p12 = pnand %p5918_p10, %p5915_p5 }
 0x18c   : > { %5923 = shalt.err (!%p5920_p12)
}
 0x18d   : > { %s5924_s10 = scalar_lea.vmem %s958_s5, 256  ;;  %p5932_p6 = scmp.lt.s32.totalorder %s958_s5, %s958_s5 }
 0x18e   : > { %p5925_p3 = scmp.ne.s32.totalorder %s958_s5, %s5924_s10  ;;  %p5933_p8 = scmp.lt.s32.totalorder %s5924_s10, %s5924_s10 }
 0x190   : > { %p5927_p1 = pnand %p5925_p3, %p7547_p13  ;;  %p5934_p7 = por %p5933_p8, %p5932_p6 }
 0x192   : > { %p5928_p0 = pneg %p5927_p1 }
 0x194   : > { %p5935_p9 = pnand %p5934_p7, %p5928_p0 }
 0x196   : > { %5938 = shalt.err (!%p5935_p9)
}
 0x197   : > { %5329 = dma.hbm_to_vmem [thread:$0]  (!%p7548_p11), %s6361_s27, 256, %s958_s5, [#allocation24], %s7550_s26, %s7550_s26, %s7549_s28  }
 0x198   : > { %s5939_s0 = scalar_lea.hbm %s6381_s25, 16 }
 0x199   : > { %p5940_p4 = scmp.ne.s32.totalorder %s6381_s25, %s5939_s0  ;;  %p5946_p10 = scmp.lt.u32.totalorder %s5939_s0, %s6381_s25 }
 0x19b   : > { %p5942_p2 = pnand %p5940_p4, %p7547_p13 }
 0x19d   : > { %p5943_p5 = pneg %p5942_p2 }
 0x19f   : > { %p5948_p12 = pnand %p5946_p10, %p5943_p5 }
 0x1a1   : > { %5951 = shalt.err (!%p5948_p12)
}
 0x1a2   : > { %s5952_s19 = scalar_lea.vmem %s989_s12, 16  ;;  %s5959_s29 = scalar_lea.vmem %s989_s12, 32 }
 0x1a3   : > { %p5953_p3 = scmp.ne.s32.totalorder %s989_s12, %s5952_s19  ;;  %p5960_p6 = scmp.lt.s32.totalorder %s989_s12, %s989_s12 }
 0x1a4   : > { %p5961_p8 = scmp.lt.s32.totalorder %s5959_s29, %s5952_s19 }
 0x1a5   : > { %p5955_p1 = pnand %p5953_p3, %p7547_p13 }
 0x1a6   : > { %p5962_p7 = por %p5961_p8, %p5960_p6 }
 0x1a7   : > { %p5956_p0 = pneg %p5955_p1 }
 0x1a9   : > { %p5963_p9 = pnand %p5962_p7, %p5956_p0 }
 0x1ab   : > { %5966 = shalt.err (!%p5963_p9)
}
 0x1ac   : > { %s7551_s28 = sld [smem:[#allocation63_spill]]  ;;  %s6239_s5 = smov [#allocation29]  }
 0x1ad   : > { %5335 = dma.hbm_to_vmem [thread:$0]  (!%p7548_p11), %s6381_s25, 16, %s989_s12, [#allocation27]  }
 0x1ae   : > { %s999_s30 = sshll.u32 %s6239_s5, 4  ;;  %s1000_s30 = int_to_ptr.vmem [resolvable:$true] %s999_s30 }
 0x1b2   : > { %s7552_s26 = smov %s7551_s28  ;;  %s5967_s4 = scalar_lea.hbm %s7551_s28, 16 }
 0x1b3   : > { %p5968_p4 = scmp.ne.s32.totalorder %s7552_s26, %s5967_s4  ;;  %p5974_p10 = scmp.lt.u32.totalorder %s5967_s4, %s7552_s26 }
 0x1b5   : > { %p5970_p2 = pnand %p5968_p4, %p7547_p13 }
 0x1b7   : > { %p5971_p5 = pneg %p5970_p2 }
 0x1b9   : > { %p5976_p12 = pnand %p5974_p10, %p5971_p5 }
 0x1bb   : > { %5979 = shalt.err (!%p5976_p12)
}
 0x1bc   : > { %s5980_s10 = scalar_lea.vmem %s1000_s30, 16  ;;  %s5987_s0 = scalar_lea.vmem %s1000_s30, 32 }
 0x1bd   : > { %p5981_p3 = scmp.ne.s32.totalorder %s1000_s30, %s5980_s10  ;;  %p5988_p6 = scmp.lt.s32.totalorder %s1000_s30, %s1000_s30 }
 0x1be   : > { %p5989_p8 = scmp.lt.s32.totalorder %s5987_s0, %s5980_s10 }
 0x1bf   : > { %p5983_p1 = pnand %p5981_p3, %p7547_p13 }
 0x1c0   : > { %p5990_p7 = por %p5989_p8, %p5988_p6 }
 0x1c1   : > { %p5984_p0 = pneg %p5983_p1 }
 0x1c3   : > { %p5991_p9 = pnand %p5990_p7, %p5984_p0 }
 0x1c5   : > { %5994 = shalt.err (!%p5991_p9)
}
 0x1c6   : > { %s7553_s12 = sld [smem:[#allocation44_spill]]  ;;  %s1041_s19 = scalar_lea.vmem [#allocation2], %s6589_s18 }
 0x1c7   : > { %5338 = dma.hbm_to_vmem [thread:$0]  (!%p7548_p11), %s7552_s26, 16, %s1000_s30, [#allocation30]  }
 0x1c8   : > { %s1049_s29 = sshll.u32 %s1041_s19, 4  ;;  %s4671_s22 = sshll.u32 %s6578_s17, 4  ;;  %s6750_s29 = int_to_ptr.vmem [resolvable:$true] %s1049_s29 }
 0x1c9   : > { %s1038_s28 = scalar_lea.sflag [#allocation3], %s6578_s17  ;;  %p7554_p4 = scmp.ne.s32.totalorder %s7545_s23, 0 }
 0x1cc   : > { %s6747_s9 = scalar_lea.hbm %s7553_s12, %s6592_s16  ;;  %s6000_s4 = scalar_lea.hbm %s7553_s12, 1024 }
 0x1cd   : > { %s5995_s5 = scalar_lea.hbm %s6747_s9, 512  ;;  %p6001_p10 = scmp.lt.u32.totalorder %s6747_s9, %s7553_s12 }
 0x1ce   : > { %p5996_p13 = scmp.ne.s32.totalorder %s6747_s9, %s5995_s5  ;;  %p6002_p11 = scmp.lt.u32.totalorder %s6000_s4, %s5995_s5 }
 0x1cf   : > { %p6004_p3 = scmp.lt.u32.totalorder %s5995_s5, %s6747_s9 }
 0x1d0   : > { %p5998_p2 = pnand %p5996_p13, %p7554_p4  ;;  %p6003_p12 = por %p6002_p11, %p6001_p10 }
 0x1d2   : > { %p5999_p5 = pneg %p5998_p2  ;;  %p6005_p1 = por %p6004_p3, %p6003_p12 }
 0x1d4   : > { %p6006_p0 = pnand %p6005_p1, %p5999_p5 }
 0x1d6   : > { %6009 = shalt.err (!%p6006_p0)
}
 0x1d7   : > { %s6010_s18 = scalar_lea.vmem %s6750_s29, 512  ;;  %s6240_s16 = smov [#allocation2]  }
 0x1d8   : > { %p6011_p6 = scmp.ne.s32.totalorder %s6750_s29, %s6010_s18  ;;  %s6015_s30 = sshll.u32 %s6240_s16, 4  ;;  %s6016_s30 = int_to_ptr.vmem [resolvable:$false] %s6015_s30 }
 0x1d9   : > { %s6017_s10 = scalar_lea.vmem %s6016_s30, 1024  ;;  %p6018_p9 = scmp.lt.s32.totalorder %s6750_s29, %s6016_s30 }
 0x1da   : > { %p6013_p8 = pnand %p6011_p6, %p7554_p4  ;;  %p6019_p13 = scmp.lt.s32.totalorder %s6017_s10, %s6010_s18 }
 0x1dc   : > { %p6014_p7 = pneg %p6013_p8  ;;  %p6020_p2 = por %p6019_p13, %p6018_p9 }
 0x1de   : > { %p6021_p10 = pnand %p6020_p2, %p6014_p7 }
 0x1e0   : > { %6024 = shalt.err (!%p6021_p10)
}
 0x1e1   : > { %p7555_p5 = scmp.ne.s32.totalorder %s7544_s3, 0  ;;  %s7556_s0 = smov 8  }
 0x1e2   : > { %s7557_s19 = smov 128   ;;  %s7558_s5 = sld [smem:[#allocation46_spill]] }
 0x1e3   : > { %5342 = dma.hbm_to_vmem [thread:$0]  (!%p7555_p5), %s6747_s9, 512, %s6750_s29, %s1038_s28, %s7557_s19, %s7557_s19, %s7556_s0  }
 0x1e4   : > { %s4806_s4 = sshll.u32 %s6187_s2, 8  ;;  %s1085_s16 = scalar_lea.vmem [#allocation7], %s4671_s22 }
 0x1e5   : > { %s1092_s30 = sshll.u32 %s1085_s16, 4  ;;  %s4678_s10 = sshll.u32 %s6578_s17, 1  ;;  %s6782_s30 = int_to_ptr.vmem [resolvable:$true] %s1092_s30 }
 0x1e8   : > { %s6778_s18 = scalar_lea.hbm %s7558_s5, %s4806_s4  ;;  %s6030_s8 = scalar_lea.hbm %s7558_s5, 512 }
 0x1e9   : > { %s6025_s6 = scalar_lea.hbm %s6778_s18, 256  ;;  %p6031_p1 = scmp.lt.u32.totalorder %s6778_s18, %s7558_s5 }
 0x1ea   : > { %p6026_p11 = scmp.ne.s32.totalorder %s6778_s18, %s6025_s6  ;;  %p6032_p0 = scmp.lt.u32.totalorder %s6030_s8, %s6025_s6 }
 0x1eb   : > { %p6034_p8 = scmp.lt.u32.totalorder %s6025_s6, %s6778_s18 }
 0x1ec   : > { %p6028_p12 = pnand %p6026_p11, %p7554_p4  ;;  %p6033_p6 = por %p6032_p0, %p6031_p1 }
 0x1ee   : > { %p6029_p3 = pneg %p6028_p12  ;;  %p6035_p7 = por %p6034_p8, %p6033_p6 }
 0x1f0   : > { %p6036_p9 = pnand %p6035_p7, %p6029_p3 }
 0x1f2   : > { %6039 = shalt.err (!%p6036_p9)
}
 0x1f3   : > { %s6040_s9 = scalar_lea.vmem %s6782_s30, 256  ;;  %s6241_s29 = smov [#allocation7]  }
 0x1f4   : > { %p6041_p13 = scmp.ne.s32.totalorder %s6782_s30, %s6040_s9  ;;  %s6045_s22 = sshll.u32 %s6241_s29, 4  ;;  %s6046_s22 = int_to_ptr.vmem [resolvable:$false] %s6045_s22 }
 0x1f5   : > { %s6047_s28 = scalar_lea.vmem %s6046_s22, 512  ;;  %p6048_p11 = scmp.lt.s32.totalorder %s6782_s30, %s6046_s22 }
 0x1f6   : > { %p6043_p2 = pnand %p6041_p13, %p7554_p4  ;;  %p6049_p12 = scmp.lt.s32.totalorder %s6047_s28, %s6040_s9 }
 0x1f8   : > { %p6044_p10 = pneg %p6043_p2  ;;  %p6050_p1 = por %p6049_p12, %p6048_p11 }
 0x1fa   : > { %p6051_p0 = pnand %p6050_p1, %p6044_p10 }
 0x1fc   : > { %6054 = shalt.err (!%p6051_p0)
}
 0x1fd   : > { %s7559_s8 = sld [smem:[#allocation47_spill]]  ;;  %s4809_s6 = sshll.u32 %s6187_s2, 5 }
 0x1fe   : > { %5348 = dma.hbm_to_vmem [thread:$0]  (!%p7555_p5), %s6778_s18, 256, %s6782_s30, %s6608_s14, %s7557_s19, %s7557_s19, %s7556_s0  }
 0x1ff   : > { %s1128_s16 = scalar_lea.vmem [#allocation10], %s4678_s10 }
 0x200   : > { %s1135_s9 = sshll.u32 %s1128_s16, 4  ;;  %s6812_s9 = int_to_ptr.vmem [resolvable:$true] %s1135_s9 }
 0x203   : > { %s6808_s4 = scalar_lea.hbm %s7559_s8, %s4809_s6  ;;  %s6060_s22 = scalar_lea.hbm %s7559_s8, 64 }
 0x204   : > { %s6055_s29 = scalar_lea.hbm %s6808_s4, 32  ;;  %p6061_p7 = scmp.lt.u32.totalorder %s6808_s4, %s7559_s8 }
 0x205   : > { %p6056_p3 = scmp.ne.s32.totalorder %s6808_s4, %s6055_s29  ;;  %p6062_p9 = scmp.lt.u32.totalorder %s6060_s22, %s6055_s29 }
 0x206   : > { %p6064_p2 = scmp.lt.u32.totalorder %s6055_s29, %s6808_s4 }
 0x207   : > { %p6058_p6 = pnand %p6056_p3, %p7554_p4  ;;  %p6063_p13 = por %p6062_p9, %p6061_p7 }
 0x209   : > { %p6059_p8 = pneg %p6058_p6  ;;  %p6065_p10 = por %p6064_p2, %p6063_p13 }
 0x20b   : > { %p6066_p11 = pnand %p6065_p10, %p6059_p8 }
 0x20d   : > { %6069 = shalt.err (!%p6066_p11)
}
 0x20e   : > { %s6070_s14 = scalar_lea.vmem %s6812_s9, 32  ;;  %s6242_s17 = smov [#allocation10]  }
 0x20f   : > { %p6071_p12 = scmp.ne.s32.totalorder %s6812_s9, %s6070_s14  ;;  %s6075_s0 = sshll.u32 %s6242_s17, 4  ;;  %s6076_s0 = int_to_ptr.vmem [resolvable:$false] %s6075_s0 }
 0x210   : > { %s6077_s19 = scalar_lea.vmem %s6076_s0, 64  ;;  %p6078_p3 = scmp.lt.s32.totalorder %s6812_s9, %s6076_s0 }
 0x211   : > { %p6073_p1 = pnand %p6071_p12, %p7554_p4  ;;  %p6079_p6 = scmp.lt.s32.totalorder %s6077_s19, %s6070_s14 }
 0x213   : > { %p6074_p0 = pneg %p6073_p1  ;;  %p6080_p7 = por %p6079_p6, %p6078_p3 }
 0x215   : > { %p6081_p9 = pnand %p6080_p7, %p6074_p0 }
 0x217   : > { %6084 = shalt.err (!%p6081_p9)
}
 0x218   : > { %s6243_s18 = smov 16   ;;  %s6244_s30 = smov 1  }
 0x219   : > { %5354 = dma.hbm_to_vmem [thread:$0]  (!%p7555_p5), %s6808_s4, 32, %s6812_s9, %s6646_s13, %s6243_s18, %s6243_s18, %s6244_s30  }
 0x21a   : > { %p7560_p4 = scmp.ne.s32.totalorder %s7533_s15, 0 }
 0x21b   : > { %s6835_s23 = sand.u32 (!%p7560_p4), 1, %s6179_s1   ;;  %p7561_p8 = scmp.ne.s32.totalorder (!%p7560_p4), %s7539_s7, 0 }
 0x21c   : > { %1147 = sbr.rel (%p7560_p4) target bundleno = 8009 (0x1f49), region = 148  ;;  %s4682_s10 = sshll.u32 (!%p7560_p4), %s6835_s23, 5 }
 0x21d   : > { %s1150_s28 = scalar_lea.sflag (!%p7560_p4), [#allocation3], %s6835_s23  ;;  %s6839_s6 = scalar_lea.vmem (!%p7560_p4), [#allocation2], %s4682_s10 }
 0x223   : > { %6130 = dma.done.wait (%p7561_p8), %s1150_s28, 512  }
 0x224   : > { %6132 = vsyncadd (%p7561_p8), %s1150_s28, 4294966784  ;;  %s1158_s13 = sand.u32 1, %s6444_s11   ;;  %s6846_s3 = scalar_lea.vmem [#allocation5], %s4682_s10 }
 0x225   : > { %s1159_s15 = scalar_lea.sflag [#allocation6], %s1158_s13 }
 0x226   : > { %6134 = dma.done.wait (%p7561_p8), %s1159_s15, 768  }
 0x227   : > { %6136 = vsyncadd (%p7561_p8), %s1159_s15, 4294966528  ;;  %s4684_s4 = sshll.u32 %s6835_s23, 4  ;;  %s1177_s9 = scalar_lea.sflag [#allocation9], %s1158_s13 }
 0x228   : > { %s6855_s16 = scalar_lea.vmem [#allocation7], %s4684_s4  ;;  %s6857_s29 = scalar_lea.vmem [#allocation8], %s4682_s10 }
 0x229   : > { %6138 = dma.done.wait (%p7561_p8), %s1177_s9, 544  }
 0x22a   : > { %6140 = vsyncadd (%p7561_p8), %s1177_s9, 4294966752  ;;  %s4686_s22 = sshll.u32 %s6835_s23, 1  ;;  %p7562_p5 = scmp.eq.s32.totalorder %s6444_s11, 0 }
 0x22b   : > { %s6864_s14 = scalar_lea.vmem [#allocation10], %s4686_s22 }
 0x22c   : > { %6142 = dma.done.wait (%p7562_p5), [#allocation12], 272   ;;  %p7563_p13 = pmov %p7562_p5 }
 0x22d   : > { %p7564_p2 = pmov %p7562_p5 }
 0x22e   : > { %6144 = vsyncadd (%p7563_p13), [#allocation12], 4294967024 }
 0x22f   : > { %6146 = dma.done.wait (%p7564_p2), [#allocation15], 32   ;;  %p7565_p10 = pmov %p7564_p2 }
 0x230   : > { %p7566_p11 = pmov %p7564_p2 }
 0x231   : > { %6148 = vsyncadd (%p7565_p10), [#allocation15], 4294967264 }
 0x232   : > { %6150 = dma.done.wait (%p7566_p11), [#allocation18], 272   ;;  %p7567_p12 = pmov %p7564_p2 }
 0x233   : > { %p7568_p1 = pmov %p7564_p2 }
 0x234   : > { %6152 = vsyncadd (%p7567_p12), [#allocation18], 4294967024 }
 0x235   : > { %6154 = dma.done.wait (%p7568_p1), [#allocation21], 32   ;;  %p7569_p0 = pmov %p7568_p1 }
 0x237   : > { %6156 = vsyncadd (%p7569_p0), [#allocation21], 4294967264  ;;  %p7570_p3 = pmov %p7569_p0 }
 0x238   : > { %p7571_p6 = pmov %p7569_p0 }
 0x239   : > { %6158 = dma.done.wait (%p7570_p3), [#allocation24], 272  }
 0x23a   : > { %6160 = vsyncadd (%p7571_p6), [#allocation24], 4294967024  ;;  %p7572_p7 = pmov %p7569_p0 }
 0x23b   : > { %p7573_p9 = pmov %p7569_p0 }
 0x23c   : > { %6162 = dma.done.wait (%p7572_p7), [#allocation27], 32  }
 0x23d   : > { %6164 = vsyncadd (%p7573_p9), [#allocation27], 4294967264  ;;  %p7574_p4 = pmov %p7569_p0 }
 0x23e   : > { %p7575_p8 = pmov %p7569_p0 }
 0x23f   : > { %6166 = dma.done.wait (%p7574_p4), [#allocation30], 16  }
 0x240   : > { %6168 = vsyncadd (%p7575_p8), [#allocation30], 4294967280  ;;  %s7576_s7 = sld [smem:[#allocation43_spill]]  ;;  %s7577_s17 = sld [smem:[#allocation48_spill]]  ;;  %v6245_v0 = vmov 0.0   ;;  %vm6246_vm0 = vmmov 0  }
 0x241   : > { %s4701_s0 = sshll.u32 %s6444_s11, 1  ;;  %4935 = vmatprep.subr.bf16.mxu1 %v6245_v0  ;;  %4927 = vmatprep.subr.bf16.mxu0 %v6245_v0  ;;  %v5477_v1 = vld [vmem:[#allocation13] sm:$0xff]   ;;  %v5478_v2 = vld [vmem:[#allocation13 + $0x8] sm:$0xff]   ;;  %s7578_s30 = sld [smem:[#allocation52_spill]]  ;;  %vm1390_vm1 = vcmask 261120   ;;  %vm1589_vm2 = vcmask 64512  }
 0x242   : > { %p1348_p5 = scmp.lt.s32.totalorder %s4701_s0, 3  ;;  %4939 = vmatprep.mubr.msk.bf16.mxu1 %vm6246_vm0, %v6245_v0  ;;  %4931 = vmatprep.mubr.msk.bf16.mxu0 %vm6246_vm0, %v6245_v0  ;;  %v6909_v6 = vld [vmem:[%s6855_s16] sm:$0xff]  ;;  %v6912_v7 = vld [vmem:[%s6855_s16 + $0x8] sm:$0xff]  ;;  %s6247_s10 = smov 120   ;;  %vm1709_vm3 = vcmask 1043456   ;;  %vm3081_vm4 = vcmask 130048  }
 0x243   : > { %4936 = vmatpush3.bf16.msra.mxu1 %v5477_v1  ;;  %v4707_v15 = vld [vmem:[#allocation14] ss:$0 sm:$0xff]  ;;  %v4703_v20 = vld [vmem:[#allocation11] ss:$0 sm:$0xff]  ;;  %v4711_v35 = vld [vmem:[#allocation16] ss:$0 sm:$0xff] }
 0x244   : > { %s7603_s0 = smov (!%p1348_p5, %s4701_s0), 3  ;;  %4937 = vmatprep.subr.bf16.mxu1 %v6245_v0  ;;  %s6248_s28 = smov 112   ;;  %vm4209_vm5 = vcmask 523264  }
 0x245   : > { %s4702_s19 = sshll.u32 %s7603_s0, 3  ;;  %s6249_s13 = smov 104  }
 0x246   : > { %s1351_s18 = scalar_lea.vmem %s7576_s7, %s4702_s19  ;;  %v5479_v3 = vld [vmem:[%s7577_s17] sm:$0xff]   ;;  %v5480_v10 = vld [vmem:[%s7577_s17 + $0x8] sm:$0xff]   ;;  %s7579_s15 = sld [smem:[#allocation58_spill]] }
 0x247   : > { %v6904_v4 = vld [vmem:[%s1351_s18] sm:$0xff]  ;;  %v6906_v5 = vld [vmem:[%s1351_s18 + $0x8] sm:$0xff]  ;;  %4928 = vmatpush3.bf16.msra.mxu0 %v5479_v3  ;;  %4938 = vmatpush3.bf16.msra.mxu1 %v5478_v2  ;;  %s7580_s16 = sld [smem:[#allocation56_spill]]  ;;  %s7583_s9 = sld [smem:[#allocation61_spill]] }
 0x248   : > { %v1364_v8 = vadd.f32 %v6909_v6, %v6904_v4  ;;  %v1365_v9 = vadd.f32 %v6912_v7, %v6906_v5  ;;  %4929 = vmatprep.subr.bf16.mxu0 %v6245_v0  ;;  %v5481_v12 = vld [vmem:[%s7578_s30] sm:$0xff]   ;;  %4951 = vmatprep.subr.bf16.mxu1 %v6245_v0  ;;  %v5482_v13 = vld [vmem:[%s7578_s30 + $0x8] sm:$0xff]   ;;  %v1499_v14 = vpack.c.bf16 %v6906_v5, %v6904_v4  ;;  %s7585_s22 = sld [smem:[#allocation66_spill]]  ;;  %s7587_s7 = sld [smem:[#allocation67_spill]] }
 0x249   : > { %s7588_s0 = sld [smem:[#allocation68_spill]]  ;;  %s7589_s19 = sld [smem:[#allocation69_spill]] }
 0x24a   : > { %v1366_v11 = vpack.c.bf16 %v1365_v9, %v1364_v8  ;;  %s7590_s18 = sld [smem:[#allocation70_spill]] }
 0x24b   : > { %4930 = vmatpush3.bf16.msra.mxu0 %v5480_v10 }
 0x24c   : > { %4940 = vmatmul.mubr.msk.bf16.vlgmr.msra.gmra.mrb[0].mxu1 %vm1390_vm1, %v1366_v11  ;;  %4943 = vmatprep.subr.bf16.mxu0 %v6245_v0 }
 0x24d   : > { %4953 = vmatprep.mubr.msk.bf16.mxu1 %vm6246_vm0, %v6245_v0 }
 0x24e   : > { %4932 = vmatmul.mubr.msk.bf16.vlgmr.msra.gmra.mrb[0].mxu0 %vm1390_vm1, %v1366_v11 }
 0x24f   : > { %4944 = vmatpush3.bf16.msra.mxu0 %v5481_v12  ;;  %4947 = vmatprep.mubr.msk.bf16.mxu0 %vm6246_vm0, %v6245_v0 }
 0x250   : > { %4945 = vmatprep.subr.bf16.mxu0 %v6245_v0 }
 0x253   : > { %4946 = vmatpush3.bf16.msra.mxu0 %v5482_v13 }
 0x254   : > { %4957 = vmatprep.subr.bf16.mxu0 %v6245_v0 }
 0x256   : > { %4948 = vmatmul.mubr.msk.bf16.vlgmr.msra.gmra.mrb[4].mxu0 %vm1390_vm1, %v1499_v14 }
 0x257   : > { %4959 = vmatprep.mubr.msk.bf16.mxu0 %vm6246_vm0, %v6245_v0 }
 0x31f   : > { %v1492_v16 = vpop.f32.mrb[0].mxu1 }
 0x320   : > { %v1493_v17 = vadd.f32 %v4707_v15, %v1492_v16  ;;  %v4941_v18 = vpop.f32.mrb[1].mxu1 }
 0x321   : > { %v1495_v19 = vpop.f32.mrb[2].mxu1  ;;  %v1428_v21 = vpop.f32.mrb[0].mxu0 }
 0x322   : > { %v6937_v22 = vpack.c.bf16 %v1493_v17, %v1493_v17  ;;  %v1496_v23 = vadd.f32 %v4707_v15, %v1495_v19  ;;  %v4942_v24 = vpop.f32.mrb[3].mxu1  ;;  %v4933_v25 = vpop.f32.mrb[1].mxu0  ;;  %v1429_v28 = vadd.f32 %v4703_v20, %v1428_v21 }
 0x323   : > { %v1431_v26 = vpop.f32.mrb[2].mxu0 }
 0x324   : > { %v6939_v27 = vpack.c.bf16 %v1496_v23, %v1496_v23  ;;  %v1594_v29 = vsel %vm1589_vm2, %v6937_v22, 0  ;;  %v4934_v30 = vpop.f32.mrb[3].mxu0  ;;  %v6948_v32 = vpack.c.bf16 %v1429_v28, %v1429_v28  ;;  %v1432_v33 = vadd.f32 %v4703_v20, %v1431_v26 }
 0x325   : > { %4952 = vmatpush3.bf16.xpose.msra.mxu1 %v1594_v29 }
 0x326   : > { %1852 = vrot.lane.b32.xlu1 %v6939_v27, %s6247_s10  ;;  %v1640_v31 = vsel %vm1589_vm2, %v6939_v27, 0  ;;  %4963 = vmatprep.subr.bf16.mxu1 %v6245_v0  ;;  %v6951_v34 = vpack.c.bf16 %v1432_v33, %v1432_v33 }
 0x327   : > { %4958 = vmatpush3.bf16.xpose.msra.mxu0 %v1640_v31 }
 0x328   : > { %4969 = vmatprep.subr.bf16.mxu0 %v6245_v0 }
 0x329   : > { %v1560_v36 = vpop.f32.mrb[4].mxu0 }
 0x32a   : > { %v1561_v37 = vadd.f32 %v4711_v35, %v1560_v36  ;;  %v4949_v38 = vpop.f32.mrb[5].mxu0 }
 0x32b   : > { %v1563_v39 = vpop.f32.mrb[6].mxu0 }
 0x32c   : > { %4954 = vmatmul.mubr.msk.bf16.vlgmr.msra.gmra.mrb[4].mxu1 %vm1589_vm2, %v6948_v32  ;;  %v1564_v40 = vadd.f32 %v4711_v35, %v1563_v39  ;;  %v4950_v41 = vpop.f32.mrb[7].mxu0  ;;  %v6961_v42 = vpack.c.bf16 %v1561_v37, %v1561_v37 }
 0x32d   : > { %4965 = vmatprep.mubr.msk.bf16.mxu1 %vm6246_vm0, %v6245_v0 }
 0x32e   : > { %4960 = vmatmul.mubr.msk.bf16.vlgmr.msra.gmra.mrb[8].mxu0 %vm1589_vm2, %v6951_v34  ;;  %v6963_v43 = vpack.c.bf16 %v1564_v40, %v1564_v40  ;;  %v1711_v44 = vsel %vm1709_vm3, %v6961_v42, 0 }
 0x32f   : > { %4971 = vmatprep.mubr.msk.bf16.mxu0 %vm6246_vm0, %v6245_v0  ;;  %4964 = vmatpush3.bf16.msra.mxu1 %v1711_v44 }
 0x330   : > { %v1757_v45 = vsel %vm1709_vm3, %v6963_v43, 0  ;;  %4975 = vmatprep.subr.bf16.mxu1 %v6245_v0 }
 0x331   : > { %4970 = vmatpush3.bf16.msra.mxu0 %v1757_v45 }
 0x332   : > { %4981 = vmatprep.subr.bf16.mxu0 %v6245_v0 }
 0x398   : > { %v1853_v3 = vpop.permute.xlu1 %1852 }
 0x399   : > { %v1858_v18 = vsel %vm1589_vm2, %v1853_v3, 0 }
 0x3ff   : > { %v1630_v46 = vpop.f32.mrb[4].mxu1 }
 0x400   : > { %v4955_v47 = vpop.f32.mrb[5].mxu1  ;;  %v1682_v48 = vsel %vm1589_vm2, %v1630_v46, -inf }
 0x401   : > { %1683 = vmax.xlane.f32.xlu0 %v1682_v48  ;;  %v1633_v49 = vpop.f32.mrb[6].mxu1  ;;  %v1676_v50 = vpop.f32.mrb[8].mxu0 }
 0x402   : > { %v4956_v51 = vpop.f32.mrb[7].mxu1  ;;  %v4961_v52 = vpop.f32.mrb[9].mxu0  ;;  %v1685_v55 = vsel %vm1589_vm2, %v1676_v50, -inf }
 0x403   : > { %v1679_v53 = vpop.f32.mrb[10].mxu0 }
 0x404   : > { %v4962_v54 = vpop.f32.mrb[11].mxu0 }
 0x405   : > { %1686 = vmax.xlane.f32.xlu0 %v1685_v55 }
 0x41b   : > { %1802 = vrot.lane.b32.xlu0 %v6937_v22, %s6247_s10 }
 0x48e   : > { %v1684_v56 = vpop.xlane.xlu0 %1683 }
 0x48f   : > { %v1688_v57 = vsub.f32 %v1630_v46, %v1684_v56 }
 0x491   : > { %v1690_v58 = vmul.f32 1.442695, %v1688_v57 }
 0x492   : > { %v1687_v59 = vpop.xlane.xlu0 %1686 }
 0x493   : > { %5495 = vpow2.f32 %v1690_v58  ;;  %v1689_v60 = vsub.f32 %v1676_v50, %v1687_v59 }
 0x495   : > { %v1692_v61 = vmul.f32 1.442695, %v1689_v60 }
 0x496   : > { %v1803_v12 = vpop.permute.xlu0 %1802 }
 0x497   : > { %5497 = vpow2.f32 %v1692_v61  ;;  %v1808_v15 = vsel %vm1589_vm2, %v1803_v12, 0 }
 0x49d   : > { %v5496_v62 = vpop.eup %5495 }
 0x49e   : > { %v1694_v63 = vsel %vm1589_vm2, %v5496_v62, 0.0 }
 0x49f   : > { %1695 = vadd.xlane.f32.xlu1 %v1694_v63  ;;  %v1586_v63 = vld [vmem:[#allocation17 + $0x4] sm:$0xf] }
 0x4a0   : > { %v2025_v3 = vsel %vm1709_vm3, %v1586_v63, 0 }
 0x4a1   : > { %v5498_v1 = vpop.eup %5497 }
 0x4a2   : > { %v1697_v2 = vsel %vm1589_vm2, %v5498_v1, 0.0 }
 0x4a3   : > { %1698 = vadd.xlane.f32.xlu1 %v1697_v2 }
 0x4b4   : > { %1800 = vrot.lane.b32.xlu1 %v6948_v32, %s6247_s10 }
 0x4b8   : > { %1850 = vrot.lane.b32.xlu1 %v6951_v34, %s6247_s10 }
 0x52c   : > { %v1696_v8 = vpop.xlane.xlu1 %1695 }
 0x52d   : > { %5499 = vrcp.f32 %v1696_v8 }
 0x530   : > { %v1699_v9 = vpop.xlane.xlu1 %1698 }
 0x531   : > { %5501 = vrcp.f32 %v1699_v9  ;;  %v1585_v9 = vld [vmem:[#allocation17] sm:$0xf] }
 0x532   : > { %v2072_v12 = vsel %vm1709_vm3, %v1585_v9, 0 }
 0x534   : > { %v1801_v19 = vpop.permute.xlu1 %1800 }
 0x537   : > { %v5500_v10 = vpop.eup %5499 }
 0x538   : > { %v1702_v11 = vmul.f32 %v5500_v10, %v5496_v62  ;;  %v1851_v20 = vpop.permute.xlu1 %1850 }
 0x53a   : > { %v1704_v13 = vpack.c.bf16 %v1702_v11, %v1702_v11 }
 0x53b   : > { %v5502_v14 = vpop.eup %5501 }
 0x53c   : > { %v1703_v16 = vmul.f32 %v5502_v14, %v5498_v1  ;;  %4966 = vmatmul.mubr.msk.bf16.vlgmr.msra.gmra.mrb[8].mxu1 %vm1589_vm2, %v1704_v13 }
 0x53d   : > { %4976 = vmatpush3.bf16.xpose.msra.mxu1 %v1808_v15  ;;  %4977 = vmatprep.mubr.msk.bf16.mxu1 %vm6246_vm0, %v6245_v0 }
 0x53e   : > { %v1705_v17 = vpack.c.bf16 %v1703_v16, %v1703_v16  ;;  %4987 = vmatprep.subr.bf16.mxu1 %v6245_v0 }
 0x540   : > { %4972 = vmatmul.mubr.msk.bf16.vlgmr.msra.gmra.mrb[12].mxu0 %vm1589_vm2, %v1705_v17 }
 0x541   : > { %4982 = vmatpush3.bf16.xpose.msra.mxu0 %v1858_v18  ;;  %4983 = vmatprep.mubr.msk.bf16.mxu0 %vm6246_vm0, %v6245_v0 }
 0x542   : > { %4993 = vmatprep.subr.bf16.mxu0 %v6245_v0 }
 0x544   : > { %4978 = vmatmul.mubr.msk.bf16.vlgmr.msra.gmra.mrb[12].mxu1 %vm1589_vm2, %v1801_v19 }
 0x545   : > { %4989 = vmatprep.mubr.msk.bf16.mxu1 %vm6246_vm0, %v6245_v0 }
 0x548   : > { %4984 = vmatmul.mubr.msk.bf16.vlgmr.msra.gmra.mrb[16].mxu0 %vm1589_vm2, %v1851_v20 }
 0x549   : > { %4995 = vmatprep.mubr.msk.bf16.mxu0 %vm6246_vm0, %v6245_v0 }
 0x60f   : > { %v6997_v21 = vpop.f32.mrb[8].mxu1 }
 0x610   : > { %v4967_v23 = vpop.f32.mrb[9].mxu1 }
 0x611   : > { %v1750_v24 = vpop.f32.mrb[10].mxu1 }
 0x612   : > { %v4968_v25 = vpop.f32.mrb[11].mxu1 }
 0x613   : > { %v6999_v26 = vpop.f32.mrb[12].mxu0 }
 0x614   : > { %v1799_v28 = vpack.c.bf16 %v6999_v26, %v6997_v21  ;;  %v4973_v29 = vpop.f32.mrb[13].mxu0 }
 0x615   : > { %v1796_v30 = vpop.f32.mrb[14].mxu0 }
 0x616   : > { %v4974_v31 = vpop.f32.mrb[15].mxu0 }
 0x617   : > { %v1844_v33 = vpop.f32.mrb[12].mxu1 }
 0x618   : > { %v4979_v35 = vpop.f32.mrb[13].mxu1  ;;  %v1900_v36 = vsel %vm1589_vm2, %v1844_v33, -inf }
 0x619   : > { %1901 = vmax.xlane.f32.xlu0 %v1900_v36  ;;  %v1847_v37 = vpop.f32.mrb[14].mxu1 }
 0x61a   : > { %v4980_v38 = vpop.f32.mrb[15].mxu1 }
 0x61b   : > { %v1894_v39 = vpop.f32.mrb[16].mxu0 }
 0x61c   : > { %v4985_v40 = vpop.f32.mrb[17].mxu0  ;;  %v1903_v41 = vsel %vm1589_vm2, %v1894_v39, -inf }
 0x61d   : > { %1904 = vmax.xlane.f32.xlu1 %v1903_v41  ;;  %v1897_v44 = vpop.f32.mrb[18].mxu0 }
 0x61e   : > { %v4986_v45 = vpop.f32.mrb[19].mxu0 }
 0x62e   : > { %1972 = vrot.lane.b32.xlu1 %v6963_v43, %s6247_s10 }
 0x632   : > { %2117 = vrot.lane.b32.xlu1 %v6937_v22, %s6248_s28 }
 0x636   : > { %2167 = vrot.lane.b32.xlu1 %v6939_v27, %s6248_s28 }
 0x63a   : > { %2165 = vrot.lane.b32.xlu1 %v6951_v34, %s6248_s28 }
 0x6a6   : > { %v1902_v46 = vpop.xlane.xlu0 %1901 }
 0x6a7   : > { %v1906_v47 = vsub.f32 %v1844_v33, %v1902_v46 }
 0x6a9   : > { %v1908_v48 = vmul.f32 1.442695, %v1906_v47 }
 0x6aa   : > { %v1905_v49 = vpop.xlane.xlu1 %1904 }
 0x6ab   : > { %5503 = vpow2.f32 %v1908_v48  ;;  %v1907_v50 = vsub.f32 %v1894_v39, %v1905_v49 }
 0x6ad   : > { %v1910_v51 = vmul.f32 1.442695, %v1907_v50 }
 0x6ae   : > { %v1973_v52 = vpop.permute.xlu1 %1972 }
 0x6af   : > { %5505 = vpow2.f32 %v1910_v51  ;;  %v1978_v53 = vsel %vm1709_vm3, %v1973_v52, 0 }
 0x6b0   : > { %4994 = vmatpush3.bf16.msra.mxu0 %v1978_v53 }
 0x6b1   : > { %5005 = vmatprep.subr.bf16.mxu0 %v6245_v0 }
 0x6b2   : > { %v2118_v13 = vpop.permute.xlu1 %2117 }
 0x6b3   : > { %v2123_v26 = vsel %vm1589_vm2, %v2118_v13, 0 }
 0x6b5   : > { %v5504_v54 = vpop.eup %5503 }
 0x6b6   : > { %v1912_v55 = vsel %vm1589_vm2, %v5504_v54, 0.0  ;;  %v2168_v14 = vpop.permute.xlu1 %2167 }
 0x6b7   : > { %1913 = vadd.xlane.f32.xlu0 %v1912_v55  ;;  %v2173_v15 = vsel %vm1589_vm2, %v2168_v14, 0 }
 0x6b9   : > { %v5506_v56 = vpop.eup %5505 }
 0x6ba   : > { %v1915_v57 = vsel %vm1589_vm2, %v5506_v56, 0.0  ;;  %v2166_v16 = vpop.permute.xlu1 %2165 }
 0x6bb   : > { %1916 = vadd.xlane.f32.xlu0 %v1915_v57 }
 0x6d1   : > { %1924 = vrot.lane.b32.xlu0 %v6961_v42, %s6247_s10 }
 0x6d5   : > { %2115 = vrot.lane.b32.xlu0 %v6948_v32, %s6248_s28 }
 0x744   : > { %v1914_v58 = vpop.xlane.xlu0 %1913 }
 0x745   : > { %5507 = vrcp.f32 %v1914_v58 }
 0x748   : > { %v1917_v59 = vpop.xlane.xlu0 %1916 }
 0x749   : > { %5509 = vrcp.f32 %v1917_v59 }
 0x74c   : > { %v1925_v60 = vpop.permute.xlu0 %1924 }
 0x74d   : > { %v1930_v61 = vsel %vm1709_vm3, %v1925_v60, 0 }
 0x74e   : > { %4988 = vmatpush3.bf16.msra.mxu1 %v1930_v61 }
 0x74f   : > { %v5508_v62 = vpop.eup %5507  ;;  %4999 = vmatprep.subr.bf16.mxu1 %v6245_v0 }
 0x750   : > { %v1920_v1 = vmul.f32 %v5508_v62, %v5504_v54  ;;  %v2116_v31 = vpop.permute.xlu0 %2115 }
 0x752   : > { %v1922_v2 = vpack.c.bf16 %v1920_v1, %v1920_v1 }
 0x753   : > { %v5510_v8 = vpop.eup %5509 }
 0x754   : > { %v1921_v10 = vmul.f32 %v5510_v8, %v5506_v56  ;;  %4990 = vmatmul.mubr.msk.bf16.vlgmr.msra.gmra.mrb[16].mxu1 %vm1589_vm2, %v1922_v2 }
 0x755   : > { %5000 = vmatpush3.bf16.msra.mxu1 %v2025_v3  ;;  %5001 = vmatprep.mubr.msk.bf16.mxu1 %vm6246_vm0, %v6245_v0 }
 0x756   : > { %v1923_v11 = vpack.c.bf16 %v1921_v10, %v1921_v10  ;;  %5011 = vmatprep.subr.bf16.mxu1 %v6245_v0 }
 0x758   : > { %4996 = vmatmul.mubr.msk.bf16.vlgmr.msra.gmra.mrb[20].mxu0 %vm1589_vm2, %v1923_v11 }
 0x759   : > { %5006 = vmatpush3.bf16.msra.mxu0 %v2072_v12  ;;  %5007 = vmatprep.mubr.msk.bf16.mxu0 %vm6246_vm0, %v6245_v0 }
 0x75a   : > { %5017 = vmatprep.subr.bf16.mxu0 %v6245_v0 }
 0x760   : > { %5008 = vmatmul.mubr.msk.bf16.vlgmr.msra.gmra.mrb[24].mxu0 %vm1589_vm2, %v1799_v28 }
 0x761   : > { %5019 = vmatprep.mubr.msk.bf16.mxu0 %vm6246_vm0, %v6245_v0 }
 0x762   : > { %5018 = vmatpush3.bf16.xpose.msra.mxu0 %v2173_v15 }
 0x763   : > { %5029 = vmatprep.subr.bf16.mxu0 %v6245_v0 }
 0x769   : > { %5020 = vmatmul.mubr.msk.bf16.vlgmr.msra.gmra.mrb[28].mxu0 %vm1589_vm2, %v2166_v16 }
 0x76a   : > { %5031 = vmatprep.mubr.msk.bf16.mxu0 %vm6246_vm0, %v6245_v0 }
 0x827   : > { %v1966_v17 = vpop.f32.mrb[16].mxu1 }
 0x828   : > { %v4991_v18 = vpop.f32.mrb[17].mxu1 }
 0x829   : > { %v1969_v19 = vpop.f32.mrb[18].mxu1 }
 0x82a   : > { %v4992_v20 = vpop.f32.mrb[19].mxu1 }
 0x82b   : > { %v2014_v21 = vpop.f32.mrb[20].mxu0  ;;  %v1587_v20 = vld [vmem:[#allocation17 + $0x8] sm:$0xf] }
 0x82c   : > { %v2020_v23 = vpack.c.bf16 %v2014_v21, %v1966_v17  ;;  %v4997_v24 = vpop.f32.mrb[21].mxu0  ;;  %v2340_v21 = vsel %vm1709_vm3, %v1587_v20, 0 }
 0x82d   : > { %v2017_v25 = vpop.f32.mrb[22].mxu0 }
 0x82e   : > { %v4998_v28 = vpop.f32.mrb[23].mxu0  ;;  %5002 = vmatmul.mubr.msk.bf16.vlgmr.msra.gmra.mrb[20].mxu1 %vm1589_vm2, %v2020_v23 }
 0x82f   : > { %5012 = vmatpush3.bf16.xpose.msra.mxu1 %v2123_v26  ;;  %5013 = vmatprep.mubr.msk.bf16.mxu1 %vm6246_vm0, %v6245_v0 }
 0x830   : > { %5023 = vmatprep.subr.bf16.mxu1 %v6245_v0 }
 0x833   : > { %v2108_v29 = vpop.f32.mrb[24].mxu0 }
 0x834   : > { %v5009_v30 = vpop.f32.mrb[25].mxu0 }
 0x835   : > { %v2111_v33 = vpop.f32.mrb[26].mxu0 }
 0x836   : > { %v5010_v35 = vpop.f32.mrb[27].mxu0  ;;  %5014 = vmatmul.mubr.msk.bf16.vlgmr.msra.gmra.mrb[24].mxu1 %vm1589_vm2, %v2116_v31 }
 0x837   : > { %5025 = vmatprep.mubr.msk.bf16.mxu1 %vm6246_vm0, %v6245_v0 }
 0x83c   : > { %v2209_v36 = vpop.f32.mrb[28].mxu0 }
 0x83d   : > { %v5021_v37 = vpop.f32.mrb[29].mxu0  ;;  %v2218_v38 = vsel %vm1589_vm2, %v2209_v36, -inf }
 0x83e   : > { %2219 = vmax.xlane.f32.xlu1 %v2218_v38  ;;  %v2212_v39 = vpop.f32.mrb[30].mxu0 }
 0x83f   : > { %v5022_v40 = vpop.f32.mrb[31].mxu0 }
 0x84f   : > { %2287 = vrot.lane.b32.xlu1 %v6963_v43, %s6248_s28 }
 0x853   : > { %2387 = vrot.lane.b32.xlu1 %v6937_v22, %s6249_s13 }
 0x857   : > { %2437 = vrot.lane.b32.xlu1 %v6939_v27, %s6249_s13 }
 0x85b   : > { %2435 = vrot.lane.b32.xlu1 %v6951_v34, %s6249_s13 }
 0x8cb   : > { %v2220_v41 = vpop.xlane.xlu1 %2219 }
 0x8cc   : > { %v2222_v46 = vsub.f32 %v2209_v36, %v2220_v41 }
 0x8ce   : > { %v2225_v47 = vmul.f32 1.442695, %v2222_v46 }
 0x8cf   : > { %v2288_v44 = vpop.permute.xlu1 %2287 }
 0x8d0   : > { %v2293_v45 = vsel %vm1709_vm3, %v2288_v44, 0  ;;  %5511 = vpow2.f32 %v2225_v47 }
 0x8d1   : > { %5030 = vmatpush3.bf16.msra.mxu0 %v2293_v45 }
 0x8d2   : > { %5041 = vmatprep.subr.bf16.mxu0 %v6245_v0 }
 0x8d3   : > { %v2388_v3 = vpop.permute.xlu1 %2387 }
 0x8d4   : > { %v2393_v9 = vsel %vm1589_vm2, %v2388_v3, 0 }
 0x8da   : > { %v5512_v54 = vpop.eup %5511 }
 0x8db   : > { %v2230_v57 = vsel %vm1589_vm2, %v5512_v54, 0.0 }
 0x901   : > { %v2061_v48 = vpop.f32.mrb[20].mxu1 }
 0x902   : > { %v7063_v49 = vadd.f32 %v2108_v29, %v2061_v48  ;;  %v5003_v22 = vpop.f32.mrb[21].mxu1  ;;  %v2438_v29 = vpop.permute.xlu1 %2437 }
 0x903   : > { %v2064_v50 = vpop.f32.mrb[22].mxu1  ;;  %v2443_v36 = vsel %vm1589_vm2, %v2438_v29, 0 }
 0x904   : > { %v7065_v51 = vadd.f32 %v2111_v33, %v2064_v50  ;;  %v5004_v27 = vpop.f32.mrb[23].mxu1 }
 0x906   : > { %v2436_v38 = vpop.permute.xlu1 %2435 }
 0x909   : > { %v2159_v52 = vpop.f32.mrb[24].mxu1 }
 0x90a   : > { %v5015_v34 = vpop.f32.mrb[25].mxu1  ;;  %v2215_v53 = vsel %vm1589_vm2, %v2159_v52, -inf }
 0x90b   : > { %2216 = vmax.xlane.f32.xlu0 %v2215_v53  ;;  %v2162_v55 = vpop.f32.mrb[26].mxu1 }
 0x90c   : > { %v5016_v56 = vpop.f32.mrb[27].mxu1 }
 0x90f   : > { %2231 = vadd.xlane.f32.xlu0 %v2230_v57 }
 0x998   : > { %v2217_v58 = vpop.xlane.xlu0 %2216 }
 0x999   : > { %v2221_v59 = vsub.f32 %v2159_v52, %v2217_v58 }
 0x99b   : > { %v2223_v60 = vmul.f32 1.442695, %v2221_v59 }
 0x99c   : > { %v2232_v61 = vpop.xlane.xlu0 %2231 }
 0x99d   : > { %5513 = vpow2.f32 %v2223_v60 }
 0x99e   : > { %5515 = vrcp.f32 %v2232_v61 }
 0x9a7   : > { %v5514_v62 = vpop.eup %5513 }
 0x9a8   : > { %v5516_v63 = vpop.eup %5515  ;;  %v2227_v1 = vsel %vm1589_vm2, %v5514_v62, 0.0 }
 0x9a9   : > { %v2236_v2 = vmul.f32 %v5516_v63, %v5512_v54  ;;  %2228 = vadd.xlane.f32.xlu0 %v2227_v1 }
 0x9ab   : > { %v2238_v8 = vpack.c.bf16 %v2236_v2, %v2236_v2 }
 0x9ad   : > { %5032 = vmatmul.mubr.msk.bf16.vlgmr.msra.gmra.mrb[32].mxu0 %vm1589_vm2, %v2238_v8 }
 0x9ae   : > { %5042 = vmatpush3.bf16.xpose.msra.mxu0 %v2393_v9  ;;  %5043 = vmatprep.mubr.msk.bf16.mxu0 %vm6246_vm0, %v6245_v0 }
 0x9af   : > { %5053 = vmatprep.subr.bf16.mxu0 %v6245_v0 }
 0x9bf   : > { %2239 = vrot.lane.b32.xlu0 %v6961_v42, %s6248_s28 }
 0x9c3   : > { %2385 = vrot.lane.b32.xlu0 %v6948_v32, %s6249_s13 }
 0xa36   : > { %v2229_v10 = vpop.xlane.xlu0 %2228 }
 0xa37   : > { %5517 = vrcp.f32 %v2229_v10  ;;  %v1588_v10 = vld [vmem:[#allocation17 + $0xc] sm:$0xf] }
 0xa3a   : > { %v2240_v11 = vpop.permute.xlu0 %2239 }
 0xa3b   : > { %v2245_v12 = vsel %vm1709_vm3, %v2240_v11, 0  ;;  %v2610_v11 = vsel %vm1709_vm3, %v1588_v10, 0 }
 0xa3c   : > { %5024 = vmatpush3.bf16.msra.mxu1 %v2245_v12 }
 0xa3d   : > { %5035 = vmatprep.subr.bf16.mxu1 %v6245_v0 }
 0xa3e   : > { %v2386_v13 = vpop.permute.xlu0 %2385 }
 0xa3f   : > { %5044 = vmatmul.mubr.msk.bf16.vlgmr.msra.gmra.mrb[36].mxu0 %vm1589_vm2, %v2386_v13 }
 0xa40   : > { %5055 = vmatprep.mubr.msk.bf16.mxu0 %vm6246_vm0, %v6245_v0 }
 0xa41   : > { %v5518_v14 = vpop.eup %5517 }
 0xa42   : > { %v2235_v15 = vmul.f32 %v5518_v14, %v5514_v62 }
 0xa44   : > { %v2237_v16 = vpack.c.bf16 %v2235_v15, %v2235_v15 }
 0xa46   : > { %5026 = vmatmul.mubr.msk.bf16.vlgmr.msra.gmra.mrb[28].mxu1 %vm1589_vm2, %v2237_v16 }
 0xa47   : > { %5037 = vmatprep.mubr.msk.bf16.mxu1 %vm6246_vm0, %v6245_v0  ;;  %5036 = vmatpush3.bf16.msra.mxu1 %v2340_v21  ;;  %v4741_v21 = vld [vmem:[#allocation19] ss:$0 sm:$0xff] }
 0xa48   : > { %5047 = vmatprep.subr.bf16.mxu1 %v6245_v0 }
 0xa80   : > { %v2329_v32 = vpop.f32.mrb[32].mxu0 }
 0xa81   : > { %v5033_v17 = vpop.f32.mrb[33].mxu0 }
 0xa82   : > { %v2332_v18 = vpop.f32.mrb[34].mxu0 }
 0xa83   : > { %v5034_v19 = vpop.f32.mrb[35].mxu0 }
 0xb12   : > { %v2429_v23 = vpop.f32.mrb[36].mxu0 }
 0xb13   : > { %v5045_v24 = vpop.f32.mrb[37].mxu0  ;;  %v2485_v25 = vsel %vm1589_vm2, %v2429_v23, -inf }
 0xb14   : > { %2486 = vmax.xlane.f32.xlu0 %v2485_v25  ;;  %v2432_v26 = vpop.f32.mrb[38].mxu0 }
 0xb15   : > { %v5046_v28 = vpop.f32.mrb[39].mxu0 }
 0xb19   : > { %v2281_v30 = vpop.f32.mrb[28].mxu1 }
 0xb1a   : > { %v2335_v31 = vpack.c.bf16 %v2329_v32, %v2281_v30  ;;  %v5027_v33 = vpop.f32.mrb[29].mxu1 }
 0xb1b   : > { %v2284_v35 = vpop.f32.mrb[30].mxu1 }
 0xb1c   : > { %v5028_v37 = vpop.f32.mrb[31].mxu1  ;;  %5038 = vmatmul.mubr.msk.bf16.vlgmr.msra.gmra.mrb[32].mxu1 %vm1589_vm2, %v2335_v31 }
 0xb1d   : > { %5048 = vmatpush3.bf16.xpose.msra.mxu1 %v2443_v36  ;;  %5049 = vmatprep.mubr.msk.bf16.mxu1 %vm6246_vm0, %v6245_v0 }
 0xb1e   : > { %5059 = vmatprep.subr.bf16.mxu1 %v6245_v0 }
 0xb24   : > { %5050 = vmatmul.mubr.msk.bf16.vlgmr.msra.gmra.mrb[36].mxu1 %vm1589_vm2, %v2436_v38 }
 0xb25   : > { %5061 = vmatprep.mubr.msk.bf16.mxu1 %vm6246_vm0, %v6245_v0 }
 0xba1   : > { %v2487_v39 = vpop.xlane.xlu0 %2486 }
 0xba2   : > { %v2491_v40 = vsub.f32 %v2429_v23, %v2487_v39  ;;  %v5483_v39 = vld [vmem:[%s7579_s15] sm:$0xff]  }
 0xba4   : > { %v2493_v41 = vmul.f32 1.442695, %v2491_v40  ;;  %v5484_v40 = vld [vmem:[%s7579_s15 + $0x8] sm:$0xff]  }
 0xba6   : > { %5519 = vpow2.f32 %v2493_v41  ;;  %v2715_v41 = vld [vmem:[%s6839_s6] sm:$0xff] }
 0xbb0   : > { %v5520_v44 = vpop.eup %5519 }
 0xbb1   : > { %v2497_v45 = vsel %vm1589_vm2, %v5520_v44, 0.0 }
 0xbb2   : > { %2498 = vadd.xlane.f32.xlu0 %v2497_v45  ;;  %v2719_v45 = vld [vmem:[%s6857_s29] sm:$0xff] }
 0xbef   : > { %v2376_v46 = vpop.f32.mrb[32].mxu1 }
 0xbf0   : > { %v2383_v47 = vadd.f32 %v2376_v46, %v7063_v49  ;;  %v5039_v48 = vpop.f32.mrb[33].mxu1  ;;  %v2720_v46 = vld [vmem:[%s6857_s29 + $0x8] sm:$0xff] }
 0xbf1   : > { %v2379_v22 = vpop.f32.mrb[34].mxu1  ;;  %v2731_v48 = vadd.f32 %v2719_v45, %v2715_v41 }
 0xbf2   : > { %v2384_v50 = vadd.f32 %v2379_v22, %v7065_v51  ;;  %v5040_v27 = vpop.f32.mrb[35].mxu1 }
 0xbf3   : > { %v2721_v27 = vld [vmem:[%s6857_s29 + $0x10] sm:$0xff] }
 0xbf7   : > { %v2479_v52 = vpop.f32.mrb[36].mxu1 }
 0xbf8   : > { %v5051_v34 = vpop.f32.mrb[37].mxu1  ;;  %v2488_v53 = vsel %vm1589_vm2, %v2479_v52, -inf }
 0xbf9   : > { %2489 = vmax.xlane.f32.xlu1 %v2488_v53  ;;  %v2482_v54 = vpop.f32.mrb[38].mxu1 }
 0xbfa   : > { %v5052_v55 = vpop.f32.mrb[39].mxu1 }
 0xc0a   : > { %2557 = vrot.lane.b32.xlu1 %v6963_v43, %s6249_s13 }
 0xc3f   : > { %v2499_v61 = vpop.xlane.xlu0 %2498 }
 0xc86   : > { %v2490_v56 = vpop.xlane.xlu1 %2489 }
 0xc87   : > { %v2492_v57 = vsub.f32 %v2479_v52, %v2490_v56  ;;  %v2722_v52 = vld [vmem:[%s6857_s29 + $0x18] sm:$0xff]  ;;  %v5485_v56 = vld [vmem:[%s7580_s16] sm:$0xff]   ;;  %s7584_s29 = sld [smem:[#allocation64_spill]] }
 0xc89   : > { %v2495_v58 = vmul.f32 1.442695, %v2492_v57  ;;  %v5486_v57 = vld [vmem:[%s7580_s16 + $0x8] sm:$0xff]  }
 0xc8a   : > { %v2558_v59 = vpop.permute.xlu1 %2557 }
 0xc8b   : > { %5521 = vpow2.f32 %v2495_v58  ;;  %v2563_v49 = vsel %vm1709_vm3, %v2558_v59, 0  ;;  %v5487_v58 = vld [vmem:[#allocation25] sm:$0xff]  }
 0xc8c   : > { %5060 = vmatpush3.bf16.msra.mxu1 %v2563_v49  ;;  %5523 = vrcp.f32 %v2499_v61 }
 0xc8d   : > { %5071 = vmatprep.subr.bf16.mxu1 %v6245_v0 }
 0xc95   : > { %v5522_v51 = vpop.eup %5521 }
 0xc96   : > { %v2500_v60 = vsel %vm1589_vm2, %v5522_v51, 0.0  ;;  %v5524_v43 = vpop.eup %5523 }
 0xc97   : > { %2501 = vadd.xlane.f32.xlu0 %v2500_v60  ;;  %v2505_v63 = vmul.f32 %v5524_v43, %v5520_v44  ;;  %v2716_v44 = vld [vmem:[%s6839_s6 + $0x8] sm:$0xff] }
 0xc98   : > { %v2732_v22 = vadd.f32 %v2720_v46, %v2716_v44  ;;  %v4744_v46 = vld [vmem:[#allocation23] ss:$0 sm:$0xff] }
 0xc99   : > { %v2507_v3 = vpack.c.bf16 %v2505_v63, %v2505_v63 }
 0xc9a   : > { %v2803_v54 = vpack.c.bf16 %v2732_v22, %v2731_v48 }
 0xcad   : > { %2509 = vrot.lane.b32.xlu0 %v6961_v42, %s6249_s13 }
 0xd24   : > { %v2502_v62 = vpop.xlane.xlu0 %2501 }
 0xd25   : > { %5525 = vrcp.f32 %v2502_v62 }
 0xd28   : > { %v2510_v1 = vpop.permute.xlu0 %2509 }
 0xd29   : > { %v2515_v2 = vsel %vm1709_vm3, %v2510_v1, 0 }
 0xd2a   : > { %5054 = vmatpush3.bf16.msra.mxu0 %v2515_v2 }
 0xd2b   : > { %5065 = vmatprep.subr.bf16.mxu0 %v6245_v0 }
 0xd2d   : > { %5056 = vmatmul.mubr.msk.bf16.vlgmr.msra.gmra.mrb[40].mxu0 %vm1589_vm2, %v2507_v3 }
 0xd2e   : > { %5067 = vmatprep.mubr.msk.bf16.mxu0 %vm6246_vm0, %v6245_v0  ;;  %5066 = vmatpush3.bf16.msra.mxu0 %v2610_v11 }
 0xd2f   : > { %v5526_v8 = vpop.eup %5525  ;;  %5079 = vmatprep.subr.bf16.mxu0 %v5483_v39 }
 0xd30   : > { %v2506_v42 = vmul.f32 %v5526_v8, %v5522_v51 }
 0xd32   : > { %v2508_v9 = vpack.c.bf16 %v2506_v42, %v2506_v42 }
 0xd34   : > { %5062 = vmatmul.mubr.msk.bf16.vlgmr.msra.gmra.mrb[40].mxu1 %vm1589_vm2, %v2508_v9 }
 0xd35   : > { %5075 = vmatprep.mubr.msk.bf16.mxu1 %vm6246_vm0, %v6245_v0  ;;  %5072 = vmatpush3.bf16.msra.mxu1 %v5485_v56 }
 0xd36   : > { %5073 = vmatprep.subr.bf16.mxu1 %v6245_v0 }
 0xd39   : > { %5074 = vmatpush3.bf16.msra.mxu1 %v5486_v57 }
 0xd3a   : > { %5087 = vmatprep.subr.bf16.mxu1 %v5487_v58 }
 0xe00   : > { %v2551_v12 = vpop.f32.mrb[40].mxu0 }
 0xe01   : > { %v5057_v13 = vpop.f32.mrb[41].mxu0 }
 0xe02   : > { %v2554_v14 = vpop.f32.mrb[42].mxu0 }
 0xe03   : > { %v5058_v15 = vpop.f32.mrb[43].mxu0 }
 0xe07   : > { %v2599_v16 = vpop.f32.mrb[40].mxu1 }
 0xe08   : > { %v2605_v32 = vpack.c.bf16 %v2599_v16, %v2551_v12  ;;  %v5063_v17 = vpop.f32.mrb[41].mxu1  ;;  %v4742_v12 = vld [vmem:[#allocation20] ss:$0 sm:$0xff]  ;;  %v4743_v16 = vld [vmem:[#allocation22] ss:$0 sm:$0xff] }
 0xe09   : > { %v2602_v18 = vpop.f32.mrb[42].mxu1 }
 0xe0a   : > { %v5064_v19 = vpop.f32.mrb[43].mxu1  ;;  %5068 = vmatmul.mubr.msk.bf16.vlgmr.msra.gmra.mrb[44].mxu0 %vm1589_vm2, %v2605_v32 }
 0xe0b   : > { %5080 = vmatpush3.bf16.msra.mxu0 %v5483_v39  ;;  %5083 = vmatprep.mubr.msk.bf16.mxu0 %vm1390_vm1, %v2803_v54 }
 0xe0c   : > { %5081 = vmatprep.subr.bf16.mxu0 %v5484_v40 }
 0xe0f   : > { %5082 = vmatpush3.bf16.msra.mxu0 %v5484_v40 }
 0xe10   : > { %5095 = vmatprep.subr.bf16.mxu0 %v6245_v0 }
 0xedd   : > { %v2646_v20 = vpop.f32.mrb[44].mxu0 }
 0xede   : > { %v2653_v23 = vadd.f32 %v2646_v20, %v2383_v47  ;;  %v5069_v24 = vpop.f32.mrb[45].mxu0  ;;  %v2717_v47 = vld [vmem:[%s6839_s6 + $0x10] sm:$0xff] }
 0xedf   : > { %v2649_v25 = vpop.f32.mrb[46].mxu0  ;;  %v2733_v34 = vadd.f32 %v2721_v27, %v2717_v47 }
 0xee0   : > { %v2662_v26 = vadd.f32 %v4741_v21, %v2653_v23  ;;  %v2654_v28 = vadd.f32 %v2649_v25, %v2384_v50  ;;  %v5070_v29 = vpop.f32.mrb[47].mxu0  ;;  %v2718_v50 = vld [vmem:[%s6839_s6 + $0x18] sm:$0xff]  ;;  %v2724_v23 = vld [vmem:[%s6846_s3 + $0x8] sm:$0xff]  ;;  %s7581_s6 = sld [smem:[#allocation59_spill]] }
 0xee1   : > { %v2734_v53 = vadd.f32 %v2722_v52, %v2718_v50  ;;  %v5488_v29 = vld [vmem:[#allocation25 + $0x8] sm:$0xff]  }
 0xee2   : > { %v7120_v30 = vadd.f32 %v2662_v26, %v6904_v4  ;;  %v2663_v31 = vadd.f32 %v4741_v21, %v2654_v28  ;;  %v2723_v21 = vld [vmem:[%s6846_s3] sm:$0xff] }
 0xee3   : > { %v2804_v55 = vpack.c.bf16 %v2734_v53, %v2733_v34  ;;  %v2883_v26 = vpack.c.bf16 %v2724_v23, %v2723_v21 }
 0xee4   : > { %v7123_v33 = vadd.f32 %v2663_v31, %v6906_v5  ;;  %v2668_v35 = vsel %vm1390_vm1, %v7120_v30, 0.0  ;;  %v2677_v37 = vmul.f32 %v7120_v30, %v7120_v30  ;;  %v2726_v31 = vld [vmem:[%s6846_s3 + $0x18] sm:$0xff] }
 0xee5   : > { %2669 = vadd.xlane.f32.xlu1 %v2668_v35  ;;  %5084 = vmatmul.mubr.msk.bf16.vlgmr.msra.gmra.mrb[48].mxu0 %vm1390_vm1, %v2804_v55 }
 0xee6   : > { %v2671_v36 = vsel %vm1390_vm1, %v7123_v33, 0.0  ;;  %v2678_v4 = vmul.f32 %v7123_v33, %v7123_v33  ;;  %v2679_v38 = vsel %vm1390_vm1, %v2677_v37, 0.0  ;;  %5097 = vmatprep.mubr.msk.bf16.mxu0 %vm6246_vm0, %v6245_v0 }
 0xee7   : > { %2672 = vadd.xlane.f32.xlu0 %v2671_v36 }
 0xee8   : > { %v2682_v5 = vsel %vm1390_vm1, %v2678_v4, 0.0 }
 0xee9   : > { %2683 = vadd.xlane.f32.xlu1 %v2682_v5 }
 0xeeb   : > { %2680 = vadd.xlane.f32.xlu0 %v2679_v38 }
 0xf72   : > { %v2670_v59 = vpop.xlane.xlu1 %2669 }
 0xf73   : > { %v2675_v51 = vmul.f32 0.03125, %v2670_v59 }
 0xf74   : > { %v2673_v49 = vpop.xlane.xlu0 %2672 }
 0xf75   : > { %v2676_v60 = vmul.f32 0.03125, %v2673_v49  ;;  %v2687_v1 = vmul.f32 %v2675_v51, %v2675_v51  ;;  %v2691_v13 = vsub.f32 %v7120_v30, %v2675_v51  ;;  %v2725_v30 = vld [vmem:[%s6846_s3 + $0x10] sm:$0xff]  ;;  %s7582_s3 = sld [smem:[#allocation60_spill]] }
 0xf76   : > { %v2684_v61 = vpop.xlane.xlu1 %2683 }
 0xf77   : > { %v2688_v43 = vmul.f32 %v2676_v60, %v2676_v60  ;;  %v2686_v62 = vmul.f32 0.03125, %v2684_v61  ;;  %v2692_v10 = vsub.f32 %v7123_v33, %v2676_v60  ;;  %v2884_v33 = vpack.c.bf16 %v2726_v31, %v2725_v30 }
 0xf78   : > { %v2681_v63 = vpop.xlane.xlu0 %2680 }
 0xf79   : > { %v2690_v2 = vsub.f32 %v2686_v62, %v2688_v43  ;;  %v2685_v3 = vmul.f32 0.03125, %v2681_v63  ;;  %v7206_v62 = vld [vmem:[%s6864_s14] ss:$0 sm:$0xff] }
 0xf7b   : > { %v2694_v8 = vadd.f32 1e-05, %v2690_v2  ;;  %v2689_v42 = vsub.f32 %v2685_v3, %v2687_v1  ;;  %v4753_v54 = vld [vmem:[%s7582_s3] ss:$0 sm:$0xff]  ;;  %v7209_v1 = vld [vmem:[%s6864_s14 + $0x1] ss:$0 sm:$0xff] }
 0xf7c   : > { %s7586_s14 = sld [smem:[#allocation65_spill]] }
 0xf7d   : > { %5527 = vrsqrt.f32 %v2694_v8  ;;  %v2693_v9 = vadd.f32 1e-05, %v2689_v42 }
 0xf7f   : > { %5529 = vrsqrt.f32 %v2693_v9 }
 0xf87   : > { %v5528_v11 = vpop.eup %5527 }
 0xf88   : > { %v2698_v14 = vmul.f32 %v5528_v11, %v2692_v10 }
 0xf89   : > { %v5530_v15 = vpop.eup %5529 }
 0xf8a   : > { %v2706_v32 = vmul.f32 %v4742_v12, %v2698_v14  ;;  %v2697_v17 = vmul.f32 %v5530_v15, %v2691_v13 }
 0xf8c   : > { %v2705_v18 = vmul.f32 %v4742_v12, %v2697_v17  ;;  %v7155_v19 = vadd.f32 %v4743_v16, %v2706_v32 }
 0xf8e   : > { %v7157_v20 = vadd.f32 %v4743_v16, %v2705_v18  ;;  %v2730_v25 = vadd.f32 %v7155_v19, %v6912_v7 }
 0xf90   : > { %v2729_v24 = vadd.f32 %v7157_v20, %v6909_v6  ;;  %v4748_v6 = vld [vmem:[%s7581_s6] ss:$0 sm:$0xff] }
 0xf92   : > { %v2735_v28 = vpack.c.bf16 %v2730_v25, %v2729_v24 }
 0xf94   : > { %5076 = vmatmul.mubr.msk.bf16.vlgmr.msra.gmra.mrb[44].mxu1 %vm1390_vm1, %v2735_v28 }
 0xf95   : > { %5088 = vmatpush3.bf16.msra.mxu1 %v5487_v58  ;;  %5091 = vmatprep.mubr.msk.bf16.mxu1 %vm1390_vm1, %v2883_v26 }
 0xf96   : > { %5089 = vmatprep.subr.bf16.mxu1 %v5488_v29 }
 0xf99   : > { %5090 = vmatpush3.bf16.msra.mxu1 %v5488_v29 }
 0xf9a   : > { %5101 = vmatprep.subr.bf16.mxu1 %v6245_v0 }
 0xf9c   : > { %5092 = vmatmul.mubr.msk.bf16.vlgmr.msra.gmra.mrb[48].mxu1 %vm1390_vm1, %v2884_v33 }
 0xf9d   : > { %5103 = vmatprep.mubr.msk.bf16.mxu1 %vm6246_vm0, %v6245_v0 }
 0xfb8   : > { %v5085_v7 = vpop.f32.mrb[48].mxu0 }
 0xfb9   : > { %v2877_v35 = vadd.f32 %v5085_v7, %v4748_v6  ;;  %v2868_v36 = vpop.f32.mrb[49].mxu0 }
 0xfba   : > { %v2869_v4 = vadd.f32 %v4748_v6, %v2868_v36  ;;  %v5086_v37 = vpop.f32.mrb[50].mxu0 }
 0xfbb   : > { %v2880_v5 = vadd.f32 %v5086_v37, %v4748_v6  ;;  %v2871_v38 = vpop.f32.mrb[51].mxu0 }
 0xfbc   : > { %v2872_v39 = vadd.f32 %v4748_v6, %v2871_v38 }
 0xfbd   : > { %v7174_v40 = vpack.c.bf16 %v2880_v5, %v2877_v35 }
 0xfbe   : > { %v7176_v41 = vpack.c.bf16 %v2872_v39, %v2869_v4 }
 0xfbf   : > { %v3039_v44 = vsel %vm1589_vm2, %v7174_v40, 0 }
 0xfc0   : > { %v2993_v45 = vsel %vm1589_vm2, %v7176_v41, 0  ;;  %5102 = vmatpush3.bf16.xpose.msra.mxu1 %v3039_v44 }
 0xfc1   : > { %5096 = vmatpush3.bf16.xpose.msra.mxu0 %v2993_v45  ;;  %5113 = vmatprep.subr.bf16.mxu1 %v6245_v0 }
 0xfc2   : > { %5107 = vmatprep.subr.bf16.mxu0 %v6245_v0 }
0x1067   : > { %v2796_v47 = vpop.f32.mrb[44].mxu1 }
0x1068   : > { %v2797_v48 = vadd.f32 %v4744_v46, %v2796_v47  ;;  %v5077_v22 = vpop.f32.mrb[45].mxu1 }
0x1069   : > { %v2799_v50 = vpop.f32.mrb[46].mxu1 }
0x106a   : > { %v7184_v27 = vpack.c.bf16 %v2797_v48, %v2797_v48  ;;  %v2800_v52 = vadd.f32 %v4744_v46, %v2799_v50  ;;  %v5078_v34 = vpop.f32.mrb[47].mxu1 }
0x106c   : > { %v7186_v53 = vpack.c.bf16 %v2800_v52, %v2800_v52  ;;  %5098 = vmatmul.mubr.msk.bf16.vlgmr.msra.gmra.mrb[52].mxu0 %vm1589_vm2, %v7184_v27 }
0x106d   : > { %5109 = vmatprep.mubr.msk.bf16.mxu0 %vm6246_vm0, %v6245_v0 }
0x106e   : > { %5104 = vmatmul.mubr.msk.bf16.vlgmr.msra.gmra.mrb[52].mxu1 %vm1589_vm2, %v7186_v53 }
0x106f   : > { %v5093_v55 = vpop.f32.mrb[48].mxu1  ;;  %5115 = vmatprep.mubr.msk.bf16.mxu1 %vm6246_vm0, %v6245_v0 }
0x1070   : > { %v2957_v56 = vadd.f32 %v5093_v55, %v4753_v54  ;;  %v2948_v57 = vpop.f32.mrb[49].mxu1 }
0x1071   : > { %v2949_v58 = vadd.f32 %v4753_v54, %v2948_v57  ;;  %v5094_v59 = vpop.f32.mrb[50].mxu1 }
0x1072   : > { %v2960_v49 = vadd.f32 %v5094_v59, %v4753_v54  ;;  %v2951_v51 = vpop.f32.mrb[51].mxu1 }
0x1073   : > { %v2952_v60 = vadd.f32 %v4753_v54, %v2951_v51 }
0x1074   : > { %v7197_v61 = vpack.c.bf16 %v2960_v49, %v2957_v56 }
0x1075   : > { %v7199_v43 = vpack.c.bf16 %v2952_v60, %v2949_v58 }
0x1076   : > { %5114 = vmatpush3.bf16.msra.mxu1 %v7197_v61 }
0x1077   : > { %5108 = vmatpush3.bf16.msra.mxu0 %v7199_v43  ;;  %5125 = vmatprep.subr.bf16.mxu1 %v6245_v0 }
0x1078   : > { %5119 = vmatprep.subr.bf16.mxu0 %v6245_v0 }
0x113f   : > { %v3029_v63 = vpop.f32.mrb[52].mxu0 }
0x1140   : > { %v3030_v2 = vadd.f32 %v7206_v62, %v3029_v63  ;;  %v5099_v3 = vpop.f32.mrb[53].mxu0 }
0x1141   : > { %v3032_v8 = vpop.f32.mrb[54].mxu0  ;;  %v3075_v42 = vpop.f32.mrb[52].mxu1 }
0x1142   : > { %v3076_v9 = vadd.f32 %v7209_v1, %v3075_v42  ;;  %v5100_v10 = vpop.f32.mrb[55].mxu0  ;;  %v5105_v11 = vpop.f32.mrb[53].mxu1  ;;  %v3082_v12 = vsel %vm3081_vm4, %v3030_v2, -inf }
0x1143   : > { %v3078_v13 = vpop.f32.mrb[54].mxu1  ;;  %3083 = vmax.xlane.f32.xlu0 %v3082_v12 }
0x1144   : > { %v5106_v14 = vpop.f32.mrb[55].mxu1  ;;  %v3085_v15 = vsel %vm3081_vm4, %v3076_v9, -inf }
0x1145   : > { %3086 = vmax.xlane.f32.xlu1 %v3085_v15 }
0x1156   : > { %3247 = vrot.lane.b32.xlu1 %v7174_v40, %s6247_s10 }
0x11d0   : > { %v3084_v16 = vpop.xlane.xlu0 %3083 }
0x11d1   : > { %v3088_v32 = vsub.f32 %v3030_v2, %v3084_v16 }
0x11d2   : > { %v3087_v17 = vpop.xlane.xlu1 %3086 }
0x11d3   : > { %v3090_v18 = vmul.f32 1.442695, %v3088_v32  ;;  %v3089_v21 = vsub.f32 %v3076_v9, %v3087_v17 }
0x11d5   : > { %5531 = vpow2.f32 %v3090_v18  ;;  %v3092_v23 = vmul.f32 1.442695, %v3089_v21 }
0x11d6   : > { %v3248_v29 = vpop.permute.xlu1 %3247 }
0x11d7   : > { %5533 = vpow2.f32 %v3092_v23  ;;  %v3253_v38 = vsel %vm1589_vm2, %v3248_v29, 0 }
0x11df   : > { %v5532_v24 = vpop.eup %5531 }
0x11e0   : > { %v3094_v25 = vsel %vm3081_vm4, %v5532_v24, 0.0 }
0x11e1   : > { %v5534_v26 = vpop.eup %5533  ;;  %3095 = vadd.xlane.f32.xlu0 %v3094_v25  ;;  %v2974_v25 = vld [vmem:[%s7583_s9 + $0x4] sm:$0xf] }
0x11e2   : > { %v3097_v28 = vsel %vm3081_vm4, %v5534_v26, 0.0  ;;  %v3418_v29 = vsel %vm1709_vm3, %v2974_v25, 0 }
0x11e3   : > { %3098 = vadd.xlane.f32.xlu1 %v3097_v28 }
0x11f4   : > { %3193 = vrot.lane.b32.xlu1 %v7184_v27, %s6247_s10 }
0x11f7   : > { %3196 = vrot.lane.b32.xlu0 %v7176_v41, %s6247_s10 }
0x11f8   : > { %3244 = vrot.lane.b32.xlu1 %v7186_v53, %s6247_s10 }
0x126e   : > { %v3096_v30 = vpop.xlane.xlu0 %3095 }
0x126f   : > { %5535 = vrcp.f32 %v3096_v30 }
0x1270   : > { %v3099_v31 = vpop.xlane.xlu1 %3098 }
0x1271   : > { %5537 = vrcp.f32 %v3099_v31  ;;  %v2973_v31 = vld [vmem:[%s7583_s9] sm:$0xf] }
0x1272   : > { %v3197_v35 = vpop.permute.xlu0 %3196 }
0x1273   : > { %v3202_v37 = vsel %vm1589_vm2, %v3197_v35, 0 }
0x1274   : > { %v3194_v39 = vpop.permute.xlu1 %3193 }
0x1278   : > { %v3245_v44 = vpop.permute.xlu1 %3244 }
0x1279   : > { %v5536_v33 = vpop.eup %5535 }
0x127a   : > { %v3102_v6 = vmul.f32 %v5536_v33, %v5532_v24 }
0x127b   : > { %v5538_v7 = vpop.eup %5537 }
0x127c   : > { %v3103_v36 = vmul.f32 %v5538_v7, %v5534_v26  ;;  %v3104_v4 = vpack.c.bf16 %v3102_v6, %v3102_v6  ;;  %v3465_v7 = vsel %vm1709_vm3, %v2973_v31, 0 }
0x127e   : > { %5110 = vmatmul.mubr.msk.bf16.vlgmr.msra.gmra.mrb[56].mxu0 %vm3081_vm4, %v3104_v4  ;;  %v3105_v5 = vpack.c.bf16 %v3103_v36, %v3103_v36 }
0x127f   : > { %5120 = vmatpush3.bf16.xpose.msra.mxu0 %v3202_v37  ;;  %5121 = vmatprep.mubr.msk.bf16.mxu0 %vm6246_vm0, %v6245_v0 }
0x1280   : > { %5116 = vmatmul.mubr.msk.bf16.vlgmr.msra.gmra.mrb[56].mxu1 %vm3081_vm4, %v3105_v5  ;;  %5131 = vmatprep.subr.bf16.mxu0 %v6245_v0 }
0x1281   : > { %5126 = vmatpush3.bf16.xpose.msra.mxu1 %v3253_v38  ;;  %5127 = vmatprep.mubr.msk.bf16.mxu1 %vm6246_vm0, %v6245_v0 }
0x1282   : > { %5137 = vmatprep.subr.bf16.mxu1 %v6245_v0 }
0x1286   : > { %5122 = vmatmul.mubr.msk.bf16.vlgmr.msra.gmra.mrb[60].mxu0 %vm1589_vm2, %v3194_v39 }
0x1287   : > { %5133 = vmatprep.mubr.msk.bf16.mxu0 %vm6246_vm0, %v6245_v0 }
0x1288   : > { %5128 = vmatmul.mubr.msk.bf16.vlgmr.msra.gmra.mrb[60].mxu1 %vm1589_vm2, %v3245_v44 }
0x1289   : > { %5139 = vmatprep.mubr.msk.bf16.mxu1 %vm6246_vm0, %v6245_v0 }
0x1351   : > { %v7241_v45 = vpop.f32.mrb[56].mxu0 }
0x1352   : > { %v5111_v46 = vpop.f32.mrb[57].mxu0 }
0x1353   : > { %v3146_v47 = vpop.f32.mrb[58].mxu0  ;;  %v7243_v48 = vpop.f32.mrb[56].mxu1 }
0x1354   : > { %v3192_v22 = vpack.c.bf16 %v7243_v48, %v7241_v45  ;;  %v5112_v50 = vpop.f32.mrb[59].mxu0  ;;  %v5117_v52 = vpop.f32.mrb[57].mxu1 }
0x1355   : > { %v3189_v34 = vpop.f32.mrb[58].mxu1 }
0x1356   : > { %v5118_v54 = vpop.f32.mrb[59].mxu1 }
0x1359   : > { %v3238_v55 = vpop.f32.mrb[60].mxu0 }
0x135a   : > { %v3239_v56 = vadd.f32 %v7206_v62, %v3238_v55  ;;  %v5123_v57 = vpop.f32.mrb[61].mxu0 }
0x135b   : > { %v3241_v58 = vpop.f32.mrb[62].mxu0  ;;  %v3289_v59 = vpop.f32.mrb[60].mxu1 }
0x135c   : > { %v3290_v49 = vadd.f32 %v7209_v1, %v3289_v59  ;;  %v5124_v51 = vpop.f32.mrb[63].mxu0  ;;  %v5129_v60 = vpop.f32.mrb[61].mxu1  ;;  %v3295_v63 = vsel %vm3081_vm4, %v3239_v56, -inf }
0x135d   : > { %v3292_v2 = vpop.f32.mrb[62].mxu1  ;;  %3296 = vmax.xlane.f32.xlu0 %v3295_v63 }
0x135e   : > { %v5130_v3 = vpop.f32.mrb[63].mxu1  ;;  %v3298_v8 = vsel %vm3081_vm4, %v3290_v49, -inf }
0x135f   : > { %3299 = vmax.xlane.f32.xlu1 %v3298_v8 }
0x1370   : > { %3367 = vrot.lane.b32.xlu1 %v7197_v61, %s6247_s10 }
0x1374   : > { %3510 = vrot.lane.b32.xlu1 %v7176_v41, %s6248_s28 }
0x1378   : > { %3560 = vrot.lane.b32.xlu1 %v7174_v40, %s6248_s28 }
0x137c   : > { %3558 = vrot.lane.b32.xlu1 %v7186_v53, %s6248_s28 }
0x13ea   : > { %v3297_v42 = vpop.xlane.xlu0 %3296 }
0x13eb   : > { %v3301_v9 = vsub.f32 %v3239_v56, %v3297_v42 }
0x13ec   : > { %v3300_v10 = vpop.xlane.xlu1 %3299 }
0x13ed   : > { %v3303_v11 = vmul.f32 1.442695, %v3301_v9  ;;  %v3302_v12 = vsub.f32 %v3290_v49, %v3300_v10 }
0x13ef   : > { %5539 = vpow2.f32 %v3303_v11  ;;  %v3305_v13 = vmul.f32 1.442695, %v3302_v12 }
0x13f0   : > { %v3368_v14 = vpop.permute.xlu1 %3367 }
0x13f1   : > { %5541 = vpow2.f32 %v3305_v13  ;;  %5138 = vmatpush3.bf16.msra.mxu1 %v3368_v14 }
0x13f2   : > { %5149 = vmatprep.subr.bf16.mxu1 %v6245_v0 }
0x13f4   : > { %v3511_v35 = vpop.permute.xlu1 %3510 }
0x13f8   : > { %v3561_v36 = vpop.permute.xlu1 %3560 }
0x13f9   : > { %v5540_v15 = vpop.eup %5539  ;;  %v3566_v4 = vsel %vm1589_vm2, %v3561_v36, 0 }
0x13fa   : > { %v3307_v16 = vsel %vm3081_vm4, %v5540_v15, 0.0 }
0x13fb   : > { %v5542_v32 = vpop.eup %5541  ;;  %3308 = vadd.xlane.f32.xlu0 %v3307_v16 }
0x13fc   : > { %v3310_v17 = vsel %vm3081_vm4, %v5542_v32, 0.0  ;;  %v3559_v37 = vpop.permute.xlu1 %3558 }
0x13ff   : > { %3311 = vadd.xlane.f32.xlu0 %v3310_v17 }
0x1415   : > { %3320 = vrot.lane.b32.xlu0 %v7199_v43, %s6247_s10  ;;  %s7591_s10 = sld [smem:[#allocation75_spill]] }
0x1419   : > { %3508 = vrot.lane.b32.xlu0 %v7184_v27, %s6248_s28 }
0x141b   : > { %p7592_p2 = scmp.ne.s32.totalorder %s7591_s10, 0 }
0x1488   : > { %v3309_v18 = vpop.xlane.xlu0 %3308 }
0x1489   : > { %5543 = vrcp.f32 %v3309_v18 }
0x148c   : > { %v3312_v21 = vpop.xlane.xlu0 %3311 }
0x148d   : > { %5545 = vrcp.f32 %v3312_v21 }
0x1490   : > { %v3321_v23 = vpop.permute.xlu0 %3320 }
0x1491   : > { %5132 = vmatpush3.bf16.msra.mxu0 %v3321_v23 }
0x1492   : > { %5143 = vmatprep.subr.bf16.mxu0 %v6245_v0 }
0x1493   : > { %v5544_v24 = vpop.eup %5543 }
0x1494   : > { %v3315_v26 = vmul.f32 %v5544_v24, %v5540_v15  ;;  %v3509_v54 = vpop.permute.xlu0 %3508 }
0x1496   : > { %v3317_v28 = vpack.c.bf16 %v3315_v26, %v3315_v26 }
0x1497   : > { %v5546_v30 = vpop.eup %5545 }
0x1498   : > { %v3316_v33 = vmul.f32 %v5546_v30, %v5542_v32  ;;  %5134 = vmatmul.mubr.msk.bf16.vlgmr.msra.gmra.mrb[64].mxu0 %vm3081_vm4, %v3317_v28 }
0x1499   : > { %5144 = vmatpush3.bf16.msra.mxu0 %v3418_v29  ;;  %5145 = vmatprep.mubr.msk.bf16.mxu0 %vm6246_vm0, %v6245_v0 }
0x149a   : > { %v3318_v6 = vpack.c.bf16 %v3316_v33, %v3316_v33  ;;  %5155 = vmatprep.subr.bf16.mxu0 %v6245_v0 }
0x149c   : > { %5140 = vmatmul.mubr.msk.bf16.vlgmr.msra.gmra.mrb[64].mxu1 %vm3081_vm4, %v3318_v6 }
0x149d   : > { %5150 = vmatpush3.bf16.msra.mxu1 %v3465_v7  ;;  %5151 = vmatprep.mubr.msk.bf16.mxu1 %vm6246_vm0, %v6245_v0 }
0x149e   : > { %5161 = vmatprep.subr.bf16.mxu1 %v6245_v0 }
0x14a4   : > { %5152 = vmatmul.mubr.msk.bf16.vlgmr.msra.gmra.mrb[68].mxu1 %vm1589_vm2, %v3192_v22  ;;  %v3516_v22 = vsel %vm1589_vm2, %v3511_v35, 0 }
0x14a5   : > { %5163 = vmatprep.mubr.msk.bf16.mxu1 %vm6246_vm0, %v6245_v0 }
0x14a6   : > { %5162 = vmatpush3.bf16.xpose.msra.mxu1 %v3566_v4 }
0x14a7   : > { %5173 = vmatprep.subr.bf16.mxu1 %v6245_v0 }
0x14ad   : > { %5164 = vmatmul.mubr.msk.bf16.vlgmr.msra.gmra.mrb[72].mxu1 %vm1589_vm2, %v3559_v37 }
0x14ae   : > { %5175 = vmatprep.mubr.msk.bf16.mxu1 %vm6246_vm0, %v6245_v0 }
0x156b   : > { %v3360_v5 = vpop.f32.mrb[64].mxu0 }
0x156c   : > { %v5135_v38 = vpop.f32.mrb[65].mxu0 }
0x156d   : > { %v3363_v39 = vpop.f32.mrb[66].mxu0 }
0x156e   : > { %v5136_v44 = vpop.f32.mrb[67].mxu0 }
0x156f   : > { %v3407_v45 = vpop.f32.mrb[64].mxu1  ;;  %v2975_v44 = vld [vmem:[%s7583_s9 + $0x8] sm:$0xf] }
0x1570   : > { %v3413_v46 = vpack.c.bf16 %v3407_v45, %v3360_v5  ;;  %v5141_v47 = vpop.f32.mrb[65].mxu1  ;;  %v3729_v45 = vsel %vm1709_vm3, %v2975_v44, 0 }
0x1571   : > { %v3410_v48 = vpop.f32.mrb[66].mxu1 }
0x1572   : > { %v5142_v50 = vpop.f32.mrb[67].mxu1  ;;  %5146 = vmatmul.mubr.msk.bf16.vlgmr.msra.gmra.mrb[68].mxu0 %vm1589_vm2, %v3413_v46 }
0x1573   : > { %5156 = vmatpush3.bf16.xpose.msra.mxu0 %v3516_v22  ;;  %5157 = vmatprep.mubr.msk.bf16.mxu0 %vm6246_vm0, %v6245_v0 }
0x1574   : > { %5167 = vmatprep.subr.bf16.mxu0 %v6245_v0 }
0x1577   : > { %v3501_v52 = vpop.f32.mrb[68].mxu1 }
0x1578   : > { %v5153_v34 = vpop.f32.mrb[69].mxu1 }
0x1579   : > { %v3504_v55 = vpop.f32.mrb[70].mxu1 }
0x157a   : > { %v5154_v56 = vpop.f32.mrb[71].mxu1  ;;  %5158 = vmatmul.mubr.msk.bf16.vlgmr.msra.gmra.mrb[72].mxu0 %vm1589_vm2, %v3509_v54 }
0x157b   : > { %5169 = vmatprep.mubr.msk.bf16.mxu0 %vm6246_vm0, %v6245_v0 }
0x1580   : > { %v3602_v57 = vpop.f32.mrb[72].mxu1 }
0x1581   : > { %v3603_v58 = vadd.f32 %v7209_v1, %v3602_v57  ;;  %v5165_v59 = vpop.f32.mrb[73].mxu1 }
0x1582   : > { %v3605_v49 = vpop.f32.mrb[74].mxu1 }
0x1583   : > { %v5166_v51 = vpop.f32.mrb[75].mxu1  ;;  %v3611_v60 = vsel %vm3081_vm4, %v3603_v58, -inf }
0x1584   : > { %3612 = vmax.xlane.f32.xlu1 %v3611_v60 }
0x1595   : > { %3678 = vrot.lane.b32.xlu1 %v7197_v61, %s6248_s28 }
0x1599   : > { %3776 = vrot.lane.b32.xlu1 %v7176_v41, %s6249_s13 }
0x159d   : > { %3826 = vrot.lane.b32.xlu1 %v7174_v40, %s6249_s13 }
0x15a1   : > { %3824 = vrot.lane.b32.xlu1 %v7186_v53, %s6249_s13 }
0x1611   : > { %v3613_v63 = vpop.xlane.xlu1 %3612 }
0x1612   : > { %v3615_v3 = vsub.f32 %v3603_v58, %v3613_v63 }
0x1614   : > { %v3618_v8 = vmul.f32 1.442695, %v3615_v3 }
0x1615   : > { %v3679_v2 = vpop.permute.xlu1 %3678 }
0x1616   : > { %5174 = vmatpush3.bf16.msra.mxu1 %v3679_v2  ;;  %5547 = vpow2.f32 %v3618_v8 }
0x1617   : > { %5185 = vmatprep.subr.bf16.mxu1 %v6245_v0 }
0x1619   : > { %v3777_v30 = vpop.permute.xlu1 %3776 }
0x161a   : > { %v3782_v33 = vsel %vm1589_vm2, %v3777_v30, 0  ;;  %v2976_v30 = vld [vmem:[%s7583_s9 + $0xc] sm:$0xf] }
0x161d   : > { %v3827_v34 = vpop.permute.xlu1 %3826 }
0x161e   : > { %v3832_v58 = vsel %vm1589_vm2, %v3827_v34, 0 }
0x1620   : > { %v5548_v32 = vpop.eup %5547 }
0x1621   : > { %v3623_v17 = vsel %vm3081_vm4, %v5548_v32, 0.0 }
0x1645   : > { %v3454_v42 = vpop.f32.mrb[68].mxu0 }
0x1646   : > { %v7309_v9 = vadd.f32 %v3501_v52, %v3454_v42  ;;  %v5147_v10 = vpop.f32.mrb[69].mxu0 }
0x1647   : > { %v3457_v11 = vpop.f32.mrb[70].mxu0 }
0x1648   : > { %v7311_v41 = vadd.f32 %v3504_v55, %v3457_v11  ;;  %v5148_v12 = vpop.f32.mrb[71].mxu0 }
0x164d   : > { %v3552_v40 = vpop.f32.mrb[72].mxu0 }
0x164e   : > { %v3553_v13 = vadd.f32 %v7206_v62, %v3552_v40  ;;  %v5159_v53 = vpop.f32.mrb[73].mxu0 }
0x164f   : > { %v3555_v14 = vpop.f32.mrb[74].mxu0 }
0x1650   : > { %v5160_v15 = vpop.f32.mrb[75].mxu0  ;;  %v3608_v16 = vsel %vm3081_vm4, %v3553_v13, -inf }
0x1651   : > { %3609 = vmax.xlane.f32.xlu0 %v3608_v16 }
0x1655   : > { %3624 = vadd.xlane.f32.xlu0 %v3623_v17 }
0x16de   : > { %v3610_v18 = vpop.xlane.xlu0 %3609 }
0x16df   : > { %v3614_v21 = vsub.f32 %v3553_v13, %v3610_v18 }
0x16e1   : > { %v3616_v23 = vmul.f32 1.442695, %v3614_v21 }
0x16e2   : > { %v3625_v24 = vpop.xlane.xlu0 %3624 }
0x16e3   : > { %5549 = vpow2.f32 %v3616_v23 }
0x16e4   : > { %5551 = vrcp.f32 %v3625_v24 }
0x16ed   : > { %v5550_v25 = vpop.eup %5549 }
0x16ee   : > { %v5552_v26 = vpop.eup %5551  ;;  %v3620_v28 = vsel %vm3081_vm4, %v5550_v25, 0.0 }
0x16ef   : > { %v3629_v29 = vmul.f32 %v5552_v26, %v5548_v32  ;;  %3621 = vadd.xlane.f32.xlu0 %v3620_v28 }
0x16f1   : > { %v3631_v31 = vpack.c.bf16 %v3629_v29, %v3629_v29 }
0x16f3   : > { %5176 = vmatmul.mubr.msk.bf16.vlgmr.msra.gmra.mrb[76].mxu1 %vm3081_vm4, %v3631_v31  ;;  %v3995_v31 = vsel %vm1709_vm3, %v2976_v30, 0 }
0x16f4   : > { %5186 = vmatpush3.bf16.xpose.msra.mxu1 %v3782_v33  ;;  %5187 = vmatprep.mubr.msk.bf16.mxu1 %vm6246_vm0, %v6245_v0 }
0x16f5   : > { %5197 = vmatprep.subr.bf16.mxu1 %v6245_v0 }
0x1705   : > { %3632 = vrot.lane.b32.xlu0 %v7199_v43, %s6248_s28  ;;  %s4818_s28 = sshll.u32 %s6444_s11, 8  ;;  %s6250_s11 = smov [#allocation31]  }
0x1706   : > { %s7399_s3 = scalar_lea.hbm %s7590_s18, %s4818_s28 }
0x1709   : > { %3774 = vrot.lane.b32.xlu0 %v7184_v27, %s6249_s13 }
0x177c   : > { %v3622_v6 = vpop.xlane.xlu0 %3621 }
0x177d   : > { %5553 = vrcp.f32 %v3622_v6 }
0x1780   : > { %v3633_v7 = vpop.permute.xlu0 %3632 }
0x1781   : > { %5168 = vmatpush3.bf16.msra.mxu0 %v3633_v7 }
0x1782   : > { %5179 = vmatprep.subr.bf16.mxu0 %v6245_v0 }
0x1784   : > { %v3775_v35 = vpop.permute.xlu0 %3774 }
0x1785   : > { %5188 = vmatmul.mubr.msk.bf16.vlgmr.msra.gmra.mrb[80].mxu1 %vm1589_vm2, %v3775_v35 }
0x1786   : > { %5199 = vmatprep.mubr.msk.bf16.mxu1 %vm6246_vm0, %v6245_v0 }
0x1787   : > { %v5554_v36 = vpop.eup %5553 }
0x1788   : > { %v3628_v4 = vmul.f32 %v5554_v36, %v5550_v25 }
0x178a   : > { %v3630_v37 = vpack.c.bf16 %v3628_v4, %v3628_v4 }
0x178c   : > { %5170 = vmatmul.mubr.msk.bf16.vlgmr.msra.gmra.mrb[76].mxu0 %vm3081_vm4, %v3630_v37 }
0x178d   : > { %5181 = vmatprep.mubr.msk.bf16.mxu0 %vm6246_vm0, %v6245_v0  ;;  %5180 = vmatpush3.bf16.msra.mxu0 %v3729_v45 }
0x178e   : > { %5191 = vmatprep.subr.bf16.mxu0 %v6245_v0 }
0x17c6   : > { %v3718_v27 = vpop.f32.mrb[76].mxu1 }
0x17c7   : > { %v5177_v5 = vpop.f32.mrb[77].mxu1 }
0x17c8   : > { %v3721_v38 = vpop.f32.mrb[78].mxu1 }
0x17c9   : > { %v5178_v39 = vpop.f32.mrb[79].mxu1 }
0x17ca   : > { %v4782_v39 = vld [vmem:[#allocation26] ss:$0 sm:$0xff] }
0x1858   : > { %v3818_v46 = vpop.f32.mrb[80].mxu1 }
0x1859   : > { %v3819_v47 = vadd.f32 %v7206_v62, %v3818_v46  ;;  %v5189_v48 = vpop.f32.mrb[81].mxu1  ;;  %v3825_v62 = vpop.permute.xlu1 %3824 }
0x185a   : > { %v3821_v22 = vpop.f32.mrb[82].mxu1 }
0x185b   : > { %v5190_v50 = vpop.f32.mrb[83].mxu1  ;;  %v3874_v52 = vsel %vm3081_vm4, %v3819_v47, -inf }
0x185c   : > { %3875 = vmax.xlane.f32.xlu0 %v3874_v52 }
0x185f   : > { %v3672_v54 = vpop.f32.mrb[76].mxu0 }
0x1860   : > { %v3724_v55 = vpack.c.bf16 %v3718_v27, %v3672_v54  ;;  %v5171_v56 = vpop.f32.mrb[77].mxu0 }
0x1861   : > { %v3675_v57 = vpop.f32.mrb[78].mxu0 }
0x1862   : > { %v5172_v59 = vpop.f32.mrb[79].mxu0  ;;  %5182 = vmatmul.mubr.msk.bf16.vlgmr.msra.gmra.mrb[80].mxu0 %vm1589_vm2, %v3724_v55 }
0x1863   : > { %5192 = vmatpush3.bf16.xpose.msra.mxu0 %v3832_v58  ;;  %5193 = vmatprep.mubr.msk.bf16.mxu0 %vm6246_vm0, %v6245_v0 }
0x1864   : > { %5203 = vmatprep.subr.bf16.mxu0 %v6245_v0 }
0x186a   : > { %5194 = vmatmul.mubr.msk.bf16.vlgmr.msra.gmra.mrb[84].mxu0 %vm1589_vm2, %v3825_v62  ;;  %v5490_v62 = vld [vmem:[%s7584_s29 + $0x8] sm:$0xff]  }
0x186b   : > { %5205 = vmatprep.mubr.msk.bf16.mxu0 %vm6246_vm0, %v6245_v0 }
0x18e9   : > { %v3876_v49 = vpop.xlane.xlu0 %3875 }
0x18ea   : > { %v3880_v51 = vsub.f32 %v3819_v47, %v3876_v49  ;;  %v5492_v49 = vld [vmem:[%s7585_s22 + $0x8] sm:$0xff]  }
0x18ec   : > { %v3882_v60 = vmul.f32 1.442695, %v3880_v51 }
0x18ee   : > { %5555 = vpow2.f32 %v3882_v60 }
0x18f8   : > { %v5556_v63 = vpop.eup %5555 }
0x18f9   : > { %v3886_v2 = vsel %vm3081_vm4, %v5556_v63, 0.0 }
0x18fa   : > { %3887 = vadd.xlane.f32.xlu0 %v3886_v2 }
0x1935   : > { %v3765_v3 = vpop.f32.mrb[80].mxu0 }
0x1936   : > { %v3772_v8 = vadd.f32 %v3765_v3, %v7309_v9  ;;  %v5183_v42 = vpop.f32.mrb[81].mxu0 }
0x1937   : > { %v3768_v10 = vpop.f32.mrb[82].mxu0 }
0x1938   : > { %v3773_v11 = vadd.f32 %v3768_v10, %v7311_v41  ;;  %v5184_v12 = vpop.f32.mrb[83].mxu0 }
0x193d   : > { %v3868_v40 = vpop.f32.mrb[84].mxu0 }
0x193e   : > { %v3869_v13 = vadd.f32 %v7209_v1, %v3868_v40  ;;  %v5195_v53 = vpop.f32.mrb[85].mxu0 }
0x193f   : > { %v3871_v14 = vpop.f32.mrb[86].mxu0 }
0x1940   : > { %v5196_v15 = vpop.f32.mrb[87].mxu0  ;;  %v3877_v16 = vsel %vm3081_vm4, %v3869_v13, -inf }
0x1941   : > { %3878 = vmax.xlane.f32.xlu1 %v3877_v16 }
0x1952   : > { %3944 = vrot.lane.b32.xlu1 %v7197_v61, %s6249_s13 }
0x1987   : > { %v3888_v21 = vpop.xlane.xlu0 %3887 }
0x19ce   : > { %v3879_v32 = vpop.xlane.xlu1 %3878 }
0x19cf   : > { %v3881_v17 = vsub.f32 %v3869_v13, %v3879_v32  ;;  %v4783_v32 = vld [vmem:[#allocation28] ss:$0 sm:$0xff] }
0x19d1   : > { %v3884_v9 = vmul.f32 1.442695, %v3881_v17 }
0x19d2   : > { %v3945_v18 = vpop.permute.xlu1 %3944 }
0x19d3   : > { %5557 = vpow2.f32 %v3884_v9  ;;  %5204 = vmatpush3.bf16.msra.mxu0 %v3945_v18 }
0x19d4   : > { %5215 = vmatprep.subr.bf16.mxu0 %v6245_v0  ;;  %5559 = vrcp.f32 %v3888_v21  ;;  %v4784_v21 = vld [vmem:[#allocation29] ss:$0 sm:$0xff] }
0x19dd   : > { %v5558_v41 = vpop.eup %5557 }
0x19de   : > { %v3889_v1 = vsel %vm3081_vm4, %v5558_v41, 0.0  ;;  %v5560_v23 = vpop.eup %5559 }
0x19df   : > { %3890 = vadd.xlane.f32.xlu0 %v3889_v1  ;;  %v3894_v24 = vmul.f32 %v5560_v23, %v5556_v63 }
0x19e1   : > { %v3896_v26 = vpack.c.bf16 %v3894_v24, %v3894_v24 }
0x19f5   : > { %3898 = vrot.lane.b32.xlu0 %v7199_v43, %s6249_s13  ;;  %s1346_s13 = scalar_lea.vmem [#allocation31], %s4684_s4  ;;  %s6089_s4 = sshll.u32 %s6250_s11, 4  ;;  %s6090_s4 = int_to_ptr.vmem [resolvable:$false] %s6089_s4 }
0x19f6   : > { %s4320_s6 = sshll.u32 %s1346_s13, 4  ;;  %s7401_s6 = int_to_ptr.vmem [resolvable:$true] %s4320_s6 }
0x19f7   : > { %p6092_p12 = scmp.lt.s32.totalorder %s7401_s6, %s6090_s4 }
0x1a6c   : > { %v3891_v61 = vpop.xlane.xlu0 %3890 }
0x1a6d   : > { %5561 = vrcp.f32 %v3891_v61 }
0x1a70   : > { %v3899_v25 = vpop.permute.xlu0 %3898 }
0x1a71   : > { %5198 = vmatpush3.bf16.msra.mxu1 %v3899_v25 }
0x1a72   : > { %5209 = vmatprep.subr.bf16.mxu1 %v6245_v0 }
0x1a74   : > { %5200 = vmatmul.mubr.msk.bf16.vlgmr.msra.gmra.mrb[84].mxu1 %vm3081_vm4, %v3896_v26  ;;  %v5493_v26 = vld [vmem:[%s7585_s22 + $0x10] sm:$0xff]  }
0x1a75   : > { %5211 = vmatprep.mubr.msk.bf16.mxu1 %vm6246_vm0, %v6245_v0  ;;  %5210 = vmatpush3.bf16.msra.mxu1 %v3995_v31 }
0x1a76   : > { %5223 = vmatprep.subr.bf16.mxu1 %v6245_v0 }
0x1a77   : > { %v5562_v28 = vpop.eup %5561 }
0x1a78   : > { %v3895_v29 = vmul.f32 %v5562_v28, %v5558_v41  ;;  %v5494_v28 = vld [vmem:[%s7585_s22 + $0x18] sm:$0xff]  }
0x1a7a   : > { %v3897_v43 = vpack.c.bf16 %v3895_v29, %v3895_v29  ;;  %v4785_v29 = vld [vmem:[%s7586_s14] ss:$0 sm:$0xff]  ;;  %s4307_s14 = scalar_lea.sflag [#allocation4], %s6835_s23 }
0x1a7c   : > { %5206 = vmatmul.mubr.msk.bf16.vlgmr.msra.gmra.mrb[88].mxu0 %vm3081_vm4, %v3897_v43 }
0x1a7d   : > { %5219 = vmatprep.mubr.msk.bf16.mxu0 %vm6246_vm0, %v6245_v0 }
0x1b47   : > { %v3938_v33 = vpop.f32.mrb[84].mxu1 }
0x1b48   : > { %v5201_v6 = vpop.f32.mrb[85].mxu1 }
0x1b49   : > { %v3941_v7 = vpop.f32.mrb[86].mxu1 }
0x1b4a   : > { %v5202_v35 = vpop.f32.mrb[87].mxu1 }
0x1b4f   : > { %v3984_v36 = vpop.f32.mrb[88].mxu0 }
0x1b50   : > { %v3990_v4 = vpack.c.bf16 %v3984_v36, %v3938_v33  ;;  %v5207_v37 = vpop.f32.mrb[89].mxu0 }
0x1b51   : > { %v3987_v27 = vpop.f32.mrb[90].mxu0  ;;  %v4789_v37 = vld [vmem:[%s7587_s7] ss:$0 sm:$0xff]  ;;  %s6085_s7 = scalar_lea.vmem %s7401_s6, 256 }
0x1b52   : > { %v5208_v5 = vpop.f32.mrb[91].mxu0  ;;  %5212 = vmatmul.mubr.msk.bf16.vlgmr.msra.gmra.mrb[88].mxu1 %vm1589_vm2, %v3990_v4  ;;  %p6086_p13 = scmp.ne.s32.totalorder %s7401_s6, %s6085_s7 }
0x1b53   : > { %5231 = vmatprep.mubr.msk.bf16.mxu1 %vm6246_vm0, %v6245_v0 }
0x1b54   : > { %p6087_p10 = pnand %p6086_p13, %p7592_p2 }
0x1b56   : > { %p6088_p11 = pneg %p6087_p10 }
0x1c25   : > { %v4031_v38 = vpop.f32.mrb[88].mxu1 }
0x1c26   : > { %v4038_v44 = vadd.f32 %v4031_v38, %v3772_v8  ;;  %v5213_v45 = vpop.f32.mrb[89].mxu1 }
0x1c27   : > { %v4034_v46 = vpop.f32.mrb[90].mxu1 }
0x1c28   : > { %v4047_v47 = vadd.f32 %v4782_v39, %v4038_v44  ;;  %v4039_v48 = vadd.f32 %v4034_v46, %v3773_v11  ;;  %v5214_v22 = vpop.f32.mrb[91].mxu1 }
0x1c2a   : > { %v4049_v50 = vadd.f32 %v4047_v47, %v7157_v20  ;;  %v4048_v52 = vadd.f32 %v4782_v39, %v4039_v48  ;;  %v5489_v20 = vld [vmem:[%s7584_s29] sm:$0xff]  }
0x1c2b   : > { %5216 = vmatpush3.bf16.msra.mxu0 %v5489_v20 }
0x1c2c   : > { %v4050_v34 = vadd.f32 %v4048_v52, %v7155_v19  ;;  %v4053_v54 = vsel %vm1390_vm1, %v4049_v50, 0.0  ;;  %v4061_v57 = vmul.f32 %v4049_v50, %v4049_v50  ;;  %5217 = vmatprep.subr.bf16.mxu0 %v6245_v0  ;;  %v5491_v19 = vld [vmem:[%s7585_s22] sm:$0xff]  }
0x1c2d   : > { %4054 = vadd.xlane.f32.xlu1 %v4053_v54  ;;  %5224 = vmatpush3.bf16.msra.mxu1 %v5491_v19 }
0x1c2e   : > { %v4056_v55 = vsel %vm1390_vm1, %v4050_v34, 0.0  ;;  %v4062_v56 = vmul.f32 %v4050_v34, %v4050_v34  ;;  %v4063_v59 = vsel %vm1390_vm1, %v4061_v57, 0.0  ;;  %5225 = vmatprep.subr.bf16.mxu1 %v6245_v0 }
0x1c2f   : > { %4057 = vadd.xlane.f32.xlu0 %v4056_v55  ;;  %5218 = vmatpush3.bf16.msra.mxu0 %v5490_v62 }
0x1c30   : > { %v4066_v58 = vsel %vm1390_vm1, %v4062_v56, 0.0 }
0x1c31   : > { %4067 = vadd.xlane.f32.xlu1 %v4066_v58  ;;  %5226 = vmatpush3.bf16.msra.mxu1 %v5492_v49 }
0x1c32   : > { %5227 = vmatprep.subr.bf16.mxu1 %v6245_v0 }
0x1c33   : > { %4064 = vadd.xlane.f32.xlu0 %v4063_v59 }
0x1c35   : > { %5228 = vmatpush3.bf16.msra.mxu1 %v5493_v26 }
0x1c36   : > { %5229 = vmatprep.subr.bf16.mxu1 %v6245_v0 }
0x1c39   : > { %5230 = vmatpush3.bf16.msra.mxu1 %v5494_v28 }
0x1cba   : > { %v4055_v51 = vpop.xlane.xlu1 %4054 }
0x1cbb   : > { %v4059_v63 = vmul.f32 0.03125, %v4055_v51 }
0x1cbc   : > { %v4058_v60 = vpop.xlane.xlu0 %4057 }
0x1cbd   : > { %v4060_v2 = vmul.f32 0.03125, %v4058_v60  ;;  %v4071_v11 = vmul.f32 %v4059_v63, %v4059_v63  ;;  %v4075_v17 = vsub.f32 %v4049_v50, %v4059_v63 }
0x1cbe   : > { %v4068_v3 = vpop.xlane.xlu1 %4067 }
0x1cbf   : > { %v4072_v8 = vmul.f32 %v4060_v2, %v4060_v2  ;;  %v4070_v42 = vmul.f32 0.03125, %v4068_v3  ;;  %v4076_v15 = vsub.f32 %v4050_v34, %v4060_v2 }
0x1cc0   : > { %v4065_v10 = vpop.xlane.xlu0 %4064 }
0x1cc1   : > { %v4074_v12 = vsub.f32 %v4070_v42, %v4072_v8  ;;  %v4069_v40 = vmul.f32 0.03125, %v4065_v10  ;;  %v4795_v42 = vld [vmem:[%s7588_s0] ss:$0 sm:$0xff]  ;;  %s6091_s0 = scalar_lea.vmem %s6090_s4, 512 }
0x1cc2   : > { %p6093_p1 = scmp.lt.s32.totalorder %s6091_s0, %s6085_s7 }
0x1cc3   : > { %v4078_v13 = vadd.f32 1e-05, %v4074_v12  ;;  %v4073_v53 = vsub.f32 %v4069_v40, %v4071_v11  ;;  %v4796_v40 = vld [vmem:[%s7589_s19] ss:$0 sm:$0xff] }
0x1cc4   : > { %p6094_p0 = por %p6093_p1, %p6092_p12 }
0x1cc5   : > { %5563 = vrsqrt.f32 %v4078_v13  ;;  %v4077_v14 = vadd.f32 1e-05, %v4073_v53 }
0x1cc6   : > { %p6095_p3 = pnand %p6094_p0, %p6088_p11 }
0x1cc7   : > { %5565 = vrsqrt.f32 %v4077_v14 }
0x1ccf   : > { %v5564_v16 = vpop.eup %5563 }
0x1cd0   : > { %v4082_v9 = vmul.f32 %v5564_v16, %v4076_v15 }
0x1cd1   : > { %v5566_v18 = vpop.eup %5565 }
0x1cd2   : > { %v4081_v41 = vmul.f32 %v5566_v18, %v4075_v17  ;;  %v4090_v1 = vmul.f32 %v4783_v32, %v4082_v9 }
0x1cd4   : > { %v4089_v23 = vmul.f32 %v4783_v32, %v4081_v41  ;;  %v4098_v24 = vadd.f32 %v4784_v21, %v4090_v1 }
0x1cd6   : > { %v4097_v61 = vadd.f32 %v4784_v21, %v4089_v23 }
0x1cd8   : > { %v4099_v25 = vpack.c.bf16 %v4098_v24, %v4097_v61 }
0x1cda   : > { %5220 = vmatmul.mubr.msk.bf16.vlgmr.msra.gmra.mrb[92].mxu0 %vm1390_vm1, %v4099_v25 }
0x1dad   : > { %v4160_v43 = vpop.f32.mrb[92].mxu0 }
0x1dae   : > { %v4161_v30 = vadd.f32 %v4785_v29, %v4160_v43  ;;  %v5221_v31 = vpop.f32.mrb[93].mxu0 }
0x1daf   : > { %v4163_v33 = vpop.f32.mrb[94].mxu0 }
0x1db0   : > { %v4164_v6 = vadd.f32 %v4785_v29, %v4163_v33  ;;  %v5222_v7 = vpop.f32.mrb[95].mxu0  ;;  %v4167_v35 = vmax.f32 %v4161_v30, 0.0 }
0x1db2   : > { %v4168_v36 = vmax.f32 %v4164_v6, 0.0 }
0x1db4   : > { %v4169_v4 = vpack.c.bf16 %v4168_v36, %v4167_v35 }
0x1db6   : > { %5232 = vmatmul.mubr.msk.bf16.vlgmr.msra.gmra.mrb[92].mxu1 %vm4209_vm5, %v4169_v4 }
0x1e89   : > { %v4247_v27 = vpop.f32.mrb[92].mxu1 }
0x1e8a   : > { %v4248_v5 = vadd.f32 %v4789_v37, %v4247_v27  ;;  %v5233_v38 = vpop.f32.mrb[93].mxu1 }
0x1e8b   : > { %v4250_v39 = vpop.f32.mrb[94].mxu1 }
0x1e8c   : > { %v4254_v0 = vadd.f32 %v4248_v5, %v4097_v61  ;;  %v4251_v44 = vadd.f32 %v4789_v37, %v4250_v39  ;;  %v5234_v45 = vpop.f32.mrb[95].mxu1 }
0x1e8e   : > { %v4255_v46 = vadd.f32 %v4251_v44, %v4098_v24  ;;  %v4258_v47 = vsel %vm1390_vm1, %v4254_v0, 0.0  ;;  %v4266_v48 = vmul.f32 %v4254_v0, %v4254_v0 }
0x1e8f   : > { %4259 = vadd.xlane.f32.xlu0 %v4258_v47 }
0x1e90   : > { %v4261_v22 = vsel %vm1390_vm1, %v4255_v46, 0.0  ;;  %v4267_v50 = vmul.f32 %v4255_v46, %v4255_v46  ;;  %v4268_v52 = vsel %vm1390_vm1, %v4266_v48, 0.0 }
0x1e91   : > { %4262 = vadd.xlane.f32.xlu1 %v4261_v22 }
0x1e92   : > { %v4271_v34 = vsel %vm1390_vm1, %v4267_v50, 0.0 }
0x1e93   : > { %4269 = vadd.xlane.f32.xlu0 %v4268_v52 }
0x1e95   : > { %4272 = vadd.xlane.f32.xlu1 %v4271_v34 }
0x1f1c   : > { %v4260_v54 = vpop.xlane.xlu0 %4259 }
0x1f1d   : > { %v4264_v55 = vmul.f32 0.03125, %v4260_v54 }
0x1f1e   : > { %v4263_v56 = vpop.xlane.xlu1 %4262 }
0x1f1f   : > { %v4265_v57 = vmul.f32 0.03125, %v4263_v56  ;;  %v4276_v59 = vmul.f32 %v4264_v55, %v4264_v55  ;;  %v4280_v3 = vsub.f32 %v4254_v0, %v4264_v55 }
0x1f20   : > { %v4270_v58 = vpop.xlane.xlu0 %4269 }
0x1f21   : > { %v4274_v20 = vmul.f32 0.03125, %v4270_v58  ;;  %v4277_v19 = vmul.f32 %v4265_v57, %v4265_v57  ;;  %v4281_v10 = vsub.f32 %v4255_v46, %v4265_v57 }
0x1f22   : > { %v4273_v62 = vpop.xlane.xlu1 %4272 }
0x1f23   : > { %v4278_v49 = vsub.f32 %v4274_v20, %v4276_v59  ;;  %v4275_v51 = vmul.f32 0.03125, %v4273_v62 }
0x1f25   : > { %v4282_v60 = vadd.f32 1e-05, %v4278_v49  ;;  %v4279_v63 = vsub.f32 %v4275_v51, %v4277_v19 }
0x1f27   : > { %5567 = vrsqrt.f32 %v4282_v60  ;;  %v4283_v2 = vadd.f32 1e-05, %v4279_v63 }
0x1f29   : > { %5569 = vrsqrt.f32 %v4283_v2 }
0x1f31   : > { %v5568_v8 = vpop.eup %5567 }
0x1f32   : > { %v4286_v11 = vmul.f32 %v5568_v8, %v4280_v3 }
0x1f33   : > { %v5570_v12 = vpop.eup %5569 }
0x1f34   : > { %v4294_v13 = vmul.f32 %v4795_v42, %v4286_v11  ;;  %v4287_v53 = vmul.f32 %v5570_v12, %v4281_v10 }
0x1f36   : > { %v4302_v14 = vadd.f32 %v4796_v40, %v4294_v13  ;;  %v4295_v15 = vmul.f32 %v4795_v42, %v4287_v53 }
0x1f38   : > { %v4303_v16 = vadd.f32 %v4796_v40, %v4295_v15  ;;  %4304 = vst.msk [vmem:[%s1346_s13] sm:$0xff] %vm1390_vm1, %v4302_v14 }
0x1f3a   : > { %4305 = vst.msk [vmem:[%s1346_s13 + $0x8] sm:$0xff] %vm1390_vm1, %v4303_v16 }
0x1f3b   : > { %6098 = shalt.err (!%p6095_p3)
}
0x1f3c   : > { %s6099_s19 = scalar_lea.hbm %s7399_s3, 256  ;;  %s6103_s28 = scalar_lea.hbm %s7590_s18, 512 }
0x1f3d   : > { %p6100_p6 = scmp.ne.s32.totalorder %s7399_s3, %s6099_s19  ;;  %p6104_p4 = scmp.lt.u32.totalorder %s7399_s3, %s7590_s18 }
0x1f3e   : > { %p6105_p8 = scmp.lt.u32.totalorder %s6103_s28, %s6099_s19  ;;  %p6107_p13 = scmp.lt.u32.totalorder %s6099_s19, %s7399_s3 }
0x1f3f   : > { %p6101_p7 = pnand %p6100_p6, %p7592_p2 }
0x1f40   : > { %p6106_p5 = por %p6105_p8, %p6104_p4 }
0x1f41   : > { %p6102_p9 = pneg %p6101_p7 }
0x1f42   : > { %p6108_p10 = por %p6107_p13, %p6106_p5 }
0x1f44   : > { %p6109_p11 = pnand %p6108_p10, %p6102_p9 }
0x1f46   : > { %6112 = shalt.err (!%p6109_p11)
}
0x1f47   : > { %s6251_s13 = smov 128   ;;  %s6252_s7 = smov 8  }
0x1f48   : > { %5297 = dma.vmem_to_hbm [thread:$0]  (%p7592_p2), %s7401_s6, 256, %s7399_s3, %s4307_s14, %s6251_s13, %s6251_s13, %s6252_s7  }
0x1f49 PF: > { %s7593_s11 = sld [smem:[#allocation71_spill]]  ;;  %s7594_s4 = sld [smem:[#allocation76_spill]] }
0x1f4a   : > { %p7596_p1 = scmp.ge.s32.totalorder %s6187_s2, 2 }
0x1f4f   : > { %s4335_s0 = sand.u32 1, %s7593_s11   ;;  %p7595_p12 = scmp.ne.s32.totalorder %s7594_s4, 0 }
0x1f50   : > { %s4336_s19 = scalar_lea.sflag [#allocation4], %s4335_s0 }
0x1f51   : > { %p5356_p0 = pnand %p7596_p1, %p7595_p12 }
0x1f53   : > { %6170 = dma.done.wait (!%p5356_p0), %s4336_s19, 256  }
0x1f54   : > { %6172 = vsyncadd (!%p5356_p0), %s4336_s19, 4294967040  ;;  %s7597_s2 = sld [smem:[#allocation73_spill]]  ;;  %s7598_s5 = sld [smem:[#allocation72_spill]] }
0x1f55   : > { %s7599_s0 = sld [smem:[#allocation74_spill]]  ;;  %s7600_s28 = smov %s6179_s1 }
0x1f5a   : > { %p91_p3 = scmp.ge.s32.totalorder %s7597_s2, 4   ;;  %s7601_s1 = smov %s7598_s5 }
0x1f5c   :  { %93 = sbr.rel (!%p91_p3) target bundleno = 81 (0x51), region = 328 }
0x1f63   :  { %4341 = vsyncpa [#allocation3], 1 }
0x1f64   :  { %4343 = vsyncpa [#allocation3 + $0x1], 1 }
0x1f65   :  { %4344 = vsyncpa [#allocation6], 1 }
0x1f66   :  { %4346 = vsyncpa [#allocation6 + $0x1], 1 }
0x1f67   :  { %4347 = vsyncpa [#allocation9], 1 }
0x1f68   :  { %4349 = vsyncpa [#allocation9 + $0x1], 1 }
0x1f69   :  { %4350 = vsyncpa [#allocation12], 1 }
0x1f6a   :  { %4351 = vsyncpa [#allocation15], 1 }
0x1f6b   :  { %4352 = vsyncpa [#allocation18], 1 }
0x1f6c   :  { %4353 = vsyncpa [#allocation21], 1 }
0x1f6d   :  { %4354 = vsyncpa [#allocation24], 1 }
0x1f6e   :  { %4355 = vsyncpa [#allocation27], 1 }
0x1f6f   :  { %4356 = vsyncpa [#allocation30], 1 }
0x1f70   :  { %4357 = vsyncpa [#allocation4], 1 }
0x1f71   :  { %4359 = vsyncpa [#allocation4 + $0x1], 1 }

</bundles_post_ra>
